<compile_context>
chip_gen: v7x
topology: tpu7x:2x2x1
jax: 0.10.0
libtpu: 0.0.40
codegen_flags: <defaults>
</compile_context>

<pallas_src>
import functools

import jax
import jax.numpy as jnp
from jax.experimental import pallas as pl
from jax.experimental.pallas import tpu as pltpu

LANE = 128                           # pad all channel dims to this lane width
VMEM_LIMIT = 48 * 1024 * 1024        # safe on v5e/v6e (128 MiB) and v7x (64 MiB)


def _round_up(x, m):
    return ((x + m - 1) // m) * m


# ------------------------------ Pallas kernels ------------------------------

def _conv_accumulate(x_ref, w_ref, *, kw, stride, ho, wo_pad):
    """Direct conv: accumulate all kw*kw taps into an (ho*wo_pad, Cout_p) f32 acc.

    x_ref: (stride*stride, Hq, Wq, Cin) bf16 -- phase-decomposed, zero-padded
           input of one batch element (every tap is a unit-stride slab).
    w_ref: (kw*kw, Cin, Cout_p) bf16 weights (channel dims zero-padded).
    """
    cin = x_ref.shape[-1]
    cout = w_ref.shape[-1]
    phases = [x_ref[i] for i in range(stride * stride)]
    acc = jnp.zeros((ho * wo_pad, cout), jnp.float32)
    for ki in range(kw):
        a, p = ki // stride, ki % stride
        for kj in range(kw):
            b, q = kj // stride, kj % stride
            tap = phases[p * stride + q][a:a + ho, b:b + wo_pad, :]
            # wo_pad % 8 == 0 -> lane-dim-preserving, sublane-aligned collapse.
            tap = tap.reshape(ho * wo_pad, cin)
            acc = acc + jnp.dot(tap, w_ref[ki * kw + kj],
                                preferred_element_type=jnp.float32)
    return acc


def conv_bias_kernel(x_ref, w_ref, b_ref, o_ref, *, kw, stride, ho, wo_pad,
                     negative_slope):
    """Conv + bias (+ optional fused LeakyReLU). bf16 out, f32 accumulation."""
    acc = _conv_accumulate(x_ref, w_ref, kw=kw, stride=stride, ho=ho,
                           wo_pad=wo_pad)
    acc = acc + b_ref[...]
    if negative_slope is not None:
        acc = jnp.where(acc >= 0, acc, negative_slope * acc)
    o_ref[...] = acc[None].astype(o_ref.dtype)


def conv_stats_kernel(x_ref, w_ref, mask_ref, o_ref, stats_ref, *, kw, stride,
                      ho, wo_pad):
    """Conv (no bias: it cancels in BN) with fused per-channel sum / sumsq.

    mask_ref zeroes the width-alignment junk columns so they do not pollute
    the batch statistics.  Stats are per-batch-element partials (the batch
    grid stays fully parallel); the reduction over batch happens in plain JAX.
    """
    acc = _conv_accumulate(x_ref, w_ref, kw=kw, stride=stride, ho=ho,
                           wo_pad=wo_pad)
    o_ref[...] = acc[None].astype(o_ref.dtype)
    masked = acc * mask_ref[...]
    s1 = jnp.sum(masked, axis=0, keepdims=True)
    s2 = jnp.sum(masked * acc, axis=0, keepdims=True)   # mask * acc^2
    stats_ref[...] = jnp.concatenate([s1, s2], axis=0)[None]


def bn_leaky_kernel(y_ref, scale_ref, shift_ref, o_ref, *, negative_slope):
    y = y_ref[...].astype(jnp.float32) * scale_ref[...] + shift_ref[...]
    o_ref[...] = jnp.where(y >= 0, y, negative_slope * y).astype(o_ref.dtype)


# ------------------------- wrappers around pallas_call ----------------------

def conv2d_nhwc(x, w, b, stride, pad, *, negative_slope=None,
                collect_stats=False):
    """Direct NHWC conv via a Pallas kernel (no materialized im2col in HBM).

    x: (N, H, W, Cin) bf16; Cin may already be lane-padded (extra channels are
       zero and the matching weight rows are zero, so results are exact).
    w: (kw, kw, Cin_real, Cout) f32 PyTorch-shaped weights, b: (Cout,) or None.
    Returns (y (N, Ho*Wo8, Cout_p) bf16, geometry, stats (2, Cout_p) f32|None).
    """
    N, H, W, cin = x.shape
    kw = w.shape[0]
    cout = w.shape[3]
    cout_p = _round_up(cout, LANE)
    s = stride

    Hp, Wp = H + 2 * pad, W + 2 * pad
    Ho = (Hp - kw) // s + 1
    Wo = (Wp - kw) // s + 1
    Wo8 = _round_up(Wo, 8)               # 8-aligned tap width (lane-dense math)
    amax = (kw - 1) // s
    Hq = max(-(-Hp // s), amax + Ho)     # phase height
    Wq = max(-(-Wp // s), amax + Wo8)    # phase width (covers padded taps)

    # conv zero-padding + alignment zero-padding: one XLA pass over the input.
    xp = jnp.pad(x.astype(jnp.bfloat16),
                 ((0, 0), (pad, Hq * s - Hp + pad), (pad, Wq * s - Wp + pad),
                  (0, 0)))
    # phase decomposition: a stride-s conv becomes unit-stride taps on the
    # s*s phase sub-grids (total bytes == padded input bytes).
    phases = jnp.stack(
        [xp[:, p::s, q::s, :] for p in range(s) for q in range(s)],
        axis=1).reshape(N * s * s, Hq, Wq, cin)

    # lane-pad weights: Cin up to the activation channel count, Cout up to a
    # multiple of 128 so every store is lane-dense (incl. the Cout=1 layer).
    wmat = jnp.zeros((kw, kw, cin, cout_p), jnp.float32)
    wmat = wmat.at[:, :, :w.shape[2], :cout].set(w)
    wmat = wmat.reshape(kw * kw, cin, cout_p).astype(jnp.bfloat16)

    M = Ho * Wo8
    x_spec = pl.BlockSpec((s * s, Hq, Wq, cin), lambda n: (n, 0, 0, 0))
    w_spec = pl.BlockSpec((kw * kw, cin, cout_p), lambda n: (0, 0, 0))
    o_spec = pl.BlockSpec((1, M, cout_p), lambda n: (n, 0, 0))
    cparams = pltpu.CompilerParams(dimension_semantics=("parallel",),
                                   vmem_limit_bytes=VMEM_LIMIT)
    geom = (N, Ho, Wo, Wo8, cout, cout_p)

    if collect_stats:
        mask = (jnp.arange(M) % Wo8 < Wo).astype(jnp.float32).reshape(M, 1)
        y, stats_n = pl.pallas_call(
            functools.partial(conv_stats_kernel, kw=kw, stride=s, ho=Ho,
                              wo_pad=Wo8),
            grid=(N,),
            in_specs=[x_spec, w_spec, pl.BlockSpec((M, 1), lambda n: (0, 0))],
            out_specs=(o_spec,
                       pl.BlockSpec((1, 2, cout_p), lambda n: (n, 0, 0))),
            out_shape=(jax.ShapeDtypeStruct((N, M, cout_p), jnp.bfloat16),
                       jax.ShapeDtypeStruct((N, 2, cout_p), jnp.float32)),
            compiler_params=cparams,
        )(phases, wmat, mask)
        return y, geom, jnp.sum(stats_n, axis=0)

    bvec = jnp.zeros((1, cout_p), jnp.float32).at[0, :cout].set(b)
    y = pl.pallas_call(
        functools.partial(conv_bias_kernel, kw=kw, stride=s, ho=Ho, wo_pad=Wo8,
                          negative_slope=negative_slope),
        grid=(N,),
        in_specs=[x_spec, w_spec, pl.BlockSpec((1, cout_p), lambda n: (0, 0))],
        out_specs=o_spec,
        out_shape=jax.ShapeDtypeStruct((N, M, cout_p), jnp.bfloat16),
        compiler_params=cparams,
    )(phases, wmat, bvec)
    return y, geom, None


def batchnorm_leaky(y_flat, stats, m_valid, gamma, beta, cout, *, eps=1e-5,
                    negative_slope=0.2):
    """Training-mode BN (this device's batch stats) + LeakyReLU, one fused pass."""
    N, M, cp = y_flat.shape
    mean = stats[0] / m_valid
    var = jnp.maximum(stats[1] / m_valid - mean * mean, 0.0)   # biased var
    gamma_p = jnp.zeros((cp,), jnp.float32).at[:cout].set(gamma)
    beta_p = jnp.zeros((cp,), jnp.float32).at[:cout].set(beta)
    inv = jax.lax.rsqrt(var + eps)
    scale = (gamma_p * inv).reshape(1, 1, cp)
    shift = (beta_p - mean * gamma_p * inv).reshape(1, 1, cp)
    return pl.pallas_call(
        functools.partial(bn_leaky_kernel, negative_slope=negative_slope),
        grid=(N,),
        in_specs=[pl.BlockSpec((1, M, cp), lambda n: (n, 0, 0)),
                  pl.BlockSpec((1, 1, cp), lambda n: (0, 0, 0)),
                  pl.BlockSpec((1, 1, cp), lambda n: (0, 0, 0))],
        out_specs=pl.BlockSpec((1, M, cp), lambda n: (n, 0, 0)),
        out_shape=jax.ShapeDtypeStruct((N, M, cp), jnp.bfloat16),
        compiler_params=pltpu.CompilerParams(
            dimension_semantics=("parallel",), vmem_limit_bytes=VMEM_LIMIT),
    )(y_flat, scale, shift)


# --------------------------- NLayerDiscriminator ----------------------------

def make_params(key, input_nc, ndf=16, n_layers=3, kw=4):
    """Deterministic synthetic parameters mirroring the PyTorch __init__ shapes."""
    cfg = [(input_nc, ndf, 2, False)]                 # conv + leaky
    nf = ndf
    for _ in range(1, n_layers):
        nf_prev, nf = nf, min(nf * 2, 512)
        cfg.append((nf_prev, nf, 2, True))            # conv + BN + leaky
    nf_prev, nf = nf, min(nf * 2, 512)
    cfg.append((nf_prev, nf, 1, True))                # conv + BN + leaky
    cfg.append((nf, 1, 1, False))                     # conv only (no sigmoid)

    params = []
    for (ci, co, s, has_bn) in cfg:
        key, k1, k2 = jax.random.split(key, 3)
        params.append(dict(
            w=jax.random.normal(k1, (kw, kw, ci, co), jnp.float32) * 0.05,
            # bias exists in the PyTorch module for BN layers too, but it
            # cancels exactly in the normalization, so it is unused there.
            b=jax.random.normal(k2, (co,), jnp.float32) * 0.05,
            stride=s, has_bn=has_bn,
            gamma=jnp.ones((co,), jnp.float32) if has_bn else None,
            beta=jnp.zeros((co,), jnp.float32) if has_bn else None))
    return params


def nlayer_discriminator(x_nchw, params):
    """getIntermFeat=True forward: returns (res[-1], res[1:]) in NCHW."""
    padw = 2                                          # int(ceil((4 - 1) / 2))
    x = jnp.transpose(x_nchw, (0, 2, 3, 1)).astype(jnp.bfloat16)  # NCHW->NHWC
    feats = []
    for idx, p in enumerate(params):
        if p["has_bn"]:
            # conv (bias dropped: cancels in BN) with fused per-channel stats,
            # then a single normalize + LeakyReLU pass.
            y, (N, Ho, Wo, Wo8, cout, cout_p), stats = conv2d_nhwc(
                x, p["w"], None, p["stride"], padw, collect_stats=True)
            y = batchnorm_leaky(y, stats, N * Ho * Wo, p["gamma"], p["beta"],
                                cout)
        else:
            ns = 0.2 if idx == 0 else None   # first layer: LeakyReLU; last: none
            y, (N, Ho, Wo, Wo8, cout, cout_p), _ = conv2d_nhwc(
                x, p["w"], p["b"], p["stride"], padw, negative_slope=ns)
        # trim the width-alignment junk columns; keep the lane-padded channels
        # (exact zeros) so the next layer's loads/stores stay lane-dense.
        x = y.reshape(N, Ho, Wo8, cout_p)[:, :, :Wo, :]
        # only the returned features leave the NHWC / bf16 / lane-padded domain
        feats.append(jnp.transpose(x[..., :cout], (0, 3, 1, 2))
                     .astype(jnp.float32))
    return feats[-1], feats


if __name__ == "__main__":
    key = jax.random.PRNGKey(0)
    k_in, k_par = jax.random.split(key)

    # small, module-consistent shapes: batch=2, input_nc=4, 16x16 spatial, ndf=16
    x = jax.random.normal(k_in, (2, 4, 16, 16), jnp.float32)
    params = make_params(k_par, input_nc=4, ndf=16, n_layers=3)

    final, interm = nlayer_discriminator(x, params)
    final = jax.block_until_ready(final)
    for f in interm:
        jax.block_until_ready(f)

    assert final.shape == (2, 1, 5, 5), final.shape
    assert len(interm) == 5
    assert interm[0].shape == (2, 16, 9, 9), interm[0].shape
    assert interm[3].shape == (2, 128, 4, 4), interm[3].shape
    assert bool(jnp.all(jnp.isfinite(final)))
    print("KERNEL_OK")
</pallas_src>

<mosaic_0001>
module attributes {stable_mosaic.version = 11 : i64} {
  func.func @conv_bias_kernel(%arg0: i32, %arg1: memref<4x10x17x4xbf16, #tpu.memory_space<vmem>>, %arg2: memref<16x4x128xbf16, #tpu.memory_space<vmem>>, %arg3: memref<1x128xf32, #tpu.memory_space<vmem>>, %arg4: memref<1x144x128xbf16, #tpu.memory_space<vmem>>) attributes {dimension_semantics = [#tpu.dimension_semantics<parallel>], iteration_bounds = array<i64: 2>, scalar_prefetch = 0 : i64, scratch_operands = 0 : i64, tpu.core_type = #tpu.core_type<tc>, window_params = [{transform_indices = @transform_0, window_bounds = array<i64: 4, 10, 17, 4>}, {pipeline_mode = #tpu.pipeline_mode<synchronous>, transform_indices = @transform_1, window_bounds = array<i64: 16, 4, 128>}, {pipeline_mode = #tpu.pipeline_mode<synchronous>, transform_indices = @transform_2, window_bounds = array<i64: 1, 128>}, {transform_indices = @transform_3, window_bounds = array<i64: 1, 144, 128>}]} {
    %c0 = arith.constant 0 : index
    %c0_0 = arith.constant 0 : index
    %c0_1 = arith.constant 0 : index
    %c0_2 = arith.constant 0 : index
    %0 = vector.load %arg1[%c0, %c0_0, %c0_1, %c0_2] : memref<4x10x17x4xbf16, #tpu.memory_space<vmem>>, vector<1x10x17x4xbf16>
    %1 = vector.shape_cast %0 : vector<1x10x17x4xbf16> to vector<10x17x4xbf16>
    %c1 = arith.constant 1 : index
    %c0_3 = arith.constant 0 : index
    %c0_4 = arith.constant 0 : index
    %c0_5 = arith.constant 0 : index
    %2 = vector.load %arg1[%c1, %c0_3, %c0_4, %c0_5] : memref<4x10x17x4xbf16, #tpu.memory_space<vmem>>, vector<1x10x17x4xbf16>
    %3 = vector.shape_cast %2 : vector<1x10x17x4xbf16> to vector<10x17x4xbf16>
    %c2 = arith.constant 2 : index
    %c0_6 = arith.constant 0 : index
    %c0_7 = arith.constant 0 : index
    %c0_8 = arith.constant 0 : index
    %4 = vector.load %arg1[%c2, %c0_6, %c0_7, %c0_8] : memref<4x10x17x4xbf16, #tpu.memory_space<vmem>>, vector<1x10x17x4xbf16>
    %5 = vector.shape_cast %4 : vector<1x10x17x4xbf16> to vector<10x17x4xbf16>
    %c3 = arith.constant 3 : index
    %c0_9 = arith.constant 0 : index
    %c0_10 = arith.constant 0 : index
    %c0_11 = arith.constant 0 : index
    %6 = vector.load %arg1[%c3, %c0_9, %c0_10, %c0_11] : memref<4x10x17x4xbf16, #tpu.memory_space<vmem>>, vector<1x10x17x4xbf16>
    %7 = vector.shape_cast %6 : vector<1x10x17x4xbf16> to vector<10x17x4xbf16>
    %cst = arith.constant 0.000000e+00 : f32
    %8 = vector.broadcast %cst : f32 to vector<144x128xf32>
    %9 = vector.extract_strided_slice %1 {offsets = [0, 0, 0], sizes = [9, 16, 4], strides = [1, 1, 1]} : vector<10x17x4xbf16> to vector<9x16x4xbf16>
    %10 = vector.shape_cast %9 : vector<9x16x4xbf16> to vector<144x4xbf16>
    %c0_12 = arith.constant 0 : index
    %c0_13 = arith.constant 0 : index
    %c0_14 = arith.constant 0 : index
    %11 = vector.load %arg2[%c0_12, %c0_13, %c0_14] : memref<16x4x128xbf16, #tpu.memory_space<vmem>>, vector<1x4x128xbf16>
    %12 = vector.shape_cast %11 : vector<1x4x128xbf16> to vector<4x128xbf16>
    %cst_15 = arith.constant dense<0.000000e+00> : vector<144x128xf32>
    %13 = tpu.matmul %10, %12, %cst_15 {dimension_numbers = #tpu.dot_dimension_numbers<[1], [0], [0], [1], [0, 0, 1, 1], [], []>} : vector<144x4xbf16>, vector<4x128xbf16>, vector<144x128xf32> -> vector<144x128xf32>
    %14 = arith.addf %8, %13 : vector<144x128xf32>
    %15 = vector.extract_strided_slice %3 {offsets = [0, 0, 0], sizes = [9, 16, 4], strides = [1, 1, 1]} : vector<10x17x4xbf16> to vector<9x16x4xbf16>
    %16 = vector.shape_cast %15 : vector<9x16x4xbf16> to vector<144x4xbf16>
    %c1_16 = arith.constant 1 : index
    %c0_17 = arith.constant 0 : index
    %c0_18 = arith.constant 0 : index
    %17 = vector.load %arg2[%c1_16, %c0_17, %c0_18] : memref<16x4x128xbf16, #tpu.memory_space<vmem>>, vector<1x4x128xbf16>
    %18 = vector.shape_cast %17 : vector<1x4x128xbf16> to vector<4x128xbf16>
    %cst_19 = arith.constant dense<0.000000e+00> : vector<144x128xf32>
    %19 = tpu.matmul %16, %18, %cst_19 {dimension_numbers = #tpu.dot_dimension_numbers<[1], [0], [0], [1], [0, 0, 1, 1], [], []>} : vector<144x4xbf16>, vector<4x128xbf16>, vector<144x128xf32> -> vector<144x128xf32>
    %20 = arith.addf %14, %19 : vector<144x128xf32>
    %21 = vector.extract_strided_slice %1 {offsets = [0, 1, 0], sizes = [9, 16, 4], strides = [1, 1, 1]} : vector<10x17x4xbf16> to vector<9x16x4xbf16>
    %22 = vector.shape_cast %21 : vector<9x16x4xbf16> to vector<144x4xbf16>
    %c2_20 = arith.constant 2 : index
    %c0_21 = arith.constant 0 : index
    %c0_22 = arith.constant 0 : index
    %23 = vector.load %arg2[%c2_20, %c0_21, %c0_22] : memref<16x4x128xbf16, #tpu.memory_space<vmem>>, vector<1x4x128xbf16>
    %24 = vector.shape_cast %23 : vector<1x4x128xbf16> to vector<4x128xbf16>
    %cst_23 = arith.constant dense<0.000000e+00> : vector<144x128xf32>
    %25 = tpu.matmul %22, %24, %cst_23 {dimension_numbers = #tpu.dot_dimension_numbers<[1], [0], [0], [1], [0, 0, 1, 1], [], []>} : vector<144x4xbf16>, vector<4x128xbf16>, vector<144x128xf32> -> vector<144x128xf32>
    %26 = arith.addf %20, %25 : vector<144x128xf32>
    %27 = vector.extract_strided_slice %3 {offsets = [0, 1, 0], sizes = [9, 16, 4], strides = [1, 1, 1]} : vector<10x17x4xbf16> to vector<9x16x4xbf16>
    %28 = vector.shape_cast %27 : vector<9x16x4xbf16> to vector<144x4xbf16>
    %c3_24 = arith.constant 3 : index
    %c0_25 = arith.constant 0 : index
    %c0_26 = arith.constant 0 : index
    %29 = vector.load %arg2[%c3_24, %c0_25, %c0_26] : memref<16x4x128xbf16, #tpu.memory_space<vmem>>, vector<1x4x128xbf16>
    %30 = vector.shape_cast %29 : vector<1x4x128xbf16> to vector<4x128xbf16>
    %cst_27 = arith.constant dense<0.000000e+00> : vector<144x128xf32>
    %31 = tpu.matmul %28, %30, %cst_27 {dimension_numbers = #tpu.dot_dimension_numbers<[1], [0], [0], [1], [0, 0, 1, 1], [], []>} : vector<144x4xbf16>, vector<4x128xbf16>, vector<144x128xf32> -> vector<144x128xf32>
    %32 = arith.addf %26, %31 : vector<144x128xf32>
    %33 = vector.extract_strided_slice %5 {offsets = [0, 0, 0], sizes = [9, 16, 4], strides = [1, 1, 1]} : vector<10x17x4xbf16> to vector<9x16x4xbf16>
    %34 = vector.shape_cast %33 : vector<9x16x4xbf16> to vector<144x4xbf16>
    %c4 = arith.constant 4 : index
    %c0_28 = arith.constant 0 : index
    %c0_29 = arith.constant 0 : index
    %35 = vector.load %arg2[%c4, %c0_28, %c0_29] : memref<16x4x128xbf16, #tpu.memory_space<vmem>>, vector<1x4x128xbf16>
    %36 = vector.shape_cast %35 : vector<1x4x128xbf16> to vector<4x128xbf16>
    %cst_30 = arith.constant dense<0.000000e+00> : vector<144x128xf32>
    %37 = tpu.matmul %34, %36, %cst_30 {dimension_numbers = #tpu.dot_dimension_numbers<[1], [0], [0], [1], [0, 0, 1, 1], [], []>} : vector<144x4xbf16>, vector<4x128xbf16>, vector<144x128xf32> -> vector<144x128xf32>
    %38 = arith.addf %32, %37 : vector<144x128xf32>
    %39 = vector.extract_strided_slice %7 {offsets = [0, 0, 0], sizes = [9, 16, 4], strides = [1, 1, 1]} : vector<10x17x4xbf16> to vector<9x16x4xbf16>
    %40 = vector.shape_cast %39 : vector<9x16x4xbf16> to vector<144x4xbf16>
    %c5 = arith.constant 5 : index
    %c0_31 = arith.constant 0 : index
    %c0_32 = arith.constant 0 : index
    %41 = vector.load %arg2[%c5, %c0_31, %c0_32] : memref<16x4x128xbf16, #tpu.memory_space<vmem>>, vector<1x4x128xbf16>
    %42 = vector.shape_cast %41 : vector<1x4x128xbf16> to vector<4x128xbf16>
    %cst_33 = arith.constant dense<0.000000e+00> : vector<144x128xf32>
    %43 = tpu.matmul %40, %42, %cst_33 {dimension_numbers = #tpu.dot_dimension_numbers<[1], [0], [0], [1], [0, 0, 1, 1], [], []>} : vector<144x4xbf16>, vector<4x128xbf16>, vector<144x128xf32> -> vector<144x128xf32>
    %44 = arith.addf %38, %43 : vector<144x128xf32>
    %45 = vector.extract_strided_slice %5 {offsets = [0, 1, 0], sizes = [9, 16, 4], strides = [1, 1, 1]} : vector<10x17x4xbf16> to vector<9x16x4xbf16>
    %46 = vector.shape_cast %45 : vector<9x16x4xbf16> to vector<144x4xbf16>
    %c6 = arith.constant 6 : index
    %c0_34 = arith.constant 0 : index
    %c0_35 = arith.constant 0 : index
    %47 = vector.load %arg2[%c6, %c0_34, %c0_35] : memref<16x4x128xbf16, #tpu.memory_space<vmem>>, vector<1x4x128xbf16>
    %48 = vector.shape_cast %47 : vector<1x4x128xbf16> to vector<4x128xbf16>
    %cst_36 = arith.constant dense<0.000000e+00> : vector<144x128xf32>
    %49 = tpu.matmul %46, %48, %cst_36 {dimension_numbers = #tpu.dot_dimension_numbers<[1], [0], [0], [1], [0, 0, 1, 1], [], []>} : vector<144x4xbf16>, vector<4x128xbf16>, vector<144x128xf32> -> vector<144x128xf32>
    %50 = arith.addf %44, %49 : vector<144x128xf32>
    %51 = vector.extract_strided_slice %7 {offsets = [0, 1, 0], sizes = [9, 16, 4], strides = [1, 1, 1]} : vector<10x17x4xbf16> to vector<9x16x4xbf16>
    %52 = vector.shape_cast %51 : vector<9x16x4xbf16> to vector<144x4xbf16>
    %c7 = arith.constant 7 : index
    %c0_37 = arith.constant 0 : index
    %c0_38 = arith.constant 0 : index
    %53 = vector.load %arg2[%c7, %c0_37, %c0_38] : memref<16x4x128xbf16, #tpu.memory_space<vmem>>, vector<1x4x128xbf16>
    %54 = vector.shape_cast %53 : vector<1x4x128xbf16> to vector<4x128xbf16>
    %cst_39 = arith.constant dense<0.000000e+00> : vector<144x128xf32>
    %55 = tpu.matmul %52, %54, %cst_39 {dimension_numbers = #tpu.dot_dimension_numbers<[1], [0], [0], [1], [0, 0, 1, 1], [], []>} : vector<144x4xbf16>, vector<4x128xbf16>, vector<144x128xf32> -> vector<144x128xf32>
    %56 = arith.addf %50, %55 : vector<144x128xf32>
    %57 = vector.extract_strided_slice %1 {offsets = [1, 0, 0], sizes = [9, 16, 4], strides = [1, 1, 1]} : vector<10x17x4xbf16> to vector<9x16x4xbf16>
    %58 = vector.shape_cast %57 : vector<9x16x4xbf16> to vector<144x4xbf16>
    %c8 = arith.constant 8 : index
    %c0_40 = arith.constant 0 : index
    %c0_41 = arith.constant 0 : index
    %59 = vector.load %arg2[%c8, %c0_40, %c0_41] : memref<16x4x128xbf16, #tpu.memory_space<vmem>>, vector<1x4x128xbf16>
    %60 = vector.shape_cast %59 : vector<1x4x128xbf16> to vector<4x128xbf16>
    %cst_42 = arith.constant dense<0.000000e+00> : vector<144x128xf32>
    %61 = tpu.matmul %58, %60, %cst_42 {dimension_numbers = #tpu.dot_dimension_numbers<[1], [0], [0], [1], [0, 0, 1, 1], [], []>} : vector<144x4xbf16>, vector<4x128xbf16>, vector<144x128xf32> -> vector<144x128xf32>
    %62 = arith.addf %56, %61 : vector<144x128xf32>
    %63 = vector.extract_strided_slice %3 {offsets = [1, 0, 0], sizes = [9, 16, 4], strides = [1, 1, 1]} : vector<10x17x4xbf16> to vector<9x16x4xbf16>
    %64 = vector.shape_cast %63 : vector<9x16x4xbf16> to vector<144x4xbf16>
    %c9 = arith.constant 9 : index
    %c0_43 = arith.constant 0 : index
    %c0_44 = arith.constant 0 : index
    %65 = vector.load %arg2[%c9, %c0_43, %c0_44] : memref<16x4x128xbf16, #tpu.memory_space<vmem>>, vector<1x4x128xbf16>
    %66 = vector.shape_cast %65 : vector<1x4x128xbf16> to vector<4x128xbf16>
    %cst_45 = arith.constant dense<0.000000e+00> : vector<144x128xf32>
    %67 = tpu.matmul %64, %66, %cst_45 {dimension_numbers = #tpu.dot_dimension_numbers<[1], [0], [0], [1], [0, 0, 1, 1], [], []>} : vector<144x4xbf16>, vector<4x128xbf16>, vector<144x128xf32> -> vector<144x128xf32>
    %68 = arith.addf %62, %67 : vector<144x128xf32>
    %69 = vector.extract_strided_slice %1 {offsets = [1, 1, 0], sizes = [9, 16, 4], strides = [1, 1, 1]} : vector<10x17x4xbf16> to vector<9x16x4xbf16>
    %70 = vector.shape_cast %69 : vector<9x16x4xbf16> to vector<144x4xbf16>
    %c10 = arith.constant 10 : index
    %c0_46 = arith.constant 0 : index
    %c0_47 = arith.constant 0 : index
    %71 = vector.load %arg2[%c10, %c0_46, %c0_47] : memref<16x4x128xbf16, #tpu.memory_space<vmem>>, vector<1x4x128xbf16>
    %72 = vector.shape_cast %71 : vector<1x4x128xbf16> to vector<4x128xbf16>
    %cst_48 = arith.constant dense<0.000000e+00> : vector<144x128xf32>
    %73 = tpu.matmul %70, %72, %cst_48 {dimension_numbers = #tpu.dot_dimension_numbers<[1], [0], [0], [1], [0, 0, 1, 1], [], []>} : vector<144x4xbf16>, vector<4x128xbf16>, vector<144x128xf32> -> vector<144x128xf32>
    %74 = arith.addf %68, %73 : vector<144x128xf32>
    %75 = vector.extract_strided_slice %3 {offsets = [1, 1, 0], sizes = [9, 16, 4], strides = [1, 1, 1]} : vector<10x17x4xbf16> to vector<9x16x4xbf16>
    %76 = vector.shape_cast %75 : vector<9x16x4xbf16> to vector<144x4xbf16>
    %c11 = arith.constant 11 : index
    %c0_49 = arith.constant 0 : index
    %c0_50 = arith.constant 0 : index
    %77 = vector.load %arg2[%c11, %c0_49, %c0_50] : memref<16x4x128xbf16, #tpu.memory_space<vmem>>, vector<1x4x128xbf16>
    %78 = vector.shape_cast %77 : vector<1x4x128xbf16> to vector<4x128xbf16>
    %cst_51 = arith.constant dense<0.000000e+00> : vector<144x128xf32>
    %79 = tpu.matmul %76, %78, %cst_51 {dimension_numbers = #tpu.dot_dimension_numbers<[1], [0], [0], [1], [0, 0, 1, 1], [], []>} : vector<144x4xbf16>, vector<4x128xbf16>, vector<144x128xf32> -> vector<144x128xf32>
    %80 = arith.addf %74, %79 : vector<144x128xf32>
    %81 = vector.extract_strided_slice %5 {offsets = [1, 0, 0], sizes = [9, 16, 4], strides = [1, 1, 1]} : vector<10x17x4xbf16> to vector<9x16x4xbf16>
    %82 = vector.shape_cast %81 : vector<9x16x4xbf16> to vector<144x4xbf16>
    %c12 = arith.constant 12 : index
    %c0_52 = arith.constant 0 : index
    %c0_53 = arith.constant 0 : index
    %83 = vector.load %arg2[%c12, %c0_52, %c0_53] : memref<16x4x128xbf16, #tpu.memory_space<vmem>>, vector<1x4x128xbf16>
    %84 = vector.shape_cast %83 : vector<1x4x128xbf16> to vector<4x128xbf16>
    %cst_54 = arith.constant dense<0.000000e+00> : vector<144x128xf32>
    %85 = tpu.matmul %82, %84, %cst_54 {dimension_numbers = #tpu.dot_dimension_numbers<[1], [0], [0], [1], [0, 0, 1, 1], [], []>} : vector<144x4xbf16>, vector<4x128xbf16>, vector<144x128xf32> -> vector<144x128xf32>
    %86 = arith.addf %80, %85 : vector<144x128xf32>
    %87 = vector.extract_strided_slice %7 {offsets = [1, 0, 0], sizes = [9, 16, 4], strides = [1, 1, 1]} : vector<10x17x4xbf16> to vector<9x16x4xbf16>
    %88 = vector.shape_cast %87 : vector<9x16x4xbf16> to vector<144x4xbf16>
    %c13 = arith.constant 13 : index
    %c0_55 = arith.constant 0 : index
    %c0_56 = arith.constant 0 : index
    %89 = vector.load %arg2[%c13, %c0_55, %c0_56] : memref<16x4x128xbf16, #tpu.memory_space<vmem>>, vector<1x4x128xbf16>
    %90 = vector.shape_cast %89 : vector<1x4x128xbf16> to vector<4x128xbf16>
    %cst_57 = arith.constant dense<0.000000e+00> : vector<144x128xf32>
    %91 = tpu.matmul %88, %90, %cst_57 {dimension_numbers = #tpu.dot_dimension_numbers<[1], [0], [0], [1], [0, 0, 1, 1], [], []>} : vector<144x4xbf16>, vector<4x128xbf16>, vector<144x128xf32> -> vector<144x128xf32>
    %92 = arith.addf %86, %91 : vector<144x128xf32>
    %93 = vector.extract_strided_slice %5 {offsets = [1, 1, 0], sizes = [9, 16, 4], strides = [1, 1, 1]} : vector<10x17x4xbf16> to vector<9x16x4xbf16>
    %94 = vector.shape_cast %93 : vector<9x16x4xbf16> to vector<144x4xbf16>
    %c14 = arith.constant 14 : index
    %c0_58 = arith.constant 0 : index
    %c0_59 = arith.constant 0 : index
    %95 = vector.load %arg2[%c14, %c0_58, %c0_59] : memref<16x4x128xbf16, #tpu.memory_space<vmem>>, vector<1x4x128xbf16>
    %96 = vector.shape_cast %95 : vector<1x4x128xbf16> to vector<4x128xbf16>
    %cst_60 = arith.constant dense<0.000000e+00> : vector<144x128xf32>
    %97 = tpu.matmul %94, %96, %cst_60 {dimension_numbers = #tpu.dot_dimension_numbers<[1], [0], [0], [1], [0, 0, 1, 1], [], []>} : vector<144x4xbf16>, vector<4x128xbf16>, vector<144x128xf32> -> vector<144x128xf32>
    %98 = arith.addf %92, %97 : vector<144x128xf32>
    %99 = vector.extract_strided_slice %7 {offsets = [1, 1, 0], sizes = [9, 16, 4], strides = [1, 1, 1]} : vector<10x17x4xbf16> to vector<9x16x4xbf16>
    %100 = vector.shape_cast %99 : vector<9x16x4xbf16> to vector<144x4xbf16>
    %c15 = arith.constant 15 : index
    %c0_61 = arith.constant 0 : index
    %c0_62 = arith.constant 0 : index
    %101 = vector.load %arg2[%c15, %c0_61, %c0_62] : memref<16x4x128xbf16, #tpu.memory_space<vmem>>, vector<1x4x128xbf16>
    %102 = vector.shape_cast %101 : vector<1x4x128xbf16> to vector<4x128xbf16>
    %cst_63 = arith.constant dense<0.000000e+00> : vector<144x128xf32>
    %103 = tpu.matmul %100, %102, %cst_63 {dimension_numbers = #tpu.dot_dimension_numbers<[1], [0], [0], [1], [0, 0, 1, 1], [], []>} : vector<144x4xbf16>, vector<4x128xbf16>, vector<144x128xf32> -> vector<144x128xf32>
    %104 = arith.addf %98, %103 : vector<144x128xf32>
    %c0_64 = arith.constant 0 : index
    %c0_65 = arith.constant 0 : index
    %105 = vector.load %arg3[%c0_64, %c0_65] : memref<1x128xf32, #tpu.memory_space<vmem>>, vector<1x128xf32>
    %106 = vector.broadcast %105 : vector<1x128xf32> to vector<144x128xf32>
    %107 = arith.addf %104, %106 : vector<144x128xf32>
    %cst_66 = arith.constant 0.000000e+00 : f32
    %108 = vector.broadcast %cst_66 : f32 to vector<144x128xf32>
    %109 = arith.cmpf oge, %107, %108 : vector<144x128xf32>
    %cst_67 = arith.constant 2.000000e-01 : f32
    %110 = vector.broadcast %cst_67 : f32 to vector<144x128xf32>
    %111 = arith.mulf %110, %107 : vector<144x128xf32>
    %112 = arith.select %109, %107, %111 : vector<144x128xi1>, vector<144x128xf32>
    %113 = vector.shape_cast %112 : vector<144x128xf32> to vector<1x144x128xf32>
    %114 = arith.truncf %113 : vector<1x144x128xf32> to vector<1x144x128xbf16>
    %c0_68 = arith.constant 0 : index
    %c0_69 = arith.constant 0 : index
    %c0_70 = arith.constant 0 : index
    %115 = vector.load %arg4[%c0_68, %c0_69, %c0_70] : memref<1x144x128xbf16, #tpu.memory_space<vmem>>, vector<1x144x128xbf16>
    tpu.vector_store %arg4[%c0_68, %c0_69, %c0_70], %114 {strides = array<i32>} : memref<1x144x128xbf16, #tpu.memory_space<vmem>>, vector<1x144x128xbf16>,
    return
  }
  func.func @transform_0(%arg0: i32) -> (i32, i32, i32, i32) {
    %c0_i32 = arith.constant 0 : i32
    %c0_i32_0 = arith.constant 0 : i32
    %c0_i32_1 = arith.constant 0 : i32
    %c0_i32_2 = arith.constant 0 : i32
    return %arg0, %c0_i32, %c0_i32_0, %c0_i32_1 : i32, i32, i32, i32
  }
  func.func @transform_1(%arg0: i32) -> (i32, i32, i32) {
    %c0_i32 = arith.constant 0 : i32
    %c0_i32_0 = arith.constant 0 : i32
    %c0_i32_1 = arith.constant 0 : i32
    %c0_i32_2 = arith.constant 0 : i32
    return %c0_i32, %c0_i32_0, %c0_i32_1 : i32, i32, i32
  }
  func.func @transform_2(%arg0: i32) -> (i32, i32) {
    %c0_i32 = arith.constant 0 : i32
    %c0_i32_0 = arith.constant 0 : i32
    %c0_i32_1 = arith.constant 0 : i32
    return %c0_i32, %c0_i32_0 : i32, i32
  }
  func.func @transform_3(%arg0: i32) -> (i32, i32, i32) {
    %c0_i32 = arith.constant 0 : i32
    %c0_i32_0 = arith.constant 0 : i32
    %c0_i32_1 = arith.constant 0 : i32
    return %arg0, %c0_i32, %c0_i32_0 : i32, i32, i32
  }
}

</mosaic_0001>

<bundles_post_ra>
// kernel: tpu_custom_call.1
= control target key start
LH: loop header
LB: loop body
LE: loop exit
PB: predicated region body
PF: predicated region fallthrough
CT: control target
= control target key end

     0   :  { %8 = vsyncpa [#allocation3], 0  ;;  %s7777_s0 = inlined_call_operand.vmem [shape: bf16[8,10,17,4], index: 0, kind: input, shape index: {}]   ;;  %s7778_s1 = inlined_call_operand.vmem [shape: bf16[16,4,128], index: 1, kind: input, shape index: {}]   ;;  %s7779_s2 = inlined_call_operand.vmem [shape: f32[1,128], index: 2, kind: input, shape index: {}]   ;;  %s7780_s3 = inlined_call_operand.hbm [shape: bf16[2,144,128], index: 3, kind: output, shape index: {}]  }
   0x1   :  { %10 = vsyncpa [#allocation3 + $0x1], 0  ;;  %s5450_s12 = smov 0   ;;  %s5452_s13 = smov 0  }
   0x2   :  { %s5454_s14 = smov 0   ;;  %s5456_s15 = smov 0  }
   0x3 LB: > { %s5471_s16 = sadd.s32 4294967295, %s5423_s15   ;;  %s4079_s17 = sadd.s32 4294967294, %s5423_s15   ;;  %s5423_s15 = sphi %s5456_s15, %s7986_s15   ;;  %s5419_s14 = sphi %s5454_s14, %s7985_s14   ;;  %s5415_s13 = sphi %s5452_s13, %s7984_s13   ;;  %s5411_s12 = sphi %s5450_s12, %s7983_s12  }
   0x4   : > { %s5475_s18 = sadd.s32 1, %s5423_s15   ;;  %s91_s19 = sadd.s32 1, %s5419_s14 }
   0x5   : > { %s88_s20 = ssub.s32 %s5423_s15, %s5475_s18  ;;  %p101_p0 = scmp.ne.s32.totalorder %s5419_s14, %s5415_s13 }
   0x6   : > { %p89_p1 = scmp.eq.s32.totalorder %s88_s20, 0  ;;  %p102_p2 = scmp.eq.s32.totalorder %s5471_s16, 1 }
   0x7   : > { %p107_p3 = scmp.ne.s32.totalorder %s5415_s13, %s5411_s12  ;;  %p108_p4 = scmp.eq.s32.totalorder %s4079_s17, 1 }
   0x8   : > { %s5486_s21 = scalar_select %p89_p1, %s5419_s14, %s91_s19  }
   0x9   : > { %p5488_p5 = por %p102_p2, %p101_p0  ;;  %p5492_p6 = por %p108_p4, %p107_p3 }
   0xa   : > { %p4082_p7 = scmp.ge.s32.totalorder %s5423_s15, 1  ;;  %p142_p8 = scmp.lt.s32.totalorder %s5423_s15, 3 }
   0xc   : > { %p143_p9 = pnand %p4082_p7, %p142_p8 }
   0xe   : > { %146 = sbr.rel (%p143_p9) target bundleno = 840 (0x348), region = 32 }
  0x15   : > { %v4175_v0 = vld [vmem:[%s7778_s1 + $0x2] sm:$0x3]  ;;  %vm374_vm0 = vcmask 1041408   ;;  %v298_v1 = vld [vmem:[%s7778_s1] sm:$0x3]  ;;  %v7781_v2 = vmov 0.0  }
  0x16   : > { %4667 = vmatprep.subr.bf16.mxu0 %v7781_v2  ;;  %v376_v3 = vsel %vm374_vm0, %v4175_v0, 0  ;;  %4705 = vmatprep.subr.bf16.mxu1 %v7781_v2  ;;  %v556_v4 = vsel %vm374_vm0, %v298_v1, 0  ;;  %s4083_s28 = sshll.u32 %s5471_s16, 2  ;;  %vm5426_vm1 = vmmov 0   ;;  %v4212_v5 = vld [vmem:[%s7778_s1 + $0x4] sm:$0x3] }
  0x17   : > { %4668 = vmatpush3.bf16.msra.mxu0 %v376_v3  ;;  %4706 = vmatpush3.bf16.msra.mxu1 %v556_v4  ;;  %p168_p10 = scmp.lt.s32.totalorder %s4083_s28, 7  ;;  %vm346_vm2 = vcmask 31744   ;;  %v4231_v6 = vld [vmem:[%s7778_s1 + $0x6] sm:$0x3]  ;;  %v939_v14 = vsel %vm374_vm0, %v4212_v5, 0  ;;  %s164_s27 = sand.u32 1, %s5415_s13  }
  0x18   : > { %4669 = vmatprep.mubr.msk.bf16.mxu0 %vm5426_vm1, %v7781_v2  ;;  %4707 = vmatprep.mubr.msk.bf16.mxu1 %vm5426_vm1, %v7781_v2  ;;  %vm663_vm3 = vsmask.f32 3328  ;;  %v1337_v16 = vsel %vm374_vm0, %v4231_v6, 0  ;;  %vm664_vm4 = vsmask.f32 7440  ;;  %s5277_s30 = smul.u32 1152, %s5471_s16 }
  0x19   : > { %4743 = vmatprep.subr.bf16.mxu0 %v7781_v2  ;;  %s7988_s28 = smov (!%p168_p10, %s4083_s28), 7  ;;  %4781 = vmatprep.subr.bf16.mxu1 %v7781_v2  ;;  %vm5543_vm5 = vmor %vm663_vm3, %vm664_vm4  ;;  %v4250_v53 = vld [vmem:[%s7778_s1 + $0x8] sm:$0x3]  ;;  %v4269_v54 = vld [vmem:[%s7778_s1 + $0xa] sm:$0x3]  ;;  %s7736_s16 = scalar_lea.sflag [#allocation3], %s164_s27 }
  0x1a   : > { %s5276_s29 = smul.u32 120, %s7988_s28  ;;  %s7729_s8 = scalar_lea.hbm %s7780_s3, %s5277_s30 }
  0x1b   : > { %s5275_s28 = smul.u32 72, %s164_s27  ;;  %s5427_s10 = smov [#allocation2]  }
  0x1c   : > { %s5521_s7 = scalar_lea.vmem %s7777_s0, %s5276_s29  ;;  %s5365_s11 = sshll.u32 %s5427_s10, 4  ;;  %s5366_s11 = int_to_ptr.vmem [resolvable:$false] %s5365_s11 }
  0x1d   : > { %v4085_v7 = vld [vmem:[%s5521_s7 + $0x78] sm:$0xf]  ;;  %v4086_v8 = vld [vmem:[%s5521_s7 + $0x7c] sm:$0xf]  ;;  %v175_v9 = vld [vmem:[%s5521_s7] sm:$0xf] }
  0x1e   : > { %v4176_v10 = vcombine.low %v4085_v7, %v4086_v8  ;;  %v1065_v11 = vshrl.u32 %v4085_v7, 16  ;;  %v1068_v12 = vshll.u32 %v4085_v7, 16  ;;  %v176_v13 = vld [vmem:[%s5521_s7 + $0x4] sm:$0xf]  ;;  %v1074_v19 = vshll.u32 %v4086_v8, 16  ;;  %s7685_s29 = scalar_lea.vmem [#allocation2], %s5275_s28 }
  0x1f   : > { %v4194_v15 = vcombine.low %v175_v9, %v176_v13  ;;  %v5535_v20 = vld [vmem:[%s5521_s7 + $0x84] sm:$0xf]  ;;  %v5538_v21 = vld [vmem:[%s5521_s7 + $0x88] sm:$0xf]  ;;  %v5550_v24 = vld [vmem:[%s5521_s7 + $0xc] sm:$0xf] }
  0x20   : > { %4670 = vmatmul.mubr.msk.bf16.vlgmr.msra.gmra.mrb[0].mxu0 %vm346_vm2, %v4176_v10  ;;  %v1067_v17 = vrot.slane %v1065_v11, 4  ;;  %v1070_v18 = vrot.slane %v1068_v12, 5  ;;  %v5553_v25 = vld [vmem:[%s5521_s7 + $0x10] sm:$0xf]  ;;  %v5558_v27 = vrot.slane %v1074_v19, 5  ;;  %v5562_v28 = vcombine.low %v5535_v20, %v5538_v21  ;;  %s4017_s4 = sshll.u32 %s7685_s29, 4  ;;  %s7731_s4 = int_to_ptr.vmem [resolvable:$true] %s4017_s4 }
  0x21   : > { %4708 = vmatmul.mubr.msk.bf16.vlgmr.msra.gmra.mrb[0].mxu1 %vm346_vm2, %v4194_v15  ;;  %4744 = vmatpush3.bf16.msra.mxu0 %v939_v14  ;;  %v5571_v30 = vcombine.low %v5550_v24, %v5553_v25  ;;  %v5580_v31 = vld [vmem:[%s5521_s7 + $0x90] sm:$0xf]  ;;  %v5583_v32 = vld [vmem:[%s5521_s7 + $0x94] sm:$0xf]  ;;  %v5588_v33 = vld [vmem:[%s5521_s7 + $0x18] sm:$0xf]  ;;  %p5368_p0 = scmp.lt.s32.totalorder %s7731_s4, %s5366_s11 }
  0x22   : > { %v1071_v22 = vor.u32 %v1070_v18, %v1067_v17  ;;  %4782 = vmatpush3.bf16.msra.mxu1 %v1337_v16  ;;  %4673 = vmatprep.mubr.msk.bf16.mxu0 %vm5426_vm1, %v7781_v2  ;;  %7855 = vst [vmem:[#allocation5_spill] sm:$0xff] %v5562_v28  ;;  %v5591_v34 = vld [vmem:[%s5521_s7 + $0x1c] sm:$0xf]  ;;  %v5595_v35 = vcombine.low %v5580_v31, %v5583_v32  ;;  %v1078_v37 = vshrl.u32 %v4086_v8, 16  ;;  %v5611_v39 = vld [vmem:[%s5521_s7 + $0xa0] sm:$0xf] }
  0x23   : > { %4711 = vmatprep.mubr.msk.bf16.mxu1 %vm5426_vm1, %v7781_v2  ;;  %4819 = vmatprep.subr.bf16.mxu0 %v7781_v2  ;;  %7856 = vst [vmem:[#allocation6_spill] sm:$0xff] %v5571_v30  ;;  %v5599_v36 = vcombine.low %v5588_v33, %v5591_v34  ;;  %v5608_v38 = vld [vmem:[%s5521_s7 + $0x9c] sm:$0xf]  ;;  %v667_v40 = vshrl.u32 %v175_v9, 16  ;;  %v670_v41 = vshll.u32 %v175_v9, 16  ;;  %v676_v44 = vshll.u32 %v176_v13, 16 }
  0x24   : > { %v5556_v26 = vrot.slane %v1071_v22, 4  ;;  %4857 = vmatprep.subr.bf16.mxu1 %v7781_v2  ;;  %7857 = vst [vmem:[#allocation7_spill] sm:$0xff] %v5595_v35  ;;  %v5616_v42 = vld [vmem:[%s5521_s7 + $0x24] sm:$0xf]  ;;  %v5619_v43 = vld [vmem:[%s5521_s7 + $0x28] sm:$0xf]  ;;  %v5623_v46 = vcombine.low %v5608_v38, %v5611_v39 }
  0x25   : > { %7858 = vst [vmem:[#allocation8_spill] sm:$0xff] %v5599_v36  ;;  %v680_v45 = vshrl.u32 %v176_v13, 16  ;;  %v5627_v47 = vcombine.low %v5616_v42, %v5619_v43  ;;  %v1080_v48 = vrot.slane %v1078_v37, 4  ;;  %v669_v49 = vrot.slane %v667_v40, 4  ;;  %v5645_v56 = vld [vmem:[%s5521_s7 + $0xa8] sm:$0xf] }
  0x26   : > { %7859 = vst [vmem:[#allocation9_spill] sm:$0xff] %v5623_v46  ;;  %v672_v50 = vrot.slane %v670_v41, 5  ;;  %v5629_v51 = vrot.slane %v676_v44, 5  ;;  %v1089_v55 = vshrl.u32 %v5535_v20, 16  ;;  %v5648_v57 = vld [vmem:[%s5521_s7 + $0xac] sm:$0xf] }
  0x27   : > { %7860 = vst [vmem:[#allocation10_spill] sm:$0xff] %v5627_v47  ;;  %v682_v52 = vrot.slane %v680_v45, 4  ;;  %v1081_v58 = vor.u32 %v1080_v48, %v5558_v27  ;;  %v1092_v60 = vshll.u32 %v5535_v20, 16  ;;  %v1098_v61 = vshll.u32 %v5538_v21, 16  ;;  %v5656_v62 = vld [vmem:[%s5521_s7 + $0x30] sm:$0xf] }
  0x28   : > { %4674 = vmatmul.mubr.msk.bf16.gmra.mrb[4].mxu0 %vm346_vm2, %v5562_v28  ;;  %v673_v59 = vor.u32 %v672_v50, %v669_v49  ;;  %v5659_v63 = vld [vmem:[%s5521_s7 + $0x34] sm:$0xf]  ;;  %v1102_v1 = vshrl.u32 %v5538_v21, 16  ;;  %v691_v3 = vshrl.u32 %v5550_v24, 16  ;;  %v5666_v4 = vcombine.low %v5645_v56, %v5648_v57  ;;  %v5718_v40 = vld [vmem:[%s5521_s7 + $0x3c] sm:$0xf] }
  0x29   : > { %4712 = vmatmul.mubr.msk.bf16.gmra.mrb[4].mxu1 %vm346_vm2, %v5571_v30  ;;  %4677 = vmatprep.mubr.msk.bf16.mxu0 %vm5426_vm1, %v7781_v2  ;;  %v683_v0 = vor.u32 %v682_v52, %v5629_v51  ;;  %v5668_v5 = vrot.slane %v1089_v55, 4  ;;  %v5672_v6 = vcombine.low %v5656_v62, %v5659_v63  ;;  %v5675_v7 = vsel %vm374_vm0, %v4250_v53, 0  ;;  %v4105_v30 = vld [vmem:[%s5521_s7 + $0xc8] sm:$0x1]  ;;  %s5361_s9 = scalar_lea.vmem %s7731_s4, 1152  ;;  %s5367_s17 = scalar_lea.vmem %s5366_s11, 2304 }
  0x2a   : > { %4715 = vmatprep.mubr.msk.bf16.mxu1 %vm5426_vm1, %v7781_v2  ;;  %7861 = vst [vmem:[#allocation11_spill] sm:$0xff] %v5666_v4  ;;  %v5678_v8 = vsel %vm374_vm0, %v4269_v54, 0  ;;  %v5680_v9 = vrot.slane %v1081_v58, 4  ;;  %v5682_v10 = vrot.slane %v673_v59, 4  ;;  %v5684_v11 = vrot.slane %v1092_v60, 5  ;;  %p5362_p11 = scmp.ne.s32.totalorder %s7731_s4, %s5361_s9  ;;  %p5369_p1 = scmp.lt.s32.totalorder %s5367_s17, %s5361_s9 }
  0x2b   : > { %7862 = vst [vmem:[#allocation12_spill] sm:$0xff] %v5672_v6  ;;  %v5686_v12 = vrot.slane %v1098_v61, 5  ;;  %v5688_v13 = vrot.slane %v683_v0, 4  ;;  %v5690_v14 = vrot.slane %v1102_v1, 4  ;;  %v694_v15 = vshll.u32 %v5550_v24, 16 }
  0x2c   : > { %v700_v16 = vshll.u32 %v5553_v25, 16  ;;  %v5694_v17 = vrot.slane %v691_v3, 4  ;;  %v704_v18 = vshrl.u32 %v5553_v25, 16  ;;  %v1113_v19 = vshrl.u32 %v5580_v31, 16  ;;  %v5708_v24 = vld [vmem:[%s5521_s7 + $0xb4] sm:$0xf]  ;;  %p5363_p12 = pnand %p5362_p11, %p5488_p5  ;;  %p5370_p2 = por %p5369_p1, %p5368_p0 }
  0x2d   : > { %v1116_v20 = vshll.u32 %v5580_v31, 16  ;;  %v1122_v21 = vshll.u32 %v5583_v32, 16  ;;  %v1126_v22 = vshrl.u32 %v5583_v32, 16  ;;  %v5711_v25 = vld [vmem:[%s5521_s7 + $0xb8] sm:$0xf]  ;;  %v715_v37 = vshrl.u32 %v5588_v33, 16 }
  0x2e   : > { %v718_v31 = vshll.u32 %v5588_v33, 16  ;;  %v5721_v32 = vld [vmem:[%s5521_s7 + $0x40] sm:$0xf]  ;;  %v724_v41 = vshll.u32 %v5591_v34, 16  ;;  %v728_v44 = vshrl.u32 %v5591_v34, 16  ;;  %v1137_v45 = vshrl.u32 %v5608_v38, 16  ;;  %p5364_p13 = pneg %p5363_p12 }
  0x2f   : > { %v1140_v48 = vshll.u32 %v5608_v38, 16  ;;  %v5727_v49 = vrot.slane %v694_v15, 5  ;;  %v5729_v50 = vrot.slane %v700_v16, 5  ;;  %v1146_v33 = vshll.u32 %v5611_v39, 16  ;;  %v4087_v38 = vld [vmem:[%s5521_s7 + $0x80] sm:$0x1] }
  0x30   : > { %4678 = vmatmul.mubr.msk.bf16.gmra.mrb[8].mxu0 %vm346_vm2, %v5595_v35  ;;  %v5734_v52 = vcombine.low %v5708_v24, %v5711_v25  ;;  %v5736_v53 = vrot.slane %v704_v18, 4  ;;  %v5738_v54 = vrot.slane %v1113_v19, 4  ;;  %v5740_v55 = vrot.slane %v1116_v20, 5  ;;  %p5371_p3 = pnand %p5370_p2, %p5364_p13 }
  0x31   : > { %4716 = vmatmul.mubr.msk.bf16.gmra.mrb[8].mxu1 %vm346_vm2, %v5599_v36  ;;  %4681 = vmatprep.mubr.msk.bf16.mxu0 %vm5426_vm1, %v7781_v2  ;;  %v5744_v34 = vcombine.low %v5718_v40, %v5721_v32  ;;  %v5747_v58 = vrot.slane %v1122_v21, 5  ;;  %v5749_v59 = vrot.slane %v1126_v22, 4  ;;  %v5751_v60 = vrot.slane %v715_v37, 4  ;;  %v4090_v21 = vld [vmem:[%s5521_s7 + $0x8c] sm:$0x1] }
  0x32   : > { %4719 = vmatprep.mubr.msk.bf16.mxu1 %vm5426_vm1, %v7781_v2  ;;  %7863 = vst [vmem:[#allocation13_spill] sm:$0xff] %v5734_v52  ;;  %v5753_v61 = vrot.slane %v718_v31, 5  ;;  %v5755_v0 = vrot.slane %v724_v41, 5  ;;  %v5757_v1 = vrot.slane %v728_v44, 4  ;;  %v5759_v3 = vrot.slane %v1137_v45, 4 }
  0x33   : > { %7864 = vst [vmem:[#allocation14_spill] sm:$0xff] %v5744_v34  ;;  %v5761_v15 = vrot.slane %v1140_v48, 5  ;;  %v5763_v16 = vrot.slane %v1146_v33, 5  ;;  %v1150_v18 = vshrl.u32 %v5611_v39, 16  ;;  %v1084_v20 = vshll.u32 %v4087_v38, 16 }
  0x34   : > { %v5777_v31 = vld [vmem:[%s5521_s7 + $0xc0] sm:$0xf]  ;;  %v5780_v39 = vld [vmem:[%s5521_s7 + $0xc4] sm:$0xf]  ;;  %v1161_v41 = vshrl.u32 %v5645_v56, 16  ;;  %v1095_v33 = vor.u32 %v5684_v11, %v5668_v5  ;;  %v1164_v38 = vshll.u32 %v5645_v56, 16  ;;  %v1105_v22 = vor.u32 %v5690_v14, %v5686_v12 }
  0x35   : > { %v5786_v44 = vld [vmem:[%s5521_s7 + $0x48] sm:$0xf]  ;;  %v5789_v45 = vld [vmem:[%s5521_s7 + $0x4c] sm:$0xf]  ;;  %v1086_v48 = vrot.slane %v1084_v20, 5  ;;  %v1170_v37 = vshll.u32 %v5648_v57, 16 }
  0x36   : > { %v1108_v19 = vshll.u32 %v4090_v21, 16  ;;  %v1174_v29 = vshrl.u32 %v5648_v57, 16  ;;  %v1152_v5 = vrot.slane %v1150_v18, 4  ;;  %v5807_v56 = vcombine.low %v5786_v44, %v5789_v45  ;;  %v4093_v21 = vld [vmem:[%s5521_s7 + $0x98] sm:$0x1] }
  0x37   : > { %v1087_v20 = vsel %vm5543_vm5, %v5680_v9, %v1086_v48  ;;  %v7867_v57 = vsel %vm5543_vm5, %v5556_v26, %v5558_v27  ;;  %v1106_v14 = vrot.slane %v1105_v22, 4  ;;  %v1185_v9 = vshrl.u32 %v5708_v24, 16 }
  0x38   : > { %4682 = vmatmul.mubr.msk.bf16.gmra.mrb[12].mxu0 %vm346_vm2, %v5623_v46  ;;  %7866 = vst [vmem:[#allocation16_spill] sm:$0xff] %v5807_v56  ;;  %v5814_v11 = vcombine.low %v7867_v57, %v1087_v20  ;;  %v1110_v48 = vrot.slane %v1108_v19, 5  ;;  %v1188_v26 = vshll.u32 %v5708_v24, 16  ;;  %v1119_v27 = vor.u32 %v5740_v55, %v5738_v54  ;;  %v5851_v55 = vld [vmem:[%s5521_s7 + $0xd0] sm:$0xf] }
  0x39   : > { %4720 = vmatmul.mubr.msk.bf16.gmra.mrb[12].mxu1 %vm346_vm2, %v5627_v47  ;;  %4685 = vmatprep.mubr.msk.bf16.mxu0 %vm5426_vm1, %v7781_v2  ;;  %v5830_v22 = vrot.slane %v1174_v29, 4  ;;  %v1132_v19 = vshll.u32 %v4093_v21, 16  ;;  %v1194_v29 = vshll.u32 %v5711_v25, 16  ;;  %v7868_v54 = vmov 0.0   ;;  %v177_v46 = vld [vmem:[%s5521_s7 + $0x8] sm:$0x1] }
  0x3a   : > { %4723 = vmatprep.mubr.msk.bf16.mxu1 %vm5426_vm1, %v7781_v2  ;;  %v5858_v20 = vrot.slane %v1185_v9, 4  ;;  %v1198_v57 = vshrl.u32 %v5711_v25, 16  ;;  %v5866_v24 = vrot.slane %v1188_v26, 5  ;;  %v1218_v25 = vshll.u32 %v5780_v39, 16 }
  0x3c   : > { %v5903_v35 = vrot.slane %v1218_v25, 5  ;;  %v5924_v25 = vld [vmem:[%s5521_s7 + $0x64] sm:$0xf] }
  0x3d   : > { %7873 = vst [vmem:[#allocation21_spill] sm:$0xff] %v5924_v25 }
  0x40   : > { %4686 = vmatmul.mubr.msk.bf16.gmra.mrb[16].mxu0 %vm346_vm2, %v5666_v4  ;;  %v5825_v4 = vrot.slane %v1170_v37, 5  ;;  %v5854_v37 = vld [vmem:[%s5521_s7 + $0x54] sm:$0xf] }
  0x41   : > { %4724 = vmatmul.mubr.msk.bf16.gmra.mrb[16].mxu1 %vm346_vm2, %v5672_v6  ;;  %4689 = vmatprep.mubr.msk.bf16.mxu0 %vm5426_vm1, %v7781_v2  ;;  %v1200_v6 = vrot.slane %v1198_v57, 4 }
  0x42   : > { %4727 = vmatprep.mubr.msk.bf16.mxu1 %vm5426_vm1, %v7781_v2 }
  0x48   : > { %4690 = vmatmul.mubr.msk.bf16.gmra.mrb[20].mxu0 %vm346_vm2, %v5734_v52  ;;  %v1096_v52 = vrot.slane %v1095_v33, 4  ;;  %v5823_v33 = vrot.slane %v1164_v38, 5  ;;  %v1120_v38 = vrot.slane %v1119_v27, 4  ;;  %v4096_v27 = vld [vmem:[%s5521_s7 + $0xa4] sm:$0x1] }
  0x49   : > { %4728 = vmatmul.mubr.msk.bf16.gmra.mrb[20].mxu1 %vm346_vm2, %v5744_v34  ;;  %4693 = vmatprep.mubr.msk.bf16.mxu0 %vm5426_vm1, %v7781_v2  ;;  %v5817_v34 = vrot.slane %v1161_v41, 4  ;;  %v5835_v41 = vld [vmem:[%s5521_s7 + $0xcc] sm:$0xf] }
  0x4a   : > { %4731 = vmatprep.mubr.msk.bf16.mxu1 %vm5426_vm1, %v7781_v2  ;;  %v5800_v2 = vcombine.low %v5777_v31, %v5780_v39  ;;  %v1101_v18 = vsel %vm5543_vm5, %v1096_v52, %v5686_v12  ;;  %v1111_v12 = vsel %vm5543_vm5, %v1106_v14, %v1110_v48  ;;  %v1129_v52 = vor.u32 %v5749_v59, %v5747_v58  ;;  %v5864_v14 = vld [vmem:[%s5521_s7 + $0x58] sm:$0xf] }
  0x4b   : > { %v5856_v59 = vcombine.low %v1101_v18, %v1111_v12  ;;  %v1134_v48 = vrot.slane %v1132_v19, 5  ;;  %v1212_v18 = vshll.u32 %v5777_v31, 16  ;;  %v1125_v9 = vsel %vm5543_vm5, %v1120_v38, %v5747_v58 }
  0x4c   : > { %7865 = vst [vmem:[#allocation15_spill] sm:$0xff] %v5800_v2  ;;  %v1130_v21 = vrot.slane %v1129_v52, 4  ;;  %v5877_v12 = vcombine.low %v5835_v41, %v5851_v55  ;;  %v1143_v52 = vor.u32 %v5761_v15, %v5759_v3  ;;  %v5886_v58 = vcombine.low %v5854_v37, %v5864_v14 }
  0x4d   : > { %7869 = vst [vmem:[#allocation17_spill] sm:$0xff] %v5856_v59  ;;  %v1153_v38 = vor.u32 %v1152_v5, %v5763_v16  ;;  %v5896_v3 = vrot.slane %v1212_v18, 5  ;;  %v1233_v15 = vshrl.u32 %v5835_v41, 16  ;;  %v1236_v5 = vshll.u32 %v5835_v41, 16 }
  0x4e   : > { %7870 = vst [vmem:[#allocation18_spill] sm:$0xff] %v5877_v12  ;;  %v1135_v26 = vsel %vm5543_vm5, %v1130_v21, %v1134_v48  ;;  %7871 = vst [vmem:[#allocation19_spill] sm:$0xff] %v5886_v58  ;;  %v1144_v21 = vrot.slane %v1143_v52, 4  ;;  %v1156_v48 = vshll.u32 %v4096_v27, 16  ;;  %v5921_v27 = vld [vmem:[%s5521_s7 + $0x60] sm:$0xf]  ;;  %v1167_v52 = vor.u32 %v5823_v33, %v5817_v34 }
  0x4f   : > { %v5888_v19 = vcombine.low %v1125_v9, %v1135_v26  ;;  %v1154_v9 = vrot.slane %v1153_v38, 4  ;;  %v4099_v26 = vld [vmem:[%s5521_s7 + $0xb0] sm:$0x1]  ;;  %v686_v41 = vshll.u32 %v177_v46, 16  ;;  %v1246_v38 = vshrl.u32 %v5851_v55, 16 }
  0x50   : > { %4694 = vmatmul.mubr.msk.bf16.gmra.mrb[24].mxu0 %vm346_vm2, %v5800_v2  ;;  %v1209_v2 = vshrl.u32 %v5777_v31, 16  ;;  %v1222_v31 = vshrl.u32 %v5780_v39, 16  ;;  %v5900_v39 = vld [vmem:[%s5521_s7 + $0xd8] sm:$0xf]  ;;  %v1158_v57 = vrot.slane %v1156_v48, 5  ;;  %v1180_v48 = vshll.u32 %v4099_v26, 16 }
  0x51   : > { %4732 = vmatmul.mubr.msk.bf16.gmra.mrb[24].mxu1 %vm346_vm2, %v5807_v56  ;;  %4697 = vmatprep.mubr.msk.bf16.mxu0 %vm5426_vm1, %v7868_v54  ;;  %7872 = vst [vmem:[#allocation20_spill] sm:$0xff] %v5888_v19  ;;  %v5891_v56 = vrot.slane %v1194_v29, 5  ;;  %v5909_v29 = vld [vmem:[%s5521_s7 + $0xdc] sm:$0xf]  ;;  %v1168_v34 = vrot.slane %v1167_v52, 4  ;;  %v1248_v52 = vrot.slane %v1246_v38, 4 }
  0x52   : > { %4735 = vmatprep.mubr.msk.bf16.mxu1 %vm5426_vm1, %v7868_v54  ;;  %v5894_v47 = vrot.slane %v1209_v2, 4  ;;  %v1149_v2 = vsel %vm5543_vm5, %v1144_v21, %v5763_v16  ;;  %v5914_v18 = vrot.slane %v1222_v31, 4  ;;  %v1177_v16 = vor.u32 %v5830_v22, %v5825_v4  ;;  %v4102_v22 = vld [vmem:[%s5521_s7 + $0xbc] sm:$0x1]  ;;  %v180_v26 = vld [vmem:[%s5521_s7 + $0x14] sm:$0x1] }
  0x53   : > { %v1242_v31 = vshll.u32 %v5851_v55, 16  ;;  %v1159_v21 = vsel %vm5543_vm5, %v1154_v9, %v1158_v57  ;;  %v5943_v36 = vcombine.low %v5900_v39, %v5909_v29  ;;  %v5947_v55 = vcombine.low %v5921_v27, %v5924_v25 }
  0x54   : > { %v5938_v46 = vcombine.low %v1149_v2, %v1159_v21  ;;  %v1178_v33 = vrot.slane %v1177_v16, 4  ;;  %v1182_v28 = vrot.slane %v1180_v48, 5  ;;  %v688_v9 = vrot.slane %v686_v41, 5 }
  0x55   : > { %7875 = vst [vmem:[#allocation23_spill] sm:$0xff] %v5943_v36  ;;  %7876 = vst [vmem:[#allocation24_spill] sm:$0xff] %v5947_v55  ;;  %v1191_v2 = vor.u32 %v5866_v24, %v5858_v20  ;;  %v5956_v57 = vrot.slane %v1242_v31, 5  ;;  %v1204_v21 = vshll.u32 %v4102_v22, 16  ;;  %v697_v41 = vor.u32 %v5727_v49, %v5694_v17 }
  0x56   : > { %7874 = vst [vmem:[#allocation22_spill] sm:$0xff] %v5938_v46  ;;  %v1183_v16 = vsel %vm5543_vm5, %v1178_v33, %v1182_v28  ;;  %v707_v24 = vor.u32 %v5736_v53, %v5729_v50  ;;  %v710_v20 = vshll.u32 %v180_v26, 16  ;;  %v689_v28 = vsel %vm5543_vm5, %v5688_v13, %v688_v9  ;;  %v4108_v26 = vld [vmem:[%s5521_s7 + $0xd4] sm:$0x1] }
  0x57   : > { %v1192_v25 = vrot.slane %v1191_v2, 4  ;;  %v1206_v31 = vrot.slane %v1204_v21, 5  ;;  %v1215_v49 = vor.u32 %v5896_v3, %v5894_v47  ;;  %v1228_v53 = vshll.u32 %v4105_v30, 16 }
  0x58   : > { %4698 = vmatmul.mubr.msk.bf16.gmra.mrb[28].mxu0 %vm346_vm2, %v5877_v12  ;;  %v5936_v12 = vrot.slane %v1233_v15, 4  ;;  %v1173_v15 = vsel %vm5543_vm5, %v1168_v34, %v5825_v4  ;;  %v1260_v38 = vshll.u32 %v5900_v39, 16  ;;  %v1266_v34 = vshll.u32 %v5909_v29, 16 }
  0x59   : > { %4736 = vmatmul.mubr.msk.bf16.gmra.mrb[28].mxu1 %vm346_vm2, %v5886_v58  ;;  %4701 = vmatprep.mubr.msk.bf16.mxu0 %vm5426_vm1, %v7868_v54  ;;  %v1238_v58 = vrot.slane %v1236_v5, 5  ;;  %v1201_v5 = vor.u32 %v1200_v6, %v5891_v56  ;;  %v5963_v48 = vcombine.low %v1173_v15, %v1183_v16  ;;  %v1257_v6 = vshrl.u32 %v5900_v39, 16 }
  0x5a   : > { %4739 = vmatprep.mubr.msk.bf16.mxu1 %vm5426_vm1, %v7868_v54  ;;  %v1197_v17 = vsel %vm5543_vm5, %v1192_v25, %v5891_v56  ;;  %v1270_v33 = vshrl.u32 %v5909_v29, 16  ;;  %v698_v22 = vrot.slane %v697_v41, 4  ;;  %v1216_v25 = vrot.slane %v1215_v49, 4  ;;  %v4111_v49 = vld [vmem:[%s5521_s7 + $0xe0] sm:$0x1] }
  0x5b   : > { %7877 = vst [vmem:[#allocation25_spill] sm:$0xff] %v5963_v48  ;;  %v1202_v4 = vrot.slane %v1201_v5, 4  ;;  %v1225_v30 = vor.u32 %v5914_v18, %v5903_v35  ;;  %v7879_v47 = vsel %vm5543_vm5, %v5682_v10, %v5629_v51  ;;  %v708_v39 = vrot.slane %v707_v24, 4 }
  0x5c   : > { %v4213_v3 = vcombine.low %v7879_v47, %v689_v28  ;;  %v712_v29 = vrot.slane %v710_v20, 5  ;;  %v1230_v9 = vrot.slane %v1228_v53, 5  ;;  %v752_v15 = vshrl.u32 %v5619_v43, 16 }
  0x5d   : > { %v1207_v13 = vsel %vm5543_vm5, %v1202_v4, %v1206_v31  ;;  %v1259_v2 = vrot.slane %v1257_v6, 4  ;;  %v1221_v5 = vsel %vm5543_vm5, %v1216_v25, %v5903_v35  ;;  %v1226_v16 = vrot.slane %v1225_v30, 4  ;;  %v183_v4 = vld [vmem:[%s5521_s7 + $0x20] sm:$0x1] }
  0x5e   : > { %v5989_v56 = vcombine.low %v1197_v17, %v1207_v13  ;;  %v1262_v21 = vrot.slane %v1260_v38, 5  ;;  %v1268_v18 = vrot.slane %v1266_v34, 5  ;;  %v1272_v41 = vrot.slane %v1270_v33, 4 }
  0x5f   : > { %v1239_v31 = vor.u32 %v1238_v58, %v5936_v12  ;;  %v703_v51 = vsel %vm5543_vm5, %v698_v22, %v5729_v50  ;;  %v1231_v10 = vsel %vm5543_vm5, %v1226_v16, %v1230_v9  ;;  %v1249_v6 = vor.u32 %v1248_v52, %v5956_v57 }
  0x60   : > { %4702 = vmatmul.mubr.msk.bf16.gmra.mrb[32].mxu0 %vm346_vm2, %v5943_v36  ;;  %7878 = vst [vmem:[#allocation26_spill] sm:$0xff] %v5989_v56  ;;  %v1252_v24 = vshll.u32 %v4108_v26, 16  ;;  %v713_v35 = vsel %vm5543_vm5, %v708_v39, %v712_v29  ;;  %v721_v20 = vor.u32 %v5753_v61, %v5751_v60  ;;  %v6016_v12 = vcombine.low %v1221_v5, %v1231_v10  ;;  %v186_v39 = vld [vmem:[%s5521_s7 + $0x2c] sm:$0x1] }
  0x61   : > { %4740 = vmatmul.mubr.msk.bf16.gmra.mrb[32].mxu1 %vm346_vm2, %v5947_v55  ;;  %4745 = vmatprep.mubr.msk.bf16.mxu0 %vm5426_vm1, %v7868_v54  ;;  %v1240_v58 = vrot.slane %v1239_v31, 4  ;;  %v731_v50 = vor.u32 %v5757_v1, %v5755_v0  ;;  %v734_v52 = vshll.u32 %v183_v4, 16  ;;  %v1250_v28 = vrot.slane %v1249_v6, 4 }
  0x62   : > { %4783 = vmatprep.mubr.msk.bf16.mxu1 %vm5426_vm1, %v7868_v54  ;;  %7880 = vst [vmem:[#allocation27_spill] sm:$0xff] %v6016_v12  ;;  %v1254_v17 = vrot.slane %v1252_v24, 5  ;;  %v7881_v53 = vshrl.u32 %v5616_v42, 16  ;;  %v7882_v60 = vshll.u32 %v5616_v42, 16  ;;  %v7883_v34 = vshll.u32 %v5619_v43, 16 }
  0x63   : > { %v754_v1 = vrot.slane %v752_v15, 4  ;;  %v1263_v43 = vor.u32 %v1262_v21, %v1259_v2  ;;  %v722_v13 = vrot.slane %v721_v20, 4  ;;  %v1276_v25 = vshll.u32 %v4111_v49, 16 }
  0x64   : > { %v741_v38 = vrot.slane %v7881_v53, 4  ;;  %v744_v61 = vrot.slane %v7882_v60, 5  ;;  %v6030_v33 = vrot.slane %v7883_v34, 5  ;;  %v1255_v42 = vsel %vm5543_vm5, %v1250_v28, %v1254_v17 }
  0x65   : > { %v736_v30 = vrot.slane %v734_v52, 5  ;;  %v1264_v47 = vrot.slane %v1263_v43, 4  ;;  %v1278_v29 = vrot.slane %v1276_v25, 5  ;;  %v763_v9 = vshrl.u32 %v5656_v62, 16 }
  0x66   : > { %v766_v26 = vshll.u32 %v5656_v62, 16  ;;  %v772_v15 = vshll.u32 %v5659_v63, 16  ;;  %v776_v5 = vshrl.u32 %v5659_v63, 16  ;;  %v727_v16 = vsel %vm5543_vm5, %v722_v13, %v5755_v0 }
  0x67   : > { %v1269_v2 = vsel %vm5543_vm5, %v1264_v47, %v1268_v18  ;;  %v745_v21 = vor.u32 %v744_v61, %v741_v38  ;;  %v755_v63 = vor.u32 %v754_v1, %v6030_v33  ;;  %v765_v0 = vrot.slane %v763_v9, 4 }
  0x68   : > { %4746 = vmatmul.mubr.msk.bf16.vlgmr.msra.gmra.mrb[36].mxu0 %vm346_vm2, %v4213_v3  ;;  %v768_v31 = vrot.slane %v766_v26, 5  ;;  %v774_v6 = vrot.slane %v772_v15, 5  ;;  %v778_v24 = vrot.slane %v776_v5, 4  ;;  %v790_v52 = vshll.u32 %v5718_v40, 16 }
  0x69   : > { %4784 = vmatmul.mubr.msk.bf16.vlgmr.msra.gmra.mrb[36].mxu1 %vm346_vm2, %v5814_v11  ;;  %4820 = vmatpush3.bf16.msra.mxu0 %v5675_v7  ;;  %v1245_v7 = vsel %vm5543_vm5, %v1240_v58, %v5956_v57  ;;  %v1273_v11 = vor.u32 %v1272_v41, %v1268_v18  ;;  %v732_v57 = vrot.slane %v731_v50, 4  ;;  %v758_v18 = vshll.u32 %v186_v39, 16  ;;  %v189_v58 = vld [vmem:[%s5521_s7 + $0x38] sm:$0x1] }
  0x6a   : > { %4858 = vmatpush3.bf16.msra.mxu1 %v5678_v8  ;;  %4749 = vmatprep.mubr.msk.bf16.mxu0 %vm5426_vm1, %v7868_v54  ;;  %v6043_v8 = vcombine.low %v703_v51, %v713_v35  ;;  %v6045_v22 = vcombine.low %v1245_v7, %v1255_v42  ;;  %v746_v10 = vrot.slane %v745_v21, 4  ;;  %v756_v35 = vrot.slane %v755_v63, 4 }
  0x6b   : > { %4787 = vmatprep.mubr.msk.bf16.mxu1 %vm5426_vm1, %v7868_v54  ;;  %4895 = vmatprep.subr.bf16.mxu0 %v7868_v54  ;;  %v1274_v3 = vrot.slane %v1273_v11, 4  ;;  %v737_v62 = vsel %vm5543_vm5, %v732_v57, %v736_v30  ;;  %v760_v20 = vrot.slane %v758_v18, 5  ;;  %v787_v50 = vshrl.u32 %v5718_v40, 16  ;;  %v192_v11 = vld [vmem:[%s5521_s7 + $0x44] sm:$0x1] }
  0x6c   : > { %7884 = vst [vmem:[#allocation28_spill] sm:$0xff] %v6043_v8  ;;  %7885 = vst [vmem:[#allocation29_spill] sm:$0xff] %v6045_v22  ;;  %4933 = vmatprep.subr.bf16.mxu1 %v7868_v54  ;;  %v6073_v51 = vcombine.low %v727_v16, %v737_v62  ;;  %v796_v28 = vshll.u32 %v5721_v32, 16  ;;  %v800_v17 = vshrl.u32 %v5721_v32, 16  ;;  %v751_v49 = vsel %vm5543_vm5, %v746_v10, %v6030_v33 }
  0x6d   : > { %v1279_v41 = vsel %vm5543_vm5, %v1274_v3, %v1278_v29  ;;  %v761_v40 = vsel %vm5543_vm5, %v756_v35, %v760_v20  ;;  %v769_v53 = vor.u32 %v768_v31, %v765_v0  ;;  %v779_v38 = vor.u32 %v778_v24, %v774_v6 }
  0x6e   : > { %v6069_v4 = vcombine.low %v1269_v2, %v1279_v41  ;;  %7887 = vst [vmem:[#allocation31_spill] sm:$0xff] %v6073_v51  ;;  %v782_v32 = vshll.u32 %v189_v58, 16  ;;  %v789_v60 = vrot.slane %v787_v50, 4  ;;  %v792_v61 = vrot.slane %v790_v52, 5  ;;  %v195_v41 = vld [vmem:[%s5521_s7 + $0x50] sm:$0x1] }
  0x6f   : > { %v798_v34 = vrot.slane %v796_v28, 5  ;;  %v6093_v33 = vcombine.low %v751_v49, %v761_v40  ;;  %v802_v7 = vrot.slane %v800_v17, 4  ;;  %v770_v1 = vrot.slane %v769_v53, 4  ;;  %v198_v49 = vld [vmem:[%s5521_s7 + $0x5c] sm:$0x1] }
  0x70   : > { %4750 = vmatmul.mubr.msk.bf16.gmra.mrb[40].mxu0 %vm346_vm2, %v6043_v8  ;;  %7886 = vst [vmem:[#allocation30_spill] sm:$0xff] %v6069_v4  ;;  %v780_v42 = vrot.slane %v779_v38, 4  ;;  %v784_v43 = vrot.slane %v782_v32, 5  ;;  %v811_v13 = vshrl.u32 %v5786_v44, 16  ;;  %v814_v25 = vshll.u32 %v5786_v44, 16  ;;  %v7891_v38 = vld [vmem:[#allocation21_spill] sm:$0xff] }
  0x71   : > { %4788 = vmatmul.mubr.msk.bf16.gmra.mrb[40].mxu1 %vm346_vm2, %v5856_v59  ;;  %4753 = vmatprep.mubr.msk.bf16.mxu0 %vm5426_vm1, %v7868_v54  ;;  %7888 = vst [vmem:[#allocation32_spill] sm:$0xff] %v6093_v33  ;;  %v820_v57 = vshll.u32 %v5789_v45, 16  ;;  %v824_v30 = vshrl.u32 %v5789_v45, 16  ;;  %v793_v47 = vor.u32 %v792_v61, %v789_v60  ;;  %v775_v3 = vsel %vm5543_vm5, %v770_v1, %v774_v6 }
  0x72   : > { %4791 = vmatprep.mubr.msk.bf16.mxu1 %vm5426_vm1, %v7868_v54  ;;  %v785_v44 = vsel %vm5543_vm5, %v780_v42, %v784_v43  ;;  %v803_v39 = vor.u32 %v802_v7, %v798_v34  ;;  %v806_v29 = vshll.u32 %v192_v11, 16  ;;  %v813_v45 = vrot.slane %v811_v13, 4 }
  0x73   : > { %v816_v9 = vrot.slane %v814_v25, 5  ;;  %v6112_v26 = vcombine.low %v775_v3, %v785_v44  ;;  %v794_v15 = vrot.slane %v793_v47, 4  ;;  %v822_v2 = vrot.slane %v820_v57, 5  ;;  %v201_v3 = vld [vmem:[%s5521_s7 + $0x68] sm:$0x1] }
  0x74   : > { %v826_v5 = vrot.slane %v824_v30, 4  ;;  %v804_v16 = vrot.slane %v803_v39, 4  ;;  %v808_v21 = vrot.slane %v806_v29, 5  ;;  %v835_v62 = vshrl.u32 %v5854_v37, 16 }
  0x75   : > { %7889 = vst [vmem:[#allocation33_spill] sm:$0xff] %v6112_v26  ;;  %v838_v63 = vshll.u32 %v5854_v37, 16  ;;  %v844_v18 = vshll.u32 %v5864_v14, 16  ;;  %v848_v0 = vshrl.u32 %v5864_v14, 16  ;;  %v799_v31 = vsel %vm5543_vm5, %v794_v15, %v798_v34 }
  0x76   : > { %v809_v37 = vsel %vm5543_vm5, %v804_v16, %v808_v21  ;;  %v817_v10 = vor.u32 %v816_v9, %v813_v45  ;;  %v827_v6 = vor.u32 %v826_v5, %v822_v2  ;;  %v830_v24 = vshll.u32 %v195_v41, 16 }
  0x77   : > { %v837_v14 = vrot.slane %v835_v62, 4  ;;  %v840_v35 = vrot.slane %v838_v63, 5  ;;  %v846_v20 = vrot.slane %v844_v18, 5  ;;  %v6131_v58 = vcombine.low %v799_v31, %v809_v37  ;;  %v6188_v63 = vld [vmem:[%s5521_s7 + $0xf0] sm:$0xf] }
  0x78   : > { %4754 = vmatmul.mubr.msk.bf16.gmra.mrb[44].mxu0 %vm346_vm2, %v6073_v51  ;;  %v850_v50 = vrot.slane %v848_v0, 4  ;;  %v818_v52 = vrot.slane %v817_v10, 4  ;;  %v828_v28 = vrot.slane %v827_v6, 4  ;;  %v832_v17 = vrot.slane %v830_v24, 5  ;;  %v6191_v18 = vld [vmem:[%s5521_s7 + $0xf4] sm:$0xf] }
  0x79   : > { %4792 = vmatmul.mubr.msk.bf16.gmra.mrb[44].mxu1 %vm346_vm2, %v5888_v19  ;;  %4757 = vmatprep.mubr.msk.bf16.mxu0 %vm5426_vm1, %v7868_v54  ;;  %7890 = vst [vmem:[#allocation34_spill] sm:$0xff] %v6131_v58  ;;  %v859_v40 = vshrl.u32 %v5921_v27, 16  ;;  %v862_v53 = vshll.u32 %v5921_v27, 16  ;;  %v868_v32 = vshll.u32 %v7891_v38, 16  ;;  %v872_v60 = vshrl.u32 %v7891_v38, 16 }
  0x7a   : > { %4795 = vmatprep.mubr.msk.bf16.mxu1 %vm5426_vm1, %v7868_v54  ;;  %v841_v61 = vor.u32 %v840_v35, %v837_v14  ;;  %v823_v34 = vsel %vm5543_vm5, %v818_v52, %v822_v2  ;;  %v833_v27 = vsel %vm5543_vm5, %v828_v28, %v832_v17  ;;  %v851_v7 = vor.u32 %v850_v50, %v846_v20  ;;  %v6196_v0 = vld [vmem:[%s5521_s7 + $0x168] sm:$0xf]  ;;  %v6199_v31 = vld [vmem:[%s5521_s7 + $0x16c] sm:$0xf]  ;;  %v6219_v50 = vld [vmem:[%s5521_s7 + $0x100] sm:$0xf] }
  0x7b   : > { %v854_v1 = vshll.u32 %v198_v49, 16  ;;  %v861_v42 = vrot.slane %v859_v40, 4  ;;  %v864_v43 = vrot.slane %v862_v53, 5  ;;  %v6150_v11 = vcombine.low %v823_v34, %v833_v27  ;;  %v4288_v37 = vld [vmem:[%s7778_s1 + $0xc] sm:$0x3] }
  0x7c   : > { %v842_v13 = vrot.slane %v841_v61, 4  ;;  %v870_v25 = vrot.slane %v868_v32, 5  ;;  %v874_v57 = vrot.slane %v872_v60, 4  ;;  %v852_v30 = vrot.slane %v851_v7, 4  ;;  %v4307_v6 = vld [vmem:[%s7778_s1 + $0xe] sm:$0x3] }
  0x7d   : > { %7892 = vst [vmem:[#allocation21_spill] sm:$0xff] %v6150_v11  ;;  %v856_v47 = vrot.slane %v854_v1, 5  ;;  %v865_v29 = vor.u32 %v864_v43, %v861_v42  ;;  %v878_v9 = vshll.u32 %v201_v3, 16  ;;  %v4251_v10 = vcombine.low %v6188_v63, %v6191_v18  ;;  %v6224_v52 = vld [vmem:[%s5521_s7 + $0x174] sm:$0xf] }
  0x7e   : > { %v847_v44 = vsel %vm5543_vm5, %v842_v13, %v846_v20  ;;  %v875_v45 = vor.u32 %v874_v57, %v870_v25  ;;  %v4270_v24 = vcombine.low %v6196_v0, %v6199_v31  ;;  %v2135_v14 = vsel %vm374_vm0, %v4288_v37, 0  ;;  %v6216_v20 = vld [vmem:[%s5521_s7 + $0xfc] sm:$0xf]  ;;  %v6227_v28 = vld [vmem:[%s5521_s7 + $0x178] sm:$0xf] }
  0x7f   : > { %v857_v39 = vsel %vm5543_vm5, %v852_v30, %v856_v47  ;;  %v866_v2 = vrot.slane %v865_v29, 4  ;;  %v880_v16 = vrot.slane %v878_v9, 5  ;;  %v2533_v35 = vsel %vm374_vm0, %v4307_v6, 0  ;;  %v6248_v40 = vld [vmem:[%s5521_s7 + $0x108] sm:$0xf] }
  0x80   : > { %4758 = vmatmul.mubr.msk.bf16.gmra.mrb[48].mxu0 %vm346_vm2, %v6093_v33  ;;  %v6165_v15 = vcombine.low %v847_v44, %v857_v39  ;;  %v876_v5 = vrot.slane %v875_v45, 4  ;;  %v6234_v17 = vcombine.low %v6216_v20, %v6219_v50  ;;  %v6239_v49 = vcombine.low %v6224_v52, %v6227_v28  ;;  %v6251_v53 = vld [vmem:[%s5521_s7 + $0x10c] sm:$0xf]  ;;  %v6256_v38 = vld [vmem:[%s5521_s7 + $0x180] sm:$0xf] }
  0x81   : > { %4796 = vmatmul.mubr.msk.bf16.gmra.mrb[48].mxu1 %vm346_vm2, %v5938_v46  ;;  %4761 = vmatprep.mubr.msk.bf16.mxu0 %vm5426_vm1, %v7868_v54  ;;  %v871_v21 = vsel %vm5543_vm5, %v866_v2, %v870_v25  ;;  %v6259_v32 = vld [vmem:[%s5521_s7 + $0x184] sm:$0xf]  ;;  %v6263_v60 = vcombine.low %v6248_v40, %v6251_v53  ;;  %v6276_v34 = vld [vmem:[%s5521_s7 + $0x114] sm:$0xf]  ;;  %v6279_v27 = vld [vmem:[%s5521_s7 + $0x118] sm:$0xf] }
  0x82   : > { %4799 = vmatprep.mubr.msk.bf16.mxu1 %vm5426_vm1, %v7868_v54  ;;  %7893 = vst [vmem:[#allocation35_spill] sm:$0xff] %v6165_v15  ;;  %v881_v41 = vsel %vm5543_vm5, %v876_v5, %v880_v16  ;;  %7895 = vst [vmem:[#allocation37_spill] sm:$0xff] %v6234_v17  ;;  %v6267_v61 = vcombine.low %v6256_v38, %v6259_v32  ;;  %v6284_v7 = vld [vmem:[%s5521_s7 + $0x18c] sm:$0xf]  ;;  %v6287_v1 = vld [vmem:[%s5521_s7 + $0x190] sm:$0xf]  ;;  %v6291_v42 = vcombine.low %v6276_v34, %v6279_v27 }
  0x83   : > { %v6179_v62 = vcombine.low %v871_v21, %v881_v41  ;;  %7896 = vst [vmem:[#allocation38_spill] sm:$0xff] %v6239_v49  ;;  %7897 = vst [vmem:[#allocation39_spill] sm:$0xff] %v6263_v60  ;;  %v6295_v43 = vcombine.low %v6284_v7, %v6287_v1  ;;  %v6304_v13 = vld [vmem:[%s5521_s7 + $0x120] sm:$0xf]  ;;  %v6307_v25 = vld [vmem:[%s5521_s7 + $0x124] sm:$0xf] }
  0x84   : > { %7898 = vst [vmem:[#allocation40_spill] sm:$0xff] %v6267_v61  ;;  %7899 = vst [vmem:[#allocation41_spill] sm:$0xff] %v6291_v42  ;;  %v6312_v57 = vld [vmem:[%s5521_s7 + $0x198] sm:$0xf]  ;;  %v6315_v30 = vld [vmem:[%s5521_s7 + $0x19c] sm:$0xf]  ;;  %v6319_v47 = vcombine.low %v6304_v13, %v6307_v25 }
  0x85   : > { %7894 = vst [vmem:[#allocation36_spill] sm:$0xff] %v6179_v62  ;;  %7900 = vst [vmem:[#allocation42_spill] sm:$0xff] %v6295_v43  ;;  %v6323_v3 = vcombine.low %v6312_v57, %v6315_v30  ;;  %v6332_v44 = vld [vmem:[%s5521_s7 + $0x12c] sm:$0xf]  ;;  %v6335_v39 = vld [vmem:[%s5521_s7 + $0x130] sm:$0xf] }
  0x86   : > { %7901 = vst [vmem:[#allocation43_spill] sm:$0xff] %v6319_v47  ;;  %v6340_v29 = vld [vmem:[%s5521_s7 + $0x1a4] sm:$0xf]  ;;  %v6343_v45 = vld [vmem:[%s5521_s7 + $0x1a8] sm:$0xf]  ;;  %v6347_v9 = vcombine.low %v6332_v44, %v6335_v39  ;;  %v1863_v5 = vshrl.u32 %v6188_v63, 16 }
  0x87   : > { %7902 = vst [vmem:[#allocation44_spill] sm:$0xff] %v6323_v3  ;;  %v6351_v2 = vcombine.low %v6340_v29, %v6343_v45  ;;  %v6357_v16 = vld [vmem:[%s5521_s7 + $0x138] sm:$0xf]  ;;  %v1866_v21 = vshll.u32 %v6188_v63, 16  ;;  %v6365_v41 = vld [vmem:[%s5521_s7 + $0x13c] sm:$0xf] }
  0x88   : > { %4762 = vmatmul.mubr.msk.bf16.gmra.mrb[52].mxu0 %vm346_vm2, %v6112_v26  ;;  %7903 = vst [vmem:[#allocation45_spill] sm:$0xff] %v6347_v9  ;;  %v6368_v37 = vld [vmem:[%s5521_s7 + $0x1b0] sm:$0xf]  ;;  %v1876_v6 = vshrl.u32 %v6191_v18, 16  ;;  %v6377_v63 = vld [vmem:[%s5521_s7 + $0x1b4] sm:$0xf] }
  0x89   : > { %4800 = vmatmul.mubr.msk.bf16.gmra.mrb[52].mxu1 %vm346_vm2, %v5963_v48  ;;  %4765 = vmatprep.mubr.msk.bf16.mxu0 %vm5426_vm1, %v7868_v54  ;;  %7904 = vst [vmem:[#allocation46_spill] sm:$0xff] %v6351_v2  ;;  %7905 = vst [vmem:[#allocation47_spill] sm:$0xff] %v6377_v63  ;;  %v1948_v33 = vshrl.u32 %v6279_v27, 16  ;;  %v2333_v19 = vshrl.u32 %v6284_v7, 16  ;;  %v4147_v51 = vld [vmem:[%s5521_s7 + $0x170] sm:$0x1] }
  0x8a   : > { %4803 = vmatprep.mubr.msk.bf16.mxu1 %vm5426_vm1, %v7868_v54  ;;  %v2280_v59 = vshll.u32 %v4147_v51, 16 }
  0x8b   : > { %v6525_v8 = vrot.slane %v1948_v33, 4 }
  0x90   : > { %4766 = vmatmul.mubr.msk.bf16.gmra.mrb[56].mxu0 %vm346_vm2, %v6131_v58 }
  0x91   : > { %4804 = vmatmul.mubr.msk.bf16.gmra.mrb[56].mxu1 %vm346_vm2, %v5989_v56  ;;  %4769 = vmatprep.mubr.msk.bf16.mxu0 %vm5426_vm1, %v7868_v54 }
  0x92   : > { %4807 = vmatprep.mubr.msk.bf16.mxu1 %vm5426_vm1, %v7868_v54 }
  0x98   : > { %4770 = vmatmul.mubr.msk.bf16.gmra.mrb[60].mxu0 %vm346_vm2, %v6150_v11 }
  0x99   : > { %4808 = vmatmul.mubr.msk.bf16.gmra.mrb[60].mxu1 %vm346_vm2, %v6016_v12  ;;  %4773 = vmatprep.mubr.msk.bf16.mxu0 %vm5426_vm1, %v7868_v54  ;;  %v2322_v12 = vshrl.u32 %v6259_v32, 16 }
  0x9a   : > { %4811 = vmatprep.mubr.msk.bf16.mxu1 %vm5426_vm1, %v7868_v54 }
  0x9b   : > { %v6483_v46 = vrot.slane %v2322_v12, 4 }
  0xa0   : > { %4774 = vmatmul.mubr.msk.bf16.gmra.mrb[64].mxu0 %vm346_vm2, %v6165_v15  ;;  %v2318_v15 = vshll.u32 %v6259_v32, 16 }
  0xa1   : > { %4812 = vmatmul.mubr.msk.bf16.gmra.mrb[64].mxu1 %vm346_vm2, %v6045_v22  ;;  %4777 = vmatprep.mubr.msk.bf16.mxu0 %vm5426_vm1, %v7868_v54 }
  0xa2   : > { %4815 = vmatprep.mubr.msk.bf16.mxu1 %vm5426_vm1, %v7868_v54 }
  0xa8   : > { %4778 = vmatmul.mubr.msk.bf16.gmra.mrb[68].mxu0 %vm346_vm2, %v6179_v62  ;;  %v6413_v62 = vld [vmem:[%s5521_s7 + $0x144] sm:$0xf] }
  0xa9   : > { %4816 = vmatmul.mubr.msk.bf16.gmra.mrb[68].mxu1 %vm346_vm2, %v6069_v4  ;;  %4821 = vmatprep.mubr.msk.bf16.mxu0 %vm5426_vm1, %v7868_v54  ;;  %v2294_v4 = vshll.u32 %v6227_v28, 16  ;;  %7908 = vst [vmem:[#allocation50_spill] sm:$0xff] %v6413_v62 }
  0xaa   : > { %4859 = vmatprep.mubr.msk.bf16.mxu1 %vm5426_vm1, %v7868_v54 }
  0xb0   : > { %4822 = vmatmul.mubr.msk.bf16.vlgmr.msra.gmra.mrb[72].mxu0 %vm346_vm2, %v4251_v10  ;;  %v1872_v10 = vshll.u32 %v6191_v18, 16  ;;  %v1890_v18 = vshll.u32 %v6216_v20, 16 }
  0xb1   : > { %4860 = vmatmul.mubr.msk.bf16.vlgmr.msra.gmra.mrb[72].mxu1 %vm346_vm2, %v4270_v24  ;;  %4896 = vmatpush3.bf16.msra.mxu0 %v2135_v14  ;;  %v2261_v24 = vshrl.u32 %v6196_v0, 16  ;;  %v2264_v14 = vshll.u32 %v6196_v0, 16  ;;  %v6388_v0 = vcombine.low %v6357_v16, %v6365_v41 }
  0xb2   : > { %4934 = vmatpush3.bf16.msra.mxu1 %v2533_v35  ;;  %4825 = vmatprep.mubr.msk.bf16.mxu0 %vm5426_vm1, %v7868_v54  ;;  %v6379_v35 = vrot.slane %v1863_v5, 4  ;;  %v1900_v5 = vshrl.u32 %v6219_v50, 16 }
  0xb3   : > { %4863 = vmatprep.mubr.msk.bf16.mxu1 %vm5426_vm1, %v7868_v54  ;;  %4971 = vmatprep.subr.bf16.mxu0 %v7868_v54  ;;  %7906 = vst [vmem:[#allocation48_spill] sm:$0xff] %v6388_v0 }
  0xb4   : > { %5009 = vmatprep.subr.bf16.mxu1 %v7868_v54 }
  0xb8   : > { %4826 = vmatmul.mubr.msk.bf16.gmra.mrb[76].mxu0 %vm346_vm2, %v6234_v17 }
  0xb9   : > { %4864 = vmatmul.mubr.msk.bf16.gmra.mrb[76].mxu1 %vm346_vm2, %v6239_v49  ;;  %4829 = vmatprep.mubr.msk.bf16.mxu0 %vm5426_vm1, %v7868_v54  ;;  %v6404_v49 = vrot.slane %v2264_v14, 5  ;;  %v1911_v14 = vshrl.u32 %v6248_v40, 16 }
  0xba   : > { %4867 = vmatprep.mubr.msk.bf16.mxu1 %vm5426_vm1, %v7868_v54 }
  0xc0   : > { %4830 = vmatmul.mubr.msk.bf16.gmra.mrb[80].mxu0 %vm346_vm2, %v6263_v60  ;;  %v6402_v60 = vrot.slane %v2261_v24, 4  ;;  %v2298_v24 = vshrl.u32 %v6227_v28, 16  ;;  %v6438_v28 = vld [vmem:[%s5521_s7 + $0x1bc] sm:$0xf] }
  0xc1   : > { %4868 = vmatmul.mubr.msk.bf16.gmra.mrb[80].mxu1 %vm346_vm2, %v6267_v61  ;;  %4833 = vmatprep.mubr.msk.bf16.mxu0 %vm5426_vm1, %v7868_v54  ;;  %v6398_v61 = vrot.slane %v1872_v10, 5  ;;  %v6417_v10 = vrot.slane %v1890_v18, 5  ;;  %7910 = vst [vmem:[#allocation52_spill] sm:$0xff] %v6438_v28  ;;  %v1924_v18 = vshrl.u32 %v6251_v53, 16 }
  0xc2   : > { %4871 = vmatprep.mubr.msk.bf16.mxu1 %vm5426_vm1, %v7868_v54  ;;  %v6455_v11 = vrot.slane %v2298_v24, 4 }
  0xc3   : > { %v6474_v48 = vrot.slane %v1924_v18, 4 }
  0xc8   : > { %4834 = vmatmul.mubr.msk.bf16.gmra.mrb[84].mxu0 %vm346_vm2, %v6291_v42  ;;  %v2285_v42 = vshrl.u32 %v6224_v52, 16 }
  0xc9   : > { %4872 = vmatmul.mubr.msk.bf16.gmra.mrb[84].mxu1 %vm346_vm2, %v6295_v43  ;;  %4837 = vmatprep.mubr.msk.bf16.mxu0 %vm5426_vm1, %v7868_v54  ;;  %v6390_v43 = vrot.slane %v1866_v21, 5 }
  0xca   : > { %4875 = vmatprep.mubr.msk.bf16.mxu1 %vm5426_vm1, %v7868_v54 }
  0xcb   : > { %v1869_v12 = vor.u32 %v6390_v43, %v6379_v35  ;;  %v2342_v43 = vshll.u32 %v6287_v1, 16  ;;  %v2346_v35 = vshrl.u32 %v6287_v1, 16  ;;  %v1968_v1 = vshll.u32 %v6307_v25, 16 }
  0xd0   : > { %4838 = vmatmul.mubr.msk.bf16.gmra.mrb[88].mxu0 %vm346_vm2, %v6319_v47  ;;  %v1896_v47 = vshll.u32 %v6219_v50, 16  ;;  %v2288_v50 = vshll.u32 %v6224_v52, 16  ;;  %v6429_v52 = vrot.slane %v2285_v42, 4  ;;  %v2312_v42 = vshll.u32 %v6256_v38, 16 }
  0xd1   : > { %4876 = vmatmul.mubr.msk.bf16.gmra.mrb[88].mxu1 %vm346_vm2, %v6323_v3  ;;  %4841 = vmatprep.mubr.msk.bf16.mxu0 %vm5426_vm1, %v7868_v54  ;;  %v1887_v3 = vshrl.u32 %v6216_v20, 16  ;;  %v6400_v20 = vrot.slane %v1876_v6, 4 }
  0xd2   : > { %4879 = vmatprep.mubr.msk.bf16.mxu1 %vm5426_vm1, %v7868_v54  ;;  %v6419_v6 = vrot.slane %v1896_v47, 5  ;;  %v1920_v47 = vshll.u32 %v6251_v53, 16  ;;  %v1935_v53 = vshrl.u32 %v6276_v34, 16  ;;  %v6478_v26 = vrot.slane %v2312_v42, 5  ;;  %v6496_v42 = vld [vmem:[%s5521_s7 + $0x150] sm:$0xf] }
  0xd3   : > { %v6415_v22 = vrot.slane %v1887_v3, 4  ;;  %v1914_v3 = vshll.u32 %v6248_v40, 16  ;;  %v6447_v40 = vld [vmem:[%s5521_s7 + $0x1c0] sm:$0xf]  ;;  %7914 = vst [vmem:[#allocation56_spill] sm:$0xff] %v6496_v42 }
  0xd4   : > { %7911 = vst [vmem:[#allocation53_spill] sm:$0xff] %v6447_v40  ;;  %v6470_v32 = vcombine.low %v6438_v28, %v6447_v40  ;;  %v6472_v24 = vrot.slane %v1920_v47, 5  ;;  %v6488_v47 = vrot.slane %v1935_v53, 4  ;;  %v6510_v53 = vld [vmem:[%s5521_s7 + $0x1c8] sm:$0xf]  ;;  %v6542_v40 = vrot.slane %v2342_v43, 5 }
  0xd5   : > { %v6465_v58 = vrot.slane %v1914_v3, 5  ;;  %v6481_v3 = vrot.slane %v2318_v15, 5  ;;  %7916 = vst [vmem:[#allocation58_spill] sm:$0xff] %v6510_v53  ;;  %v2282_v28 = vrot.slane %v2280_v59, 5 }
  0xd6   : > { %7913 = vst [vmem:[#allocation55_spill] sm:$0xff] %v6470_v32 }
  0xd8   : > { %4842 = vmatmul.mubr.msk.bf16.gmra.mrb[92].mxu0 %vm346_vm2, %v6347_v9  ;;  %v2274_v9 = vshrl.u32 %v6199_v31, 16 }
  0xd9   : > { %4880 = vmatmul.mubr.msk.bf16.gmra.mrb[92].mxu1 %vm346_vm2, %v6351_v2  ;;  %4845 = vmatprep.mubr.msk.bf16.mxu0 %vm5426_vm1, %v7868_v54  ;;  %v2270_v2 = vshll.u32 %v6199_v31, 16  ;;  %v6396_v31 = vcombine.low %v6368_v37, %v6377_v63 }
  0xda   : > { %4883 = vmatprep.mubr.msk.bf16.mxu1 %vm5426_vm1, %v7868_v54  ;;  %v6408_v21 = vrot.slane %v2274_v9, 4  ;;  %v6425_v9 = vld [vmem:[%s5521_s7 + $0x148] sm:$0xf] }
  0xdb   : > { %7907 = vst [vmem:[#allocation49_spill] sm:$0xff] %v6396_v31  ;;  %v6406_v17 = vrot.slane %v2270_v2, 5  ;;  %7909 = vst [vmem:[#allocation51_spill] sm:$0xff] %v6425_v9  ;;  %v6427_v2 = vrot.slane %v1900_v5, 4  ;;  %v2309_v5 = vshrl.u32 %v6256_v38, 16  ;;  %v1938_v38 = vshll.u32 %v6276_v34, 16 }
  0xdc   : > { %v6461_v56 = vcombine.low %v6413_v62, %v6425_v9  ;;  %v4120_v9 = vld [vmem:[%s5521_s7 + $0x104] sm:$0x1] }
  0xdd   : > { %v6476_v34 = vrot.slane %v2309_v5, 4  ;;  %v6490_v18 = vrot.slane %v1938_v38, 5  ;;  %v2336_v5 = vshll.u32 %v6284_v7, 16  ;;  %v1879_v7 = vor.u32 %v6400_v20, %v6398_v61 }
  0xde   : > { %7912 = vst [vmem:[#allocation54_spill] sm:$0xff] %v6461_v56  ;;  %v6527_v20 = vrot.slane %v2333_v19, 4 }
  0xdf   : > { %v1880_v19 = vrot.slane %v1879_v7, 4  ;;  %v1903_v7 = vor.u32 %v6427_v2, %v6419_v6 }
  0xe0   : > { %4846 = vmatmul.mubr.msk.bf16.gmra.mrb[96].mxu0 %vm346_vm2, %v6388_v0  ;;  %v6449_v0 = vrot.slane %v2288_v50, 5  ;;  %v6463_v50 = vrot.slane %v1911_v14, 4  ;;  %v4117_v14 = vld [vmem:[%s5521_s7 + $0xf8] sm:$0x1] }
  0xe1   : > { %4884 = vmatmul.mubr.msk.bf16.gmra.mrb[96].mxu1 %vm346_vm2, %v6396_v31  ;;  %4849 = vmatprep.mubr.msk.bf16.mxu0 %vm5426_vm1, %v7868_v54  ;;  %v6451_v31 = vrot.slane %v2294_v4, 5  ;;  %v1944_v4 = vshll.u32 %v6279_v27, 16  ;;  %v6507_v27 = vld [vmem:[%s5521_s7 + $0x154] sm:$0xf]  ;;  %v1882_v38 = vshll.u32 %v4117_v14, 16  ;;  %v6531_v14 = vrot.slane %v2336_v5, 5 }
  0xe2   : > { %4887 = vmatprep.mubr.msk.bf16.mxu1 %vm5426_vm1, %v7868_v54  ;;  %7915 = vst [vmem:[#allocation57_spill] sm:$0xff] %v6507_v27  ;;  %v6536_v36 = vcombine.low %v6496_v42, %v6507_v27  ;;  %v2357_v27 = vshrl.u32 %v6312_v57, 16 }
  0xe3   : > { %v6500_v15 = vrot.slane %v1944_v4, 5  ;;  %v6521_v4 = vld [vmem:[%s5521_s7 + $0x1cc] sm:$0xf]  ;;  %v1884_v33 = vrot.slane %v1882_v38, 5  ;;  %v4337_v38 = vld [vmem:[%s7778_s1 + $0x12] sm:$0x3] }
  0xe4   : > { %7917 = vst [vmem:[#allocation59_spill] sm:$0xff] %v6521_v4  ;;  %7918 = vst [vmem:[#allocation60_spill] sm:$0xff] %v6536_v36  ;;  %v6540_v51 = vcombine.low %v6510_v53, %v6521_v4  ;;  %v4150_v4 = vld [vmem:[%s5521_s7 + $0x17c] sm:$0x1]  ;;  %v6554_v53 = vrot.slane %v1968_v1, 5  ;;  %v6591_v43 = vrot.slane %v2357_v27, 4 }
  0xe5   : > { %v1983_v1 = vshrl.u32 %v6332_v44, 16 }
  0xe6   : > { %7919 = vst [vmem:[#allocation61_spill] sm:$0xff] %v6540_v51  ;;  %7921 = vst [vmem:[#allocation63_spill] sm:$0xff] %v6591_v43 }
  0xe8   : > { %4850 = vmatmul.mubr.msk.bf16.gmra.mrb[100].mxu0 %vm346_vm2, %v6461_v56  ;;  %v2267_v56 = vor.u32 %v6404_v49, %v6402_v60  ;;  %v1959_v49 = vshrl.u32 %v6304_v13, 16  ;;  %v1962_v60 = vshll.u32 %v6304_v13, 16  ;;  %v6544_v13 = vrot.slane %v2346_v35, 4 }
  0xe9   : > { %4888 = vmatmul.mubr.msk.bf16.gmra.mrb[100].mxu1 %vm346_vm2, %v6470_v32  ;;  %4853 = vmatprep.mubr.msk.bf16.mxu0 %vm5426_vm1, %v7868_v54  ;;  %v2277_v32 = vor.u32 %v6408_v21, %v6406_v17  ;;  %v1870_v21 = vrot.slane %v1869_v12, 4  ;;  %v1972_v12 = vshrl.u32 %v6307_v25, 16  ;;  %v1885_v25 = vsel %vm5543_vm5, %v1880_v19, %v1884_v33 }
  0xea   : > { %4891 = vmatprep.mubr.msk.bf16.mxu1 %vm5426_vm1, %v7868_v54  ;;  %v2268_v55 = vrot.slane %v2267_v56, 4  ;;  %v6547_v62 = vrot.slane %v1959_v49, 4  ;;  %v6549_v63 = vrot.slane %v1962_v60, 5  ;;  %v2360_v56 = vshll.u32 %v6312_v57, 16 }
  0xeb   : > { %v2278_v5 = vrot.slane %v2277_v32, 4  ;;  %v1875_v59 = vsel %vm5543_vm5, %v1870_v21, %v6398_v61  ;;  %v1893_v32 = vor.u32 %v6417_v10, %v6415_v22  ;;  %v1906_v61 = vshll.u32 %v4120_v9, 16  ;;  %v4326_v10 = vld [vmem:[%s7778_s1 + $0x10] sm:$0x3] }
  0xec   : > { %v2273_v57 = vsel %vm5543_vm5, %v2268_v55, %v6406_v17  ;;  %v2291_v55 = vor.u32 %v6449_v0, %v6429_v52  ;;  %v2301_v17 = vor.u32 %v6455_v11, %v6451_v31  ;;  %v2304_v9 = vshll.u32 %v4150_v4, 16 }
  0xed   : > { %v2283_v22 = vsel %vm5543_vm5, %v2278_v5, %v2282_v28  ;;  %v6589_v2 = vrot.slane %v1972_v12, 4  ;;  %v2366_v28 = vshll.u32 %v6315_v30, 16  ;;  %v2370_v35 = vshrl.u32 %v6315_v30, 16  ;;  %v4123_v12 = vld [vmem:[%s5521_s7 + $0x110] sm:$0x1] }
  0xee   : > { %v6595_v60 = vrot.slane %v2360_v56, 5  ;;  %v4289_v52 = vcombine.low %v1875_v59, %v1885_v25  ;;  %v1894_v19 = vrot.slane %v1893_v32, 4  ;;  %v4308_v33 = vcombine.low %v2273_v57, %v2283_v22  ;;  %v4153_v57 = vld [vmem:[%s5521_s7 + $0x188] sm:$0x1] }
  0xef   : > { %7920 = vst [vmem:[#allocation62_spill] sm:$0xff] %v6589_v2  ;;  %v1904_v5 = vrot.slane %v1903_v7, 4  ;;  %v1908_v27 = vrot.slane %v1906_v61, 5  ;;  %v2669_v56 = vsel %vm374_vm0, %v4326_v10, 0  ;;  %v2292_v42 = vrot.slane %v2291_v55, 4 }
  0xf0   : > { %4854 = vmatmul.mubr.msk.bf16.gmra.mrb[104].mxu0 %vm346_vm2, %v6536_v36  ;;  %7922 = vst [vmem:[#allocation64_spill] sm:$0xff] %v6595_v60  ;;  %v2302_v60 = vrot.slane %v2301_v17, 4  ;;  %v2306_v43 = vrot.slane %v2304_v9, 5  ;;  %v6602_v2 = vrot.slane %v2366_v28, 5  ;;  %v1986_v59 = vshll.u32 %v6332_v44, 16 }
  0xf1   : > { %4892 = vmatmul.mubr.msk.bf16.gmra.mrb[104].mxu1 %vm346_vm2, %v6540_v51  ;;  %4897 = vmatprep.mubr.msk.bf16.mxu0 %vm5426_vm1, %v7868_v54  ;;  %v2805_v25 = vsel %vm374_vm0, %v4337_v38, 0  ;;  %v6609_v61 = vrot.slane %v2370_v35, 4  ;;  %v1992_v22 = vshll.u32 %v6335_v39, 16  ;;  %v1917_v10 = vor.u32 %v6465_v58, %v6463_v50 }
  0xf2   : > { %4935 = vmatprep.mubr.msk.bf16.mxu1 %vm5426_vm1, %v7868_v54  ;;  %v1927_v55 = vor.u32 %v6474_v48, %v6472_v24  ;;  %v1909_v44 = vsel %vm5543_vm5, %v1904_v5, %v1908_v27  ;;  %v1930_v38 = vshll.u32 %v4123_v12, 16  ;;  %v2315_v17 = vor.u32 %v6478_v26, %v6476_v34  ;;  %v4126_v27 = vld [vmem:[%s5521_s7 + $0x11c] sm:$0x1] }
  0xf3   : > { %v412_v49 = vpop.f32.mrb[0].mxu0  ;;  %v2297_v48 = vsel %vm5543_vm5, %v2292_v42, %v6451_v31  ;;  %v2307_v58 = vsel %vm5543_vm5, %v2302_v60, %v2306_v43  ;;  %v2328_v50 = vshll.u32 %v4153_v57, 16  ;;  %v6634_v9 = vrot.slane %v1983_v1, 4 }
  0xf4   : > { %v592_v21 = vpop.f32.mrb[0].mxu1  ;;  %v4671_v0 = vpop.f32.mrb[1].mxu0  ;;  %v6636_v28 = vrot.slane %v1986_v59, 5  ;;  %v1996_v26 = vshrl.u32 %v6335_v39, 16  ;;  %v2381_v34 = vshrl.u32 %v6340_v29, 16  ;;  %v6643_v31 = vrot.slane %v1992_v22, 5 }
  0xf5   : > { %v4709_v11 = vpop.f32.mrb[1].mxu1  ;;  %v415_v4 = vpop.f32.mrb[2].mxu0  ;;  %v6599_v51 = vadd.f32 %v592_v21, %v412_v49  ;;  %v1918_v49 = vrot.slane %v1917_v10, 4  ;;  %v1928_v60 = vrot.slane %v1927_v55, 4  ;;  %v6648_v21 = vcombine.low %v2297_v48, %v2307_v58 }
  0xf6   : > { %v595_v36 = vpop.f32.mrb[2].mxu1  ;;  %v4672_v30 = vpop.f32.mrb[3].mxu0  ;;  %v1932_v0 = vrot.slane %v1930_v38, 5  ;;  %v2330_v5 = vrot.slane %v2328_v50, 5  ;;  %v6653_v12 = vrot.slane %v1996_v26, 4  ;;  %v6660_v57 = vrot.slane %v2381_v34, 4 }
  0xf7   : > { %v4710_v32 = vpop.f32.mrb[3].mxu1  ;;  %v6607_v7 = vadd.f32 %v595_v36, %v415_v4  ;;  %v1899_v36 = vsel %vm5543_vm5, %v1894_v19, %v6419_v6  ;;  %v2325_v6 = vor.u32 %v6483_v46, %v6481_v3  ;;  %v2384_v30 = vshll.u32 %v6340_v29, 16 }
  0xf8   : > { %4898 = vmatmul.mubr.msk.bf16.vlgmr.msra.gmra.mrb[108].mxu0 %vm346_vm2, %v4289_v52  ;;  %v6645_v43 = vcombine.low %v1899_v36, %v1909_v44  ;;  %v2316_v52 = vrot.slane %v2315_v17, 4  ;;  %v4156_v32 = vld [vmem:[%s5521_s7 + $0x194] sm:$0x1]  ;;  %v2394_v22 = vshrl.u32 %v6343_v45, 16  ;;  %v1923_v10 = vsel %vm5543_vm5, %v1918_v49, %v6472_v24 }
  0xf9   : > { %4936 = vmatmul.mubr.msk.bf16.vlgmr.msra.gmra.mrb[108].mxu1 %vm346_vm2, %v4308_v33  ;;  %4972 = vmatpush3.bf16.msra.mxu0 %v2669_v56  ;;  %v2326_v33 = vrot.slane %v2325_v6, 4  ;;  %v2390_v56 = vshll.u32 %v6343_v45, 16  ;;  %v1941_v29 = vor.u32 %v6490_v18, %v6488_v47  ;;  %v1933_v55 = vsel %vm5543_vm5, %v1928_v60, %v1932_v0  ;;  %v4129_v60 = vld [vmem:[%s5521_s7 + $0x128] sm:$0x1] }
  0xfa   : > { %5010 = vmatpush3.bf16.msra.mxu1 %v2805_v25  ;;  %4901 = vmatprep.mubr.msk.bf16.mxu0 %vm5426_vm1, %v7868_v54  ;;  %v2321_v45 = vsel %vm5543_vm5, %v2316_v52, %v6481_v3  ;;  %v1951_v36 = vor.u32 %v6525_v8, %v6500_v15  ;;  %v1954_v24 = vshll.u32 %v4126_v27, 16  ;;  %v2339_v18 = vor.u32 %v6531_v14, %v6527_v20 }
  0xfb   : > { %v420_v35 = vpop.f32.mrb[4].mxu0  ;;  %4939 = vmatprep.mubr.msk.bf16.mxu1 %vm5426_vm1, %v7868_v54  ;;  %5047 = vmatprep.subr.bf16.mxu0 %v7868_v54  ;;  %v2331_v47 = vsel %vm5543_vm5, %v2326_v33, %v2330_v5  ;;  %v2349_v44 = vor.u32 %v6544_v13, %v6542_v40  ;;  %v2352_v38 = vshll.u32 %v4156_v32, 16  ;;  %v6689_v17 = vrot.slane %v2384_v30, 5 }
  0xfc   : > { %v600_v42 = vpop.f32.mrb[4].mxu1  ;;  %v4675_v46 = vpop.f32.mrb[5].mxu0  ;;  %5085 = vmatprep.subr.bf16.mxu1 %v7868_v54  ;;  %v6691_v3 = vrot.slane %v2390_v56, 5  ;;  %v2007_v8 = vshrl.u32 %v6357_v16, 16  ;;  %v2010_v48 = vshll.u32 %v6357_v16, 16  ;;  %v6695_v6 = vrot.slane %v2394_v22, 4 }
  0xfd   : > { %v4713_v39 = vpop.f32.mrb[5].mxu1  ;;  %v423_v1 = vpop.f32.mrb[6].mxu0  ;;  %v6650_v19 = vadd.f32 %v600_v42, %v420_v35  ;;  %v2016_v50 = vshll.u32 %v6365_v41, 16  ;;  %v6698_v14 = vcombine.low %v1923_v10, %v1933_v55  ;;  %v1942_v13 = vrot.slane %v1941_v29, 4  ;;  %v4159_v56 = vld [vmem:[%s5521_s7 + $0x1a0] sm:$0x1] }
  0xfe   : > { %v603_v11 = vpop.f32.mrb[6].mxu1  ;;  %v4676_v4 = vpop.f32.mrb[7].mxu0  ;;  %v6700_v42 = vcombine.low %v2321_v45, %v2331_v47  ;;  %v1952_v46 = vrot.slane %v1951_v36, 4  ;;  %v1956_v49 = vrot.slane %v1954_v24, 5  ;;  %v2020_v16 = vshrl.u32 %v6365_v41, 16  ;;  %v7923_v10 = vld [vmem:[#allocation62_spill] sm:$0xff] }
  0xff   : > { %v4714_v59 = vpop.f32.mrb[7].mxu1  ;;  %v6658_v25 = vadd.f32 %v603_v11, %v423_v1  ;;  %v2340_v52 = vrot.slane %v2339_v18, 4  ;;  %v2350_v11 = vrot.slane %v2349_v44, 4  ;;  %v2354_v4 = vrot.slane %v2352_v38, 5  ;;  %v7924_v36 = vld [vmem:[#allocation63_spill] sm:$0xff]  ;;  %v7925_v24 = vld [vmem:[#allocation64_spill] sm:$0xff] }
 0x100   : > { %4902 = vmatmul.mubr.msk.bf16.gmra.mrb[112].mxu0 %vm346_vm2, %v6645_v43  ;;  %v6706_v33 = vrot.slane %v2007_v8, 4  ;;  %v6708_v5 = vrot.slane %v2010_v48, 5  ;;  %v2405_v27 = vshrl.u32 %v6368_v37, 16  ;;  %v6714_v32 = vrot.slane %v2016_v50, 5  ;;  %v7926_v8 = vld [vmem:[#allocation47_spill] sm:$0xff] }
 0x101   : > { %4940 = vmatmul.mubr.msk.bf16.gmra.mrb[112].mxu1 %vm346_vm2, %v6648_v21  ;;  %4905 = vmatprep.mubr.msk.bf16.mxu0 %vm5426_vm1, %v7868_v54  ;;  %v2408_v22 = vshll.u32 %v6368_v37, 16  ;;  %v1965_v41 = vor.u32 %v6549_v63, %v6547_v62  ;;  %v1975_v29 = vor.u32 %v7923_v10, %v6554_v53  ;;  %v1947_v55 = vsel %vm5543_vm5, %v1942_v13, %v6500_v15 }
 0x102   : > { %4943 = vmatprep.mubr.msk.bf16.mxu1 %vm5426_vm1, %v7868_v54  ;;  %v1957_v37 = vsel %vm5543_vm5, %v1952_v46, %v1956_v49  ;;  %v1978_v45 = vshll.u32 %v4129_v60, 16  ;;  %v2363_v62 = vor.u32 %v7925_v24, %v7924_v36  ;;  %v2345_v63 = vsel %vm5543_vm5, %v2340_v52, %v6542_v40 }
 0x103   : > { %v428_v58 = vpop.f32.mrb[8].mxu0  ;;  %v2355_v47 = vsel %vm5543_vm5, %v2350_v11, %v2354_v4  ;;  %v2373_v15 = vor.u32 %v6609_v61, %v6602_v2  ;;  %v2376_v18 = vshll.u32 %v4159_v56, 16  ;;  %v6743_v44 = vrot.slane %v2020_v16, 4  ;;  %v7927_v56 = vld [vmem:[#allocation50_spill] sm:$0xff] }
 0x104   : > { %v608_v26 = vpop.f32.mrb[8].mxu1  ;;  %v4679_v20 = vpop.f32.mrb[9].mxu0  ;;  %v6745_v38 = vrot.slane %v2405_v27, 4  ;;  %v2414_v48 = vshll.u32 %v7926_v8, 16  ;;  %v6751_v13 = vcombine.low %v1947_v55, %v1957_v37  ;;  %v6753_v49 = vcombine.low %v2345_v63, %v2355_v47  ;;  %v4132_v27 = vld [vmem:[%s5521_s7 + $0x134] sm:$0x1] }
 0x105   : > { %v4717_v34 = vpop.f32.mrb[9].mxu1  ;;  %v431_v35 = vpop.f32.mrb[10].mxu0  ;;  %v6703_v39 = vadd.f32 %v608_v26, %v428_v58  ;;  %v2418_v58 = vshrl.u32 %v7926_v8, 16  ;;  %v6749_v26 = vrot.slane %v2408_v22, 5  ;;  %v1980_v60 = vrot.slane %v1978_v45, 5  ;;  %v7928_v45 = vld [vmem:[#allocation51_spill] sm:$0xff] }
 0x106   : > { %v611_v1 = vpop.f32.mrb[10].mxu1  ;;  %v4680_v0 = vpop.f32.mrb[11].mxu0  ;;  %v1966_v34 = vrot.slane %v1965_v41, 4  ;;  %v2364_v16 = vrot.slane %v2363_v62, 4  ;;  %v2374_v11 = vrot.slane %v2373_v15, 4  ;;  %v2378_v4 = vrot.slane %v2376_v18, 5 }
 0x107   : > { %v4718_v30 = vpop.f32.mrb[11].mxu1  ;;  %v6712_v59 = vadd.f32 %v611_v1, %v431_v35  ;;  %v1976_v35 = vrot.slane %v1975_v29, 4  ;;  %v2031_v22 = vshrl.u32 %v7927_v56, 16  ;;  %v2034_v41 = vshll.u32 %v7927_v56, 16  ;;  %v4162_v29 = vld [vmem:[%s5521_s7 + $0x1ac] sm:$0x1] }
 0x108   : > { %4906 = vmatmul.mubr.msk.bf16.gmra.mrb[116].mxu0 %vm346_vm2, %v6698_v14  ;;  %v6758_v30 = vrot.slane %v2414_v48, 5  ;;  %v6765_v37 = vrot.slane %v2418_v58, 4  ;;  %v2040_v36 = vshll.u32 %v7928_v45, 16  ;;  %v1971_v24 = vsel %vm5543_vm5, %v1966_v34, %v6554_v53  ;;  %v7929_v58 = vld [vmem:[#allocation52_spill] sm:$0xff]  ;;  %v7930_v34 = vld [vmem:[#allocation53_spill] sm:$0xff] }
 0x109   : > { %4944 = vmatmul.mubr.msk.bf16.gmra.mrb[116].mxu1 %vm346_vm2, %v6700_v42  ;;  %4909 = vmatprep.mubr.msk.bf16.mxu0 %vm5426_vm1, %v7868_v54  ;;  %v1989_v62 = vor.u32 %v6636_v28, %v6634_v9  ;;  %v1981_v63 = vsel %vm5543_vm5, %v1976_v35, %v1980_v60  ;;  %v2369_v47 = vsel %vm5543_vm5, %v2364_v16, %v6602_v2  ;;  %v2002_v53 = vshll.u32 %v4132_v27, 16 }
 0x10a   : > { %4947 = vmatprep.mubr.msk.bf16.mxu1 %vm5426_vm1, %v7868_v54  ;;  %v1999_v15 = vor.u32 %v6653_v12, %v6643_v31  ;;  %v2379_v9 = vsel %vm5543_vm5, %v2374_v11, %v2378_v4  ;;  %v2387_v28 = vor.u32 %v6689_v17, %v6660_v57  ;;  %v2397_v18 = vor.u32 %v6695_v6, %v6691_v3  ;;  %v4135_v11 = vld [vmem:[%s5521_s7 + $0x140] sm:$0x1] }
 0x10b   : > { %v436_v50 = vpop.f32.mrb[12].mxu0  ;;  %v2400_v8 = vshll.u32 %v4162_v29, 16  ;;  %v6794_v48 = vrot.slane %v2031_v22, 4  ;;  %v6796_v2 = vrot.slane %v2034_v41, 5  ;;  %v2044_v12 = vshrl.u32 %v7928_v45, 16 }
 0x10c   : > { %v616_v40 = vpop.f32.mrb[12].mxu1  ;;  %v4683_v20 = vpop.f32.mrb[13].mxu0  ;;  %v2438_v35 = vshll.u32 %v7930_v34, 16  ;;  %v6802_v17 = vcombine.low %v1971_v24, %v1981_v63  ;;  %v1990_v6 = vrot.slane %v1989_v62, 4  ;;  %v6804_v16 = vcombine.low %v2369_v47, %v2379_v9  ;;  %v4165_v47 = vld [vmem:[%s5521_s7 + $0x1b8] sm:$0x1] }
 0x10d   : > { %v4721_v61 = vpop.f32.mrb[13].mxu1  ;;  %v439_v46 = vpop.f32.mrb[14].mxu0  ;;  %v6755_v1 = vadd.f32 %v616_v40, %v436_v50  ;;  %v2429_v50 = vshrl.u32 %v7929_v58, 16  ;;  %v2432_v20 = vshll.u32 %v7929_v58, 16  ;;  %v6809_v27 = vrot.slane %v2040_v36, 5 }
 0x10e   : > { %v619_v0 = vpop.f32.mrb[14].mxu1  ;;  %v4684_v52 = vpop.f32.mrb[15].mxu0  ;;  %v2388_v41 = vrot.slane %v2387_v28, 4  ;;  %v2402_v29 = vrot.slane %v2400_v8, 5  ;;  %v6811_v45 = vrot.slane %v2044_v12, 4  ;;  %v2442_v62 = vshrl.u32 %v7930_v34, 16 }
 0x10f   : > { %v4722_v10 = vpop.f32.mrb[15].mxu1  ;;  %v6763_v55 = vadd.f32 %v619_v0, %v439_v46  ;;  %v2000_v0 = vrot.slane %v1999_v15, 4  ;;  %v2004_v52 = vrot.slane %v2002_v53, 5  ;;  %v6813_v24 = vrot.slane %v2429_v50, 4 }
 0x110   : > { %4910 = vmatmul.mubr.msk.bf16.gmra.mrb[120].mxu0 %vm346_vm2, %v6751_v13  ;;  %v2398_v10 = vrot.slane %v2397_v18, 4  ;;  %v6819_v53 = vrot.slane %v2432_v20, 5  ;;  %v1995_v36 = vsel %vm5543_vm5, %v1990_v6, %v6643_v31  ;;  %v2013_v9 = vor.u32 %v6708_v5, %v6706_v33 }
 0x111   : > { %4948 = vmatmul.mubr.msk.bf16.gmra.mrb[120].mxu1 %vm346_vm2, %v6753_v49  ;;  %4913 = vmatprep.mubr.msk.bf16.mxu0 %vm5426_vm1, %v7868_v54  ;;  %v2026_v28 = vshll.u32 %v4135_v11, 16  ;;  %v6828_v18 = vrot.slane %v2438_v35, 5  ;;  %v2005_v8 = vsel %vm5543_vm5, %v2000_v0, %v2004_v52  ;;  %v2023_v12 = vor.u32 %v6743_v44, %v6714_v32  ;;  %v7931_v44 = vld [vmem:[#allocation56_spill] sm:$0xff] }
 0x112   : > { %4951 = vmatprep.mubr.msk.bf16.mxu1 %vm5426_vm1, %v7868_v54  ;;  %v2411_v31 = vor.u32 %v6749_v26, %v6745_v38  ;;  %v2393_v33 = vsel %vm5543_vm5, %v2388_v41, %v6691_v3  ;;  %v2403_v5 = vsel %vm5543_vm5, %v2398_v10, %v2402_v29  ;;  %v2421_v58 = vor.u32 %v6765_v37, %v6758_v30  ;;  %v7932_v26 = vld [vmem:[#allocation57_spill] sm:$0xff] }
 0x113   : > { %v444_v40 = vpop.f32.mrb[16].mxu0  ;;  %v2424_v50 = vshll.u32 %v4165_v47, 16  ;;  %v2055_v20 = vshrl.u32 %v7931_v44, 16  ;;  %v2058_v38 = vshll.u32 %v7931_v44, 16  ;;  %v2064_v34 = vshll.u32 %v7932_v26, 16 }
 0x114   : > { %v624_v61 = vpop.f32.mrb[16].mxu1  ;;  %v4687_v57 = vpop.f32.mrb[17].mxu0  ;;  %v6855_v6 = vcombine.low %v1995_v36, %v2005_v8  ;;  %v6857_v52 = vcombine.low %v2393_v33, %v2403_v5  ;;  %v2024_v11 = vrot.slane %v2023_v12, 4  ;;  %v2422_v29 = vrot.slane %v2421_v58, 4  ;;  %v7933_v36 = vld [vmem:[#allocation58_spill] sm:$0xff]  ;;  %v7934_v33 = vld [vmem:[#allocation59_spill] sm:$0xff] }
 0x115   : > { %v4725_v46 = vpop.f32.mrb[17].mxu1  ;;  %v447_v60 = vpop.f32.mrb[18].mxu0  ;;  %v6807_v4 = vadd.f32 %v624_v61, %v444_v40  ;;  %v6849_v40 = vrot.slane %v2442_v62, 4  ;;  %v2068_v61 = vshrl.u32 %v7932_v26, 16  ;;  %v2426_v62 = vrot.slane %v2424_v50, 5 }
 0x116   : > { %v627_v56 = vpop.f32.mrb[18].mxu1  ;;  %v4688_v22 = vpop.f32.mrb[19].mxu0  ;;  %v2014_v46 = vrot.slane %v2013_v9, 4  ;;  %v6862_v47 = vrot.slane %v2055_v20, 4  ;;  %v2453_v8 = vshrl.u32 %v7933_v36, 16  ;;  %v2456_v9 = vshll.u32 %v7933_v36, 16 }
 0x117   : > { %v4726_v63 = vpop.f32.mrb[19].mxu1  ;;  %v6817_v15 = vadd.f32 %v627_v56, %v447_v60  ;;  %v2028_v60 = vrot.slane %v2026_v28, 5  ;;  %v2412_v56 = vrot.slane %v2411_v31, 4  ;;  %v4168_v44 = vld [vmem:[%s5521_s7 + $0x1c4] sm:$0x1]  ;;  %v2462_v12 = vshll.u32 %v7934_v33, 16 }
 0x118   : > { %4914 = vmatmul.mubr.msk.bf16.gmra.mrb[124].mxu0 %vm346_vm2, %v6802_v17  ;;  %v4138_v63 = vld [vmem:[%s5521_s7 + $0x14c] sm:$0x1]  ;;  %v2466_v31 = vshrl.u32 %v7934_v33, 16  ;;  %v2019_v5 = vsel %vm5543_vm5, %v2014_v46, %v6714_v32  ;;  %v2037_v58 = vor.u32 %v6796_v2, %v6794_v48  ;;  %v2427_v48 = vsel %vm5543_vm5, %v2422_v29, %v2426_v62 }
 0x119   : > { %4952 = vmatmul.mubr.msk.bf16.gmra.mrb[124].mxu1 %vm346_vm2, %v6804_v16  ;;  %4917 = vmatprep.mubr.msk.bf16.mxu0 %vm5426_vm1, %v7868_v54  ;;  %v2029_v50 = vsel %vm5543_vm5, %v2024_v11, %v2028_v60  ;;  %v2417_v20 = vsel %vm5543_vm5, %v2412_v56, %v6758_v30  ;;  %v2050_v32 = vshll.u32 %v4138_v63, 16  ;;  %v2435_v2 = vor.u32 %v6819_v53, %v6813_v24 }
 0x11a   : > { %4955 = vmatprep.mubr.msk.bf16.mxu1 %vm5426_vm1, %v7868_v54  ;;  %v2060_v46 = vrot.slane %v2058_v38, 5  ;;  %v6897_v30 = vrot.slane %v2064_v34, 5  ;;  %v2070_v60 = vrot.slane %v2068_v61, 4  ;;  %v6899_v11 = vrot.slane %v2462_v12, 5  ;;  %v4141_v34 = vld [vmem:[%s5521_s7 + $0x158] sm:$0x1] }
 0x11b   : > { %v452_v35 = vpop.f32.mrb[20].mxu0  ;;  %v2038_v24 = vrot.slane %v2037_v58, 4  ;;  %v2052_v62 = vrot.slane %v2050_v32, 5  ;;  %v2468_v61 = vrot.slane %v2466_v31, 4  ;;  %v4171_v12 = vld [vmem:[%s5521_s7 + $0x1d0] sm:$0x1] }
 0x11c   : > { %v632_v3 = vpop.f32.mrb[20].mxu1  ;;  %v4691_v57 = vpop.f32.mrb[21].mxu0 }
 0x11d   : > { %v4729_v37 = vpop.f32.mrb[21].mxu1  ;;  %v455_v0 = vpop.f32.mrb[22].mxu0  ;;  %v6859_v22 = vadd.f32 %v632_v3, %v452_v35  ;;  %v2047_v35 = vor.u32 %v6811_v45, %v6809_v27  ;;  %v2445_v3 = vor.u32 %v6849_v40, %v6828_v18  ;;  %v2448_v57 = vshll.u32 %v4168_v44, 16 }
 0x11e   : > { %v635_v41 = vpop.f32.mrb[22].mxu1  ;;  %v4692_v10 = vpop.f32.mrb[23].mxu0  ;;  %v2455_v45 = vrot.slane %v2453_v8, 4  ;;  %v6903_v40 = vcombine.low %v2417_v20, %v2427_v48  ;;  %v2043_v58 = vsel %vm5543_vm5, %v2038_v24, %v6809_v27  ;;  %v2071_v20 = vor.u32 %v2070_v60, %v6897_v30 }
 0x11f   : > { %v4730_v28 = vpop.f32.mrb[23].mxu1  ;;  %v6867_v26 = vadd.f32 %v635_v41, %v455_v0  ;;  %v2458_v0 = vrot.slane %v2456_v9, 5  ;;  %v6901_v10 = vcombine.low %v2019_v5, %v2029_v50  ;;  %v2048_v38 = vrot.slane %v2047_v35, 4 }
 0x120   : > { %4918 = vmatmul.mubr.msk.bf16.gmra.mrb[128].mxu0 %vm346_vm2, %v6855_v6  ;;  %v2436_v9 = vrot.slane %v2435_v2, 4  ;;  %v2446_v28 = vrot.slane %v2445_v3, 4  ;;  %v2450_v44 = vrot.slane %v2448_v57, 5  ;;  %v2061_v50 = vor.u32 %v2060_v46, %v6862_v47 }
 0x121   : > { %4956 = vmatmul.mubr.msk.bf16.gmra.mrb[128].mxu1 %vm346_vm2, %v6857_v52  ;;  %4921 = vmatprep.mubr.msk.bf16.mxu0 %vm5426_vm1, %v7868_v54  ;;  %v2053_v31 = vsel %vm5543_vm5, %v2048_v38, %v2052_v62  ;;  %v2074_v35 = vshll.u32 %v4141_v34, 16  ;;  %v2459_v32 = vor.u32 %v2458_v0, %v2455_v45  ;;  %v2469_v48 = vor.u32 %v2468_v61, %v6899_v11 }
 0x122   : > { %4959 = vmatprep.mubr.msk.bf16.mxu1 %vm5426_vm1, %v7868_v54  ;;  %v2441_v27 = vsel %vm5543_vm5, %v2436_v9, %v6828_v18  ;;  %v2451_v47 = vsel %vm5543_vm5, %v2446_v28, %v2450_v44  ;;  %v2472_v2 = vshll.u32 %v4171_v12, 16  ;;  %v2062_v60 = vrot.slane %v2061_v50, 4 }
 0x123   : > { %v460_v37 = vpop.f32.mrb[24].mxu0  ;;  %v2076_v24 = vrot.slane %v2074_v35, 5  ;;  %v2460_v38 = vrot.slane %v2459_v32, 4  ;;  %v2470_v62 = vrot.slane %v2469_v48, 4 }
 0x124   : > { %v640_v56 = vpop.f32.mrb[24].mxu1  ;;  %v4695_v41 = vpop.f32.mrb[25].mxu0  ;;  %v2474_v34 = vrot.slane %v2472_v2, 5  ;;  %v4348_v2 = vld [vmem:[%s7778_s1 + $0x14] sm:$0x3] }
 0x125   : > { %v4733_v53 = vpop.f32.mrb[25].mxu1  ;;  %v463_v29 = vpop.f32.mrb[26].mxu0  ;;  %v6906_v63 = vadd.f32 %v640_v56, %v460_v37  ;;  %v6932_v37 = vcombine.low %v2043_v58, %v2053_v31  ;;  %v6934_v56 = vcombine.low %v2441_v27, %v2451_v47  ;;  %v2072_v41 = vrot.slane %v2071_v20, 4 }
 0x126   : > { %v643_v36 = vpop.f32.mrb[26].mxu1  ;;  %v4696_v8 = vpop.f32.mrb[27].mxu0  ;;  %v2465_v28 = vsel %vm5543_vm5, %v2460_v38, %v6899_v11  ;;  %v2475_v44 = vsel %vm5543_vm5, %v2470_v62, %v2474_v34  ;;  %v2963_v38 = vsel %vm374_vm0, %v4348_v2, 0  ;;  %v7938_v2 = vld [vmem:[#allocation7_spill] sm:$0xff] }
 0x127   : > { %v4734_v33 = vpop.f32.mrb[27].mxu1  ;;  %v6909_v5 = vadd.f32 %v643_v36, %v463_v29  ;;  %v2067_v8 = vsel %vm5543_vm5, %v2062_v60, %v6897_v30  ;;  %v2077_v9 = vsel %vm5543_vm5, %v2072_v41, %v2076_v24  ;;  %v6962_v35 = vcombine.low %v2465_v28, %v2475_v44  ;;  %v4359_v60 = vld [vmem:[%s7778_s1 + $0x16] sm:$0x3] }
 0x128   : > { %4922 = vmatmul.mubr.msk.bf16.gmra.mrb[132].mxu0 %vm346_vm2, %v6901_v10  ;;  %v6958_v50 = vcombine.low %v2067_v8, %v2077_v9  ;;  %v3121_v34 = vsel %vm374_vm0, %v4359_v60, 0  ;;  %v7936_v8 = vld [vmem:[#allocation5_spill] sm:$0xff] }
 0x129   : > { %4960 = vmatmul.mubr.msk.bf16.gmra.mrb[132].mxu1 %vm346_vm2, %v6903_v40  ;;  %4925 = vmatprep.mubr.msk.bf16.mxu0 %vm5426_vm1, %v7868_v54 }
 0x12a   : > { %4963 = vmatprep.mubr.msk.bf16.mxu1 %vm5426_vm1, %v7868_v54 }
 0x12b   : > { %v468_v3 = vpop.f32.mrb[28].mxu0 }
 0x12c   : > { %v648_v57 = vpop.f32.mrb[28].mxu1  ;;  %v4699_v46 = vpop.f32.mrb[29].mxu0 }
 0x12d   : > { %v4737_v45 = vpop.f32.mrb[29].mxu1  ;;  %v471_v0 = vpop.f32.mrb[30].mxu0  ;;  %v6936_v53 = vadd.f32 %v648_v57, %v468_v3 }
 0x12e   : > { %v651_v18 = vpop.f32.mrb[30].mxu1  ;;  %v4700_v29 = vpop.f32.mrb[31].mxu0 }
 0x12f   : > { %v4738_v61 = vpop.f32.mrb[31].mxu1  ;;  %v6938_v36 = vadd.f32 %v651_v18, %v471_v0 }
 0x130   : > { %4926 = vmatmul.mubr.msk.bf16.gmra.mrb[136].mxu0 %vm346_vm2, %v6932_v37  ;;  %v7935_v61 = vld [vmem:[#allocation6_spill] sm:$0xff] }
 0x131   : > { %4964 = vmatmul.mubr.msk.bf16.gmra.mrb[136].mxu1 %vm346_vm2, %v6934_v56  ;;  %4929 = vmatprep.mubr.msk.bf16.mxu0 %vm5426_vm1, %v7868_v54 }
 0x132   : > { %4967 = vmatprep.mubr.msk.bf16.mxu1 %vm5426_vm1, %v7868_v54 }
 0x133   : > { %v476_v33 = vpop.f32.mrb[32].mxu0 }
 0x134   : > { %v656_v12 = vpop.f32.mrb[32].mxu1  ;;  %v4703_v58 = vpop.f32.mrb[33].mxu0 }
 0x135   : > { %v6960_v31 = vadd.f32 %v656_v12, %v476_v33  ;;  %v4741_v30 = vpop.f32.mrb[33].mxu1  ;;  %v479_v20 = vpop.f32.mrb[34].mxu0 }
 0x136   : > { %v659_v32 = vpop.f32.mrb[34].mxu1  ;;  %v4704_v27 = vpop.f32.mrb[35].mxu0 }
 0x137   : > { %v6964_v47 = vadd.f32 %v659_v32, %v479_v20  ;;  %v4742_v48 = vpop.f32.mrb[35].mxu1 }
 0x138   : > { %4930 = vmatmul.mubr.msk.bf16.gmra.mrb[140].mxu0 %vm346_vm2, %v6958_v50 }
 0x139   : > { %4968 = vmatmul.mubr.msk.bf16.gmra.mrb[140].mxu1 %vm346_vm2, %v6962_v35  ;;  %4973 = vmatprep.mubr.msk.bf16.mxu0 %vm5426_vm1, %v7868_v54 }
 0x13a   : > { %5011 = vmatprep.mubr.msk.bf16.mxu1 %vm5426_vm1, %v7868_v54 }
 0x13b   : > { %v975_v11 = vpop.f32.mrb[36].mxu0 }
 0x13c   : > { %v1046_v3 = vadd.f32 %v975_v11, %v6599_v51  ;;  %v1373_v57 = vpop.f32.mrb[36].mxu1  ;;  %v4747_v46 = vpop.f32.mrb[37].mxu0  ;;  %v7937_v11 = vld [vmem:[#allocation8_spill] sm:$0xff] }
 0x13d   : > { %v4785_v45 = vpop.f32.mrb[37].mxu1  ;;  %v978_v0 = vpop.f32.mrb[38].mxu0 }
 0x13e   : > { %v6981_v41 = vadd.f32 %v1373_v57, %v1046_v3  ;;  %v1047_v24 = vadd.f32 %v978_v0, %v6607_v7  ;;  %v1376_v18 = vpop.f32.mrb[38].mxu1  ;;  %v4748_v29 = vpop.f32.mrb[39].mxu0 }
 0x13f   : > { %v4786_v62 = vpop.f32.mrb[39].mxu1 }
 0x140   : > { %v6986_v51 = vadd.f32 %v1376_v18, %v1047_v24  ;;  %4974 = vmatmul.mubr.msk.bf16.vlgmr.msra.gmra.mrb[144].mxu0 %vm346_vm2, %v7935_v61  ;;  %v7939_v62 = vld [vmem:[#allocation10_spill] sm:$0xff] }
 0x141   : > { %5012 = vmatmul.mubr.msk.bf16.vlgmr.msra.gmra.mrb[144].mxu1 %vm346_vm2, %v7936_v8  ;;  %5048 = vmatpush3.bf16.msra.mxu0 %v2963_v38 }
 0x142   : > { %5086 = vmatpush3.bf16.msra.mxu1 %v3121_v34  ;;  %4977 = vmatprep.mubr.msk.bf16.mxu0 %vm5426_vm1, %v7868_v54  ;;  %v7940_v34 = vld [vmem:[#allocation9_spill] sm:$0xff] }
 0x143   : > { %v983_v7 = vpop.f32.mrb[40].mxu0  ;;  %5015 = vmatprep.mubr.msk.bf16.mxu1 %vm5426_vm1, %v7868_v54  ;;  %5123 = vmatprep.subr.bf16.mxu0 %v7868_v54 }
 0x144   : > { %v1048_v9 = vadd.f32 %v983_v7, %v6650_v19  ;;  %v1381_v28 = vpop.f32.mrb[40].mxu1  ;;  %v4751_v44 = vpop.f32.mrb[41].mxu0  ;;  %5161 = vmatprep.subr.bf16.mxu1 %v7868_v54 }
 0x145   : > { %v4789_v33 = vpop.f32.mrb[41].mxu1  ;;  %v986_v12 = vpop.f32.mrb[42].mxu0 }
 0x146   : > { %v6999_v58 = vadd.f32 %v1381_v28, %v1048_v9  ;;  %v1049_v30 = vadd.f32 %v986_v12, %v6658_v25  ;;  %v1384_v20 = vpop.f32.mrb[42].mxu1  ;;  %v4752_v32 = vpop.f32.mrb[43].mxu0 }
 0x147   : > { %v4790_v27 = vpop.f32.mrb[43].mxu1  ;;  %v7941_v32 = vld [vmem:[#allocation12_spill] sm:$0xff] }
 0x148   : > { %v7002_v48 = vadd.f32 %v1384_v20, %v1049_v30  ;;  %4978 = vmatmul.mubr.msk.bf16.gmra.mrb[148].mxu0 %vm346_vm2, %v7937_v11  ;;  %v7942_v27 = vld [vmem:[#allocation11_spill] sm:$0xff] }
 0x149   : > { %5016 = vmatmul.mubr.msk.bf16.gmra.mrb[148].mxu1 %vm346_vm2, %v7938_v2  ;;  %4981 = vmatprep.mubr.msk.bf16.mxu0 %vm5426_vm1, %v7868_v54 }
 0x14a   : > { %5019 = vmatprep.mubr.msk.bf16.mxu1 %vm5426_vm1, %v7868_v54 }
 0x14b   : > { %v991_v19 = vpop.f32.mrb[44].mxu0 }
 0x14c   : > { %v1050_v25 = vadd.f32 %v991_v19, %v6703_v39  ;;  %v1389_v3 = vpop.f32.mrb[44].mxu1  ;;  %v4755_v57 = vpop.f32.mrb[45].mxu0 }
 0x14d   : > { %v4793_v46 = vpop.f32.mrb[45].mxu1  ;;  %v994_v60 = vpop.f32.mrb[46].mxu0 }
 0x14e   : > { %v7013_v45 = vadd.f32 %v1389_v3, %v1050_v25  ;;  %v1051_v0 = vadd.f32 %v994_v60, %v6712_v59  ;;  %v1392_v24 = vpop.f32.mrb[46].mxu1  ;;  %v4756_v18 = vpop.f32.mrb[47].mxu0 }
 0x14f   : > { %v4794_v29 = vpop.f32.mrb[47].mxu1  ;;  %v7943_v18 = vld [vmem:[#allocation14_spill] sm:$0xff] }
 0x150   : > { %v7016_v38 = vadd.f32 %v1392_v24, %v1051_v0  ;;  %4982 = vmatmul.mubr.msk.bf16.gmra.mrb[152].mxu0 %vm346_vm2, %v7939_v62  ;;  %v7944_v29 = vld [vmem:[#allocation13_spill] sm:$0xff] }
 0x151   : > { %5020 = vmatmul.mubr.msk.bf16.gmra.mrb[152].mxu1 %vm346_vm2, %v7940_v34  ;;  %4985 = vmatprep.mubr.msk.bf16.mxu0 %vm5426_vm1, %v7868_v54 }
 0x152   : > { %5023 = vmatprep.mubr.msk.bf16.mxu1 %vm5426_vm1, %v7868_v54 }
 0x153   : > { %v999_v39 = vpop.f32.mrb[48].mxu0 }
 0x154   : > { %v1052_v59 = vadd.f32 %v999_v39, %v6755_v1  ;;  %v1397_v61 = vpop.f32.mrb[48].mxu1  ;;  %v4759_v8 = vpop.f32.mrb[49].mxu0 }
 0x155   : > { %v4797_v7 = vpop.f32.mrb[49].mxu1  ;;  %v1002_v9 = vpop.f32.mrb[50].mxu0 }
 0x156   : > { %v7027_v28 = vadd.f32 %v1397_v61, %v1052_v59  ;;  %v1053_v44 = vadd.f32 %v1002_v9, %v6763_v55  ;;  %v1400_v33 = vpop.f32.mrb[50].mxu1  ;;  %v4760_v12 = vpop.f32.mrb[51].mxu0 }
 0x157   : > { %v4798_v30 = vpop.f32.mrb[51].mxu1  ;;  %v7945_v12 = vld [vmem:[#allocation16_spill] sm:$0xff] }
 0x158   : > { %v7030_v20 = vadd.f32 %v1400_v33, %v1053_v44  ;;  %4986 = vmatmul.mubr.msk.bf16.gmra.mrb[156].mxu0 %vm346_vm2, %v7941_v32  ;;  %v7946_v30 = vld [vmem:[#allocation15_spill] sm:$0xff] }
 0x159   : > { %5024 = vmatmul.mubr.msk.bf16.gmra.mrb[156].mxu1 %vm346_vm2, %v7942_v27  ;;  %4989 = vmatprep.mubr.msk.bf16.mxu0 %vm5426_vm1, %v7868_v54 }
 0x15a   : > { %5027 = vmatprep.mubr.msk.bf16.mxu1 %vm5426_vm1, %v7868_v54 }
 0x15b   : > { %v1007_v1 = vpop.f32.mrb[52].mxu0 }
 0x15c   : > { %v1054_v55 = vadd.f32 %v1007_v1, %v6807_v4  ;;  %v1405_v11 = vpop.f32.mrb[52].mxu1  ;;  %v4763_v2 = vpop.f32.mrb[53].mxu0 }
 0x15d   : > { %v4801_v19 = vpop.f32.mrb[53].mxu1  ;;  %v1010_v25 = vpop.f32.mrb[54].mxu0 }
 0x15e   : > { %v7041_v3 = vadd.f32 %v1405_v11, %v1054_v55  ;;  %v1055_v57 = vadd.f32 %v1010_v25, %v6817_v15  ;;  %v1408_v46 = vpop.f32.mrb[54].mxu1  ;;  %v4764_v60 = vpop.f32.mrb[55].mxu0 }
 0x15f   : > { %v4802_v0 = vpop.f32.mrb[55].mxu1  ;;  %v7947_v60 = vld [vmem:[#allocation19_spill] sm:$0xff] }
 0x160   : > { %v7044_v24 = vadd.f32 %v1408_v46, %v1055_v57  ;;  %4990 = vmatmul.mubr.msk.bf16.gmra.mrb[160].mxu0 %vm346_vm2, %v7943_v18  ;;  %v7948_v0 = vld [vmem:[#allocation18_spill] sm:$0xff] }
 0x161   : > { %5028 = vmatmul.mubr.msk.bf16.gmra.mrb[160].mxu1 %vm346_vm2, %v7944_v29  ;;  %4993 = vmatprep.mubr.msk.bf16.mxu0 %vm5426_vm1, %v7868_v54 }
 0x162   : > { %5031 = vmatprep.mubr.msk.bf16.mxu1 %vm5426_vm1, %v7868_v54 }
 0x163   : > { %v1015_v4 = vpop.f32.mrb[56].mxu0 }
 0x164   : > { %v1056_v15 = vadd.f32 %v1015_v4, %v6859_v22  ;;  %v1413_v62 = vpop.f32.mrb[56].mxu1  ;;  %v4767_v34 = vpop.f32.mrb[57].mxu0 }
 0x165   : > { %v4805_v39 = vpop.f32.mrb[57].mxu1  ;;  %v1018_v59 = vpop.f32.mrb[58].mxu0 }
 0x166   : > { %v7055_v61 = vadd.f32 %v1413_v62, %v1056_v15  ;;  %v1057_v8 = vadd.f32 %v1018_v59, %v6867_v26  ;;  %v1416_v7 = vpop.f32.mrb[58].mxu1  ;;  %v4768_v9 = vpop.f32.mrb[59].mxu0 }
 0x167   : > { %v4806_v44 = vpop.f32.mrb[59].mxu1  ;;  %v7949_v9 = vld [vmem:[#allocation24_spill] sm:$0xff] }
 0x168   : > { %v7058_v33 = vadd.f32 %v1416_v7, %v1057_v8  ;;  %4994 = vmatmul.mubr.msk.bf16.gmra.mrb[164].mxu0 %vm346_vm2, %v7945_v12  ;;  %v7950_v44 = vld [vmem:[#allocation23_spill] sm:$0xff]  ;;  %v7098_v12 = vld [vmem:[%s5521_s7 + $0x70] sm:$0xf] }
 0x169   : > { %5032 = vmatmul.mubr.msk.bf16.gmra.mrb[164].mxu1 %vm346_vm2, %v7946_v30  ;;  %4997 = vmatprep.mubr.msk.bf16.mxu0 %vm5426_vm1, %v7868_v54  ;;  %v7106_v30 = vld [vmem:[%s5521_s7 + $0xe8] sm:$0xf] }
 0x16a   : > { %5035 = vmatprep.mubr.msk.bf16.mxu1 %vm5426_vm1, %v7868_v54 }
 0x16b   : > { %v1023_v22 = vpop.f32.mrb[60].mxu0 }
 0x16c   : > { %v1058_v26 = vadd.f32 %v1023_v22, %v6906_v63  ;;  %v1421_v32 = vpop.f32.mrb[60].mxu1  ;;  %v4771_v27 = vpop.f32.mrb[61].mxu0 }
 0x16d   : > { %v4809_v1 = vpop.f32.mrb[61].mxu1  ;;  %v1026_v55 = vpop.f32.mrb[62].mxu0 }
 0x16e   : > { %v7069_v11 = vadd.f32 %v1421_v32, %v1058_v26  ;;  %v1059_v2 = vadd.f32 %v1026_v55, %v6909_v5  ;;  %v1424_v19 = vpop.f32.mrb[62].mxu1  ;;  %v4772_v25 = vpop.f32.mrb[63].mxu0 }
 0x16f   : > { %v4810_v57 = vpop.f32.mrb[63].mxu1 }
 0x170   : > { %v7072_v46 = vadd.f32 %v1424_v19, %v1059_v2  ;;  %4998 = vmatmul.mubr.msk.bf16.gmra.mrb[168].mxu0 %vm346_vm2, %v7947_v60 }
 0x171   : > { %5036 = vmatmul.mubr.msk.bf16.gmra.mrb[168].mxu1 %vm346_vm2, %v7948_v0  ;;  %5001 = vmatprep.mubr.msk.bf16.mxu0 %vm5426_vm1, %v7868_v54 }
 0x172   : > { %5039 = vmatprep.mubr.msk.bf16.mxu1 %vm5426_vm1, %v7868_v54 }
 0x173   : > { %v1031_v63 = vpop.f32.mrb[64].mxu0 }
 0x174   : > { %v1060_v5 = vadd.f32 %v1031_v63, %v6936_v53  ;;  %v1429_v18 = vpop.f32.mrb[64].mxu1  ;;  %v4775_v29 = vpop.f32.mrb[65].mxu0  ;;  %v7095_v53 = vld [vmem:[%s5521_s7 + $0x6c] sm:$0xf] }
 0x175   : > { %v4813_v4 = vpop.f32.mrb[65].mxu1  ;;  %v1034_v15 = vpop.f32.mrb[66].mxu0  ;;  %v4327_v1 = vcombine.low %v7095_v53, %v7098_v12 }
 0x176   : > { %v7083_v62 = vadd.f32 %v1429_v18, %v1060_v5  ;;  %v1061_v34 = vadd.f32 %v1034_v15, %v6938_v36  ;;  %v1432_v39 = vpop.f32.mrb[66].mxu1  ;;  %v4776_v59 = vpop.f32.mrb[67].mxu0  ;;  %v7103_v36 = vld [vmem:[%s5521_s7 + $0xe4] sm:$0xf]  ;;  %v4381_v15 = vld [vmem:[%s7778_s1 + $0x1a] sm:$0x3] }
 0x177   : > { %v4814_v8 = vpop.f32.mrb[67].mxu1  ;;  %v4338_v19 = vcombine.low %v7103_v36, %v7106_v30 }
 0x178   : > { %v7086_v7 = vadd.f32 %v1432_v39, %v1061_v34  ;;  %5002 = vmatmul.mubr.msk.bf16.gmra.mrb[172].mxu0 %vm346_vm2, %v7949_v9 }
 0x179   : > { %5040 = vmatmul.mubr.msk.bf16.gmra.mrb[172].mxu1 %vm346_vm2, %v7950_v44  ;;  %5005 = vmatprep.mubr.msk.bf16.mxu0 %vm5426_vm1, %v7868_v54 }
 0x17a   : > { %5043 = vmatprep.mubr.msk.bf16.mxu1 %vm5426_vm1, %v7868_v54 }
 0x17b   : > { %v1039_v22 = vpop.f32.mrb[68].mxu0 }
 0x17c   : > { %v1062_v26 = vadd.f32 %v1039_v22, %v6960_v31  ;;  %v1437_v32 = vpop.f32.mrb[68].mxu1  ;;  %v4779_v27 = vpop.f32.mrb[69].mxu0 }
 0x17d   : > { %v4817_v55 = vpop.f32.mrb[69].mxu1  ;;  %v1042_v2 = vpop.f32.mrb[70].mxu0  ;;  %v7951_v27 = vld [vmem:[#allocation28_spill] sm:$0xff] }
 0x17e   : > { %v7113_v25 = vadd.f32 %v1437_v32, %v1062_v26  ;;  %v1063_v57 = vadd.f32 %v1042_v2, %v6964_v47  ;;  %v1440_v60 = vpop.f32.mrb[70].mxu1  ;;  %v4780_v0 = vpop.f32.mrb[71].mxu0  ;;  %v4370_v47 = vld [vmem:[%s7778_s1 + $0x18] sm:$0x3]  ;;  %v3393_v32 = vsel %vm374_vm0, %v4381_v15, 0  ;;  %v7954_v15 = vld [vmem:[#allocation20_spill] sm:$0xff] }
 0x17f   : > { %v4818_v63 = vpop.f32.mrb[71].mxu1  ;;  %v3257_v22 = vsel %vm374_vm0, %v4370_v47, 0 }
 0x180   : > { %v7116_v5 = vadd.f32 %v1440_v60, %v1063_v57  ;;  %5006 = vmatmul.mubr.msk.bf16.gmra.mrb[176].mxu0 %vm346_vm2, %v4327_v1  ;;  %v7952_v1 = vld [vmem:[#allocation17_spill] sm:$0xff] }
 0x181   : > { %5044 = vmatmul.mubr.msk.bf16.gmra.mrb[176].mxu1 %vm346_vm2, %v4338_v19  ;;  %5049 = vmatprep.mubr.msk.bf16.mxu0 %vm5426_vm1, %v7868_v54 }
 0x182   : > { %5087 = vmatprep.mubr.msk.bf16.mxu1 %vm5426_vm1, %v7868_v54 }
 0x183   : > { %v1573_v31 = vpop.f32.mrb[72].mxu0 }
 0x184   : > { %v1644_v18 = vadd.f32 %v1573_v31, %v6981_v41  ;;  %v1773_v29 = vpop.f32.mrb[72].mxu1  ;;  %v4823_v4 = vpop.f32.mrb[73].mxu0 }
 0x185   : > { %v4861_v34 = vpop.f32.mrb[73].mxu1  ;;  %v1576_v39 = vpop.f32.mrb[74].mxu0  ;;  %v7953_v4 = vld [vmem:[#allocation31_spill] sm:$0xff] }
 0x186   : > { %v7131_v59 = vadd.f32 %v1773_v29, %v1644_v18  ;;  %v1645_v8 = vadd.f32 %v1576_v39, %v6986_v51  ;;  %v1776_v9 = vpop.f32.mrb[74].mxu1  ;;  %v4824_v44 = vpop.f32.mrb[75].mxu0 }
 0x187   : > { %v4862_v26 = vpop.f32.mrb[75].mxu1 }
 0x188   : > { %v7136_v41 = vadd.f32 %v1776_v9, %v1645_v8  ;;  %5050 = vmatmul.mubr.msk.bf16.vlgmr.msra.gmra.mrb[180].mxu0 %vm346_vm2, %v7951_v27 }
 0x189   : > { %5088 = vmatmul.mubr.msk.bf16.vlgmr.msra.gmra.mrb[180].mxu1 %vm346_vm2, %v7952_v1  ;;  %5124 = vmatpush3.bf16.msra.mxu0 %v3257_v22 }
 0x18a   : > { %5162 = vmatpush3.bf16.msra.mxu1 %v3393_v32  ;;  %5053 = vmatprep.mubr.msk.bf16.mxu0 %vm5426_vm1, %v7868_v54 }
 0x18b   : > { %v1581_v51 = vpop.f32.mrb[76].mxu0  ;;  %5091 = vmatprep.mubr.msk.bf16.mxu1 %vm5426_vm1, %v7868_v54  ;;  %5199 = vmatprep.subr.bf16.mxu0 %v7868_v54 }
 0x18c   : > { %v1646_v55 = vadd.f32 %v1581_v51, %v6999_v58  ;;  %v1781_v2 = vpop.f32.mrb[76].mxu1  ;;  %v4827_v19 = vpop.f32.mrb[77].mxu0  ;;  %5237 = vmatprep.subr.bf16.mxu1 %v7868_v54  ;;  %v7955_v51 = vld [vmem:[#allocation32_spill] sm:$0xff] }
 0x18d   : > { %v4865_v57 = vpop.f32.mrb[77].mxu1  ;;  %v1584_v60 = vpop.f32.mrb[78].mxu0 }
 0x18e   : > { %v7149_v0 = vadd.f32 %v1781_v2, %v1646_v55  ;;  %v1647_v63 = vadd.f32 %v1584_v60, %v7002_v48  ;;  %v1784_v31 = vpop.f32.mrb[78].mxu1  ;;  %v4828_v47 = vpop.f32.mrb[79].mxu0  ;;  %v7956_v55 = vld [vmem:[#allocation22_spill] sm:$0xff] }
 0x18f   : > { %v4866_v18 = vpop.f32.mrb[79].mxu1 }
 0x190   : > { %v7152_v29 = vadd.f32 %v1784_v31, %v1647_v63  ;;  %5054 = vmatmul.mubr.msk.bf16.gmra.mrb[184].mxu0 %vm346_vm2, %v7953_v4 }
 0x191   : > { %5092 = vmatmul.mubr.msk.bf16.gmra.mrb[184].mxu1 %vm346_vm2, %v7954_v15  ;;  %5057 = vmatprep.mubr.msk.bf16.mxu0 %vm5426_vm1, %v7868_v54 }
 0x192   : > { %5095 = vmatprep.mubr.msk.bf16.mxu1 %vm5426_vm1, %v7868_v54 }
 0x193   : > { %v1589_v58 = vpop.f32.mrb[80].mxu0 }
 0x194   : > { %v1648_v48 = vadd.f32 %v1589_v58, %v7013_v45  ;;  %v1789_v34 = vpop.f32.mrb[80].mxu1  ;;  %v4831_v39 = vpop.f32.mrb[81].mxu0  ;;  %v7957_v58 = vld [vmem:[#allocation33_spill] sm:$0xff] }
 0x195   : > { %v4869_v8 = vpop.f32.mrb[81].mxu1  ;;  %v1592_v9 = vpop.f32.mrb[82].mxu0 }
 0x196   : > { %v7163_v44 = vadd.f32 %v1789_v34, %v1648_v48  ;;  %v1649_v22 = vadd.f32 %v1592_v9, %v7016_v38  ;;  %v1792_v26 = vpop.f32.mrb[82].mxu1  ;;  %v4832_v32 = vpop.f32.mrb[83].mxu0  ;;  %v7958_v48 = vld [vmem:[#allocation25_spill] sm:$0xff] }
 0x197   : > { %v4870_v27 = vpop.f32.mrb[83].mxu1 }
 0x198   : > { %v7166_v1 = vadd.f32 %v1792_v26, %v1649_v22  ;;  %5058 = vmatmul.mubr.msk.bf16.gmra.mrb[188].mxu0 %vm346_vm2, %v7955_v51 }
 0x199   : > { %5096 = vmatmul.mubr.msk.bf16.gmra.mrb[188].mxu1 %vm346_vm2, %v7956_v55  ;;  %5061 = vmatprep.mubr.msk.bf16.mxu0 %vm5426_vm1, %v7868_v54 }
 0x19a   : > { %5099 = vmatprep.mubr.msk.bf16.mxu1 %vm5426_vm1, %v7868_v54 }
 0x19b   : > { %v1597_v45 = vpop.f32.mrb[84].mxu0 }
 0x19c   : > { %v1650_v38 = vadd.f32 %v1597_v45, %v7027_v28  ;;  %v1797_v2 = vpop.f32.mrb[84].mxu1  ;;  %v4835_v19 = vpop.f32.mrb[85].mxu0  ;;  %v7959_v45 = vld [vmem:[#allocation34_spill] sm:$0xff] }
 0x19d   : > { %v4873_v57 = vpop.f32.mrb[85].mxu1  ;;  %v1600_v60 = vpop.f32.mrb[86].mxu0 }
 0x19e   : > { %v7177_v63 = vadd.f32 %v1797_v2, %v1650_v38  ;;  %v1651_v31 = vadd.f32 %v1600_v60, %v7030_v20  ;;  %v1800_v47 = vpop.f32.mrb[86].mxu1  ;;  %v4836_v18 = vpop.f32.mrb[87].mxu0  ;;  %v7960_v38 = vld [vmem:[#allocation26_spill] sm:$0xff] }
 0x19f   : > { %v4874_v4 = vpop.f32.mrb[87].mxu1 }
 0x1a0   : > { %v7180_v15 = vadd.f32 %v1800_v47, %v1651_v31  ;;  %5062 = vmatmul.mubr.msk.bf16.gmra.mrb[192].mxu0 %vm346_vm2, %v7957_v58 }
 0x1a1   : > { %5100 = vmatmul.mubr.msk.bf16.gmra.mrb[192].mxu1 %vm346_vm2, %v7958_v48  ;;  %5065 = vmatprep.mubr.msk.bf16.mxu0 %vm5426_vm1, %v7868_v54  ;;  %v2931_v48 = vshrl.u32 %v7095_v53, 16 }
 0x1a2   : > { %5103 = vmatprep.mubr.msk.bf16.mxu1 %vm5426_vm1, %v7868_v54 }
 0x1a3   : > { %v1605_v28 = vpop.f32.mrb[88].mxu0 }
 0x1a4   : > { %v1652_v20 = vadd.f32 %v1605_v28, %v7041_v3  ;;  %v1805_v34 = vpop.f32.mrb[88].mxu1  ;;  %v4839_v39 = vpop.f32.mrb[89].mxu0  ;;  %v2934_v28 = vshll.u32 %v7095_v53, 16  ;;  %v3098_v53 = vshll.u32 %v7106_v30, 16 }
 0x1a5   : > { %v4877_v8 = vpop.f32.mrb[89].mxu1  ;;  %v1608_v9 = vpop.f32.mrb[90].mxu0  ;;  %v2944_v39 = vshrl.u32 %v7098_v12, 16 }
 0x1a6   : > { %v7191_v22 = vadd.f32 %v1805_v34, %v1652_v20  ;;  %v1653_v26 = vadd.f32 %v1608_v9, %v7044_v24  ;;  %v1808_v32 = vpop.f32.mrb[90].mxu1  ;;  %v4840_v27 = vpop.f32.mrb[91].mxu0  ;;  %v7961_v34 = vld [vmem:[#allocation21_spill] sm:$0xff]  ;;  %v3089_v8 = vshrl.u32 %v7103_v36, 16  ;;  %v7962_v9 = vld [vmem:[#allocation27_spill] sm:$0xff] }
 0x1a7   : > { %v4878_v51 = vpop.f32.mrb[91].mxu1  ;;  %v2933_v27 = vrot.slane %v2931_v48, 4  ;;  %v204_v48 = vld [vmem:[%s5521_s7 + $0x74] sm:$0x1] }
 0x1a8   : > { %v7194_v55 = vadd.f32 %v1808_v32, %v1653_v26  ;;  %5066 = vmatmul.mubr.msk.bf16.gmra.mrb[196].mxu0 %vm346_vm2, %v7959_v45  ;;  %v3102_v26 = vshrl.u32 %v7106_v30, 16 }
 0x1a9   : > { %5104 = vmatmul.mubr.msk.bf16.gmra.mrb[196].mxu1 %vm346_vm2, %v7960_v38  ;;  %5069 = vmatprep.mubr.msk.bf16.mxu0 %vm5426_vm1, %v7868_v54 }
 0x1aa   : > { %5107 = vmatprep.mubr.msk.bf16.mxu1 %vm5426_vm1, %v7868_v54  ;;  %v3104_v30 = vrot.slane %v3102_v26, 4 }
 0x1ab   : > { %v1613_v3 = vpop.f32.mrb[92].mxu0 }
 0x1ac   : > { %v1654_v24 = vadd.f32 %v1613_v3, %v7055_v61  ;;  %v1813_v2 = vpop.f32.mrb[92].mxu1  ;;  %v4843_v19 = vpop.f32.mrb[93].mxu0  ;;  %v2940_v61 = vshll.u32 %v7098_v12, 16  ;;  %v2936_v12 = vrot.slane %v2934_v28, 5  ;;  %v2946_v3 = vrot.slane %v2944_v39, 4 }
 0x1ad   : > { %v4881_v57 = vpop.f32.mrb[93].mxu1  ;;  %v1616_v60 = vpop.f32.mrb[94].mxu0 }
 0x1ae   : > { %v7205_v31 = vadd.f32 %v1813_v2, %v1654_v24  ;;  %v1655_v47 = vadd.f32 %v1616_v60, %v7058_v33  ;;  %v1816_v18 = vpop.f32.mrb[94].mxu1  ;;  %v4844_v4 = vpop.f32.mrb[95].mxu0  ;;  %v3092_v33 = vshll.u32 %v7103_v36, 16  ;;  %v2942_v38 = vrot.slane %v2940_v61, 5  ;;  %v7964_v61 = vld [vmem:[#allocation29_spill] sm:$0xff] }
 0x1af   : > { %v4882_v58 = vpop.f32.mrb[95].mxu1  ;;  %v3091_v24 = vrot.slane %v3089_v8, 4  ;;  %v3100_v60 = vrot.slane %v3098_v53, 5  ;;  %v2937_v39 = vor.u32 %v2936_v12, %v2933_v27 }
 0x1b0   : > { %v7210_v20 = vadd.f32 %v1816_v18, %v1655_v47  ;;  %5070 = vmatmul.mubr.msk.bf16.gmra.mrb[200].mxu0 %vm346_vm2, %v7961_v34  ;;  %v3094_v2 = vrot.slane %v3092_v33, 5  ;;  %v2947_v8 = vor.u32 %v2946_v3, %v2942_v38  ;;  %v2950_v33 = vshll.u32 %v204_v48, 16 }
 0x1b1   : > { %5108 = vmatmul.mubr.msk.bf16.gmra.mrb[200].mxu1 %vm346_vm2, %v7962_v9  ;;  %5073 = vmatprep.mubr.msk.bf16.mxu0 %vm5426_vm1, %v7868_v54  ;;  %v7963_v9 = vld [vmem:[#allocation35_spill] sm:$0xff]  ;;  %v3105_v53 = vor.u32 %v3104_v30, %v3100_v60 }
 0x1b2   : > { %5111 = vmatprep.mubr.msk.bf16.mxu1 %vm5426_vm1, %v7868_v54 }
 0x1b3   : > { %v1621_v32 = vpop.f32.mrb[96].mxu0 }
 0x1b4   : > { %v1656_v51 = vadd.f32 %v1621_v32, %v7069_v11  ;;  %v1821_v36 = vpop.f32.mrb[96].mxu1  ;;  %v4847_v45 = vpop.f32.mrb[97].mxu0  ;;  %v4114_v11 = vld [vmem:[%s5521_s7 + $0xec] sm:$0x1] }
 0x1b5   : > { %v4885_v19 = vpop.f32.mrb[97].mxu1  ;;  %v1624_v57 = vpop.f32.mrb[98].mxu0  ;;  %v3108_v26 = vshll.u32 %v4114_v11, 16 }
 0x1b6   : > { %v7227_v47 = vadd.f32 %v1821_v36, %v1656_v51  ;;  %v1657_v18 = vadd.f32 %v1624_v57, %v7072_v46  ;;  %v1824_v4 = vpop.f32.mrb[98].mxu1  ;;  %v4848_v58 = vpop.f32.mrb[99].mxu0  ;;  %v3095_v46 = vor.u32 %v3094_v2, %v3091_v24  ;;  %v3106_v2 = vrot.slane %v3105_v53, 4 }
 0x1b7   : > { %v4886_v28 = vpop.f32.mrb[99].mxu1  ;;  %v2952_v58 = vrot.slane %v2950_v33, 5  ;;  %v3110_v30 = vrot.slane %v3108_v26, 5 }
 0x1b8   : > { %v7232_v34 = vadd.f32 %v1824_v4, %v1657_v18  ;;  %5074 = vmatmul.mubr.msk.bf16.gmra.mrb[204].mxu0 %vm346_vm2, %v7963_v9  ;;  %v2938_v18 = vrot.slane %v2937_v39, 4  ;;  %v2948_v4 = vrot.slane %v2947_v8, 4  ;;  %v3096_v28 = vrot.slane %v3095_v46, 4  ;;  %v7966_v9 = vld [vmem:[#allocation30_spill] sm:$0xff] }
 0x1b9   : > { %5112 = vmatmul.mubr.msk.bf16.gmra.mrb[204].mxu1 %vm346_vm2, %v7964_v61  ;;  %5077 = vmatprep.mubr.msk.bf16.mxu0 %vm5426_vm1, %v7868_v54  ;;  %v3111_v8 = vsel %vm5543_vm5, %v3106_v2, %v3110_v30 }
 0x1ba   : > { %5115 = vmatprep.mubr.msk.bf16.mxu1 %vm5426_vm1, %v7868_v54  ;;  %v2943_v61 = vsel %vm5543_vm5, %v2938_v18, %v2942_v38  ;;  %v3101_v39 = vsel %vm5543_vm5, %v3096_v28, %v3100_v60 }
 0x1bb   : > { %v1629_v32 = vpop.f32.mrb[100].mxu0 }
 0x1bc   : > { %v1658_v51 = vadd.f32 %v1629_v32, %v7083_v62  ;;  %v1829_v36 = vpop.f32.mrb[100].mxu1  ;;  %v4851_v45 = vpop.f32.mrb[101].mxu0  ;;  %v7965_v62 = vld [vmem:[#allocation36_spill] sm:$0xff] }
 0x1bd   : > { %v4889_v19 = vpop.f32.mrb[101].mxu1  ;;  %v1632_v57 = vpop.f32.mrb[102].mxu0 }
 0x1be   : > { %v7243_v27 = vadd.f32 %v1829_v36, %v1658_v51  ;;  %v1659_v12 = vadd.f32 %v1632_v57, %v7086_v7  ;;  %v1832_v3 = vpop.f32.mrb[102].mxu1  ;;  %v4852_v24 = vpop.f32.mrb[103].mxu0  ;;  %v2953_v7 = vsel %vm5543_vm5, %v2948_v4, %v2952_v58  ;;  %v4360_v36 = vcombine.low %v3101_v39, %v3111_v8  ;;  %v7967_v8 = vld [vmem:[#allocation37_spill] sm:$0xff] }
 0x1bf   : > { %v4890_v48 = vpop.f32.mrb[103].mxu1  ;;  %v4349_v32 = vcombine.low %v2943_v61, %v2953_v7 }
 0x1c0   : > { %v7246_v11 = vadd.f32 %v1832_v3, %v1659_v12  ;;  %5078 = vmatmul.mubr.msk.bf16.gmra.mrb[208].mxu0 %vm346_vm2, %v7965_v62  ;;  %v4403_v3 = vld [vmem:[%s7778_s1 + $0x1e] sm:$0x3] }
 0x1c1   : > { %5116 = vmatmul.mubr.msk.bf16.gmra.mrb[208].mxu1 %vm346_vm2, %v7966_v9  ;;  %5081 = vmatprep.mubr.msk.bf16.mxu0 %vm5426_vm1, %v7868_v54  ;;  %v3709_v39 = vsel %vm374_vm0, %v4403_v3, 0 }
 0x1c2   : > { %5119 = vmatprep.mubr.msk.bf16.mxu1 %vm5426_vm1, %v7868_v54 }
 0x1c3   : > { %v1637_v33 = vpop.f32.mrb[104].mxu0 }
 0x1c4   : > { %v1660_v46 = vadd.f32 %v1637_v33, %v7113_v25  ;;  %v1837_v53 = vpop.f32.mrb[104].mxu1  ;;  %v4855_v26 = vpop.f32.mrb[105].mxu0  ;;  %v7968_v33 = vld [vmem:[#allocation38_spill] sm:$0xff] }
 0x1c5   : > { %v4893_v51 = vpop.f32.mrb[105].mxu1  ;;  %v1640_v38 = vpop.f32.mrb[106].mxu0 }
 0x1c6   : > { %v7265_v45 = vadd.f32 %v1837_v53, %v1660_v46  ;;  %v1661_v19 = vadd.f32 %v1640_v38, %v7116_v5  ;;  %v1840_v57 = vpop.f32.mrb[106].mxu1  ;;  %v4856_v18 = vpop.f32.mrb[107].mxu0  ;;  %v4392_v5 = vld [vmem:[%s7778_s1 + $0x1c] sm:$0x3] }
 0x1c7   : > { %v4894_v4 = vpop.f32.mrb[107].mxu1  ;;  %v3551_v61 = vsel %vm374_vm0, %v4392_v5, 0  ;;  %v7970_v5 = vld [vmem:[#allocation40_spill] sm:$0xff] }
 0x1c8   : > { %v7268_v60 = vadd.f32 %v1840_v57, %v1661_v19  ;;  %5082 = vmatmul.mubr.msk.bf16.gmra.mrb[212].mxu0 %vm346_vm2, %v4349_v32 }
 0x1c9   : > { %5120 = vmatmul.mubr.msk.bf16.gmra.mrb[212].mxu1 %vm346_vm2, %v4360_v36  ;;  %5125 = vmatprep.mubr.msk.bf16.mxu0 %vm5426_vm1, %v7868_v54 }
 0x1ca   : > { %5163 = vmatprep.mubr.msk.bf16.mxu1 %vm5426_vm1, %v7868_v54 }
 0x1cb   : > { %v2171_v25 = vpop.f32.mrb[108].mxu0 }
 0x1cc   : > { %v2242_v58 = vadd.f32 %v2171_v25, %v7131_v59  ;;  %v2569_v28 = vpop.f32.mrb[108].mxu1  ;;  %v4899_v12 = vpop.f32.mrb[109].mxu0  ;;  %v7969_v25 = vld [vmem:[#allocation39_spill] sm:$0xff] }
 0x1cd   : > { %v4937_v24 = vpop.f32.mrb[109].mxu1  ;;  %v2174_v2 = vpop.f32.mrb[110].mxu0 }
 0x1ce   : > { %v7283_v30 = vadd.f32 %v2569_v28, %v2242_v58  ;;  %v2243_v48 = vadd.f32 %v2174_v2, %v7136_v41  ;;  %v2572_v62 = vpop.f32.mrb[110].mxu1  ;;  %v4900_v9 = vpop.f32.mrb[111].mxu0 }
 0x1cf   : > { %v4938_v7 = vpop.f32.mrb[111].mxu1 }
 0x1d0   : > { %v7288_v59 = vadd.f32 %v2572_v62, %v2243_v48  ;;  %5126 = vmatmul.mubr.msk.bf16.vlgmr.msra.gmra.mrb[216].mxu0 %vm346_vm2, %v7967_v8  ;;  %v7971_v7 = vld [vmem:[#allocation41_spill] sm:$0xff] }
 0x1d1   : > { %5164 = vmatmul.mubr.msk.bf16.vlgmr.msra.gmra.mrb[216].mxu1 %vm346_vm2, %v7968_v33  ;;  %5200 = vmatpush3.bf16.msra.mxu0 %v3551_v61 }
 0x1d2   : > { %5238 = vmatpush3.bf16.msra.mxu1 %v3709_v39  ;;  %5129 = vmatprep.mubr.msk.bf16.mxu0 %vm5426_vm1, %v7868_v54  ;;  %v7972_v39 = vld [vmem:[#allocation42_spill] sm:$0xff] }
 0x1d3   : > { %v2179_v41 = vpop.f32.mrb[112].mxu0  ;;  %5167 = vmatprep.mubr.msk.bf16.mxu1 %vm5426_vm1, %v7868_v54 }
 0x1d4   : > { %v2244_v46 = vadd.f32 %v2179_v41, %v7149_v0  ;;  %v2577_v53 = vpop.f32.mrb[112].mxu1  ;;  %v4903_v26 = vpop.f32.mrb[113].mxu0 }
 0x1d5   : > { %v4941_v32 = vpop.f32.mrb[113].mxu1  ;;  %v2182_v51 = vpop.f32.mrb[114].mxu0 }
 0x1d6   : > { %v7299_v38 = vadd.f32 %v2577_v53, %v2244_v46  ;;  %v2245_v36 = vadd.f32 %v2182_v51, %v7152_v29  ;;  %v2580_v19 = vpop.f32.mrb[114].mxu1  ;;  %v4904_v57 = vpop.f32.mrb[115].mxu0 }
 0x1d7   : > { %v4942_v18 = vpop.f32.mrb[115].mxu1  ;;  %v7973_v57 = vld [vmem:[#allocation43_spill] sm:$0xff] }
 0x1d8   : > { %v7302_v4 = vadd.f32 %v2580_v19, %v2245_v36  ;;  %5130 = vmatmul.mubr.msk.bf16.gmra.mrb[220].mxu0 %vm346_vm2, %v7969_v25  ;;  %v7974_v18 = vld [vmem:[#allocation44_spill] sm:$0xff] }
 0x1d9   : > { %5168 = vmatmul.mubr.msk.bf16.gmra.mrb[220].mxu1 %vm346_vm2, %v7970_v5  ;;  %5133 = vmatprep.mubr.msk.bf16.mxu0 %vm5426_vm1, %v7868_v54 }
 0x1da   : > { %5171 = vmatprep.mubr.msk.bf16.mxu1 %vm5426_vm1, %v7868_v54 }
 0x1db   : > { %v2187_v0 = vpop.f32.mrb[116].mxu0 }
 0x1dc   : > { %v2246_v29 = vadd.f32 %v2187_v0, %v7163_v44  ;;  %v2585_v58 = vpop.f32.mrb[116].mxu1  ;;  %v4907_v28 = vpop.f32.mrb[117].mxu0 }
 0x1dd   : > { %v4945_v12 = vpop.f32.mrb[117].mxu1  ;;  %v2190_v3 = vpop.f32.mrb[118].mxu0 }
 0x1de   : > { %v7313_v24 = vadd.f32 %v2585_v58, %v2246_v29  ;;  %v2247_v2 = vadd.f32 %v2190_v3, %v7166_v1  ;;  %v2588_v48 = vpop.f32.mrb[118].mxu1  ;;  %v4908_v62 = vpop.f32.mrb[119].mxu0 }
 0x1df   : > { %v4946_v9 = vpop.f32.mrb[119].mxu1  ;;  %v7975_v62 = vld [vmem:[#allocation45_spill] sm:$0xff] }
 0x1e0   : > { %v7316_v61 = vadd.f32 %v2588_v48, %v2247_v2  ;;  %5134 = vmatmul.mubr.msk.bf16.gmra.mrb[224].mxu0 %vm346_vm2, %v7971_v7  ;;  %v7976_v9 = vld [vmem:[#allocation46_spill] sm:$0xff] }
 0x1e1   : > { %5172 = vmatmul.mubr.msk.bf16.gmra.mrb[224].mxu1 %vm346_vm2, %v7972_v39  ;;  %5137 = vmatprep.mubr.msk.bf16.mxu0 %vm5426_vm1, %v7868_v54 }
 0x1e2   : > { %5175 = vmatprep.mubr.msk.bf16.mxu1 %vm5426_vm1, %v7868_v54 }
 0x1e3   : > { %v2195_v44 = vpop.f32.mrb[120].mxu0 }
 0x1e4   : > { %v2248_v1 = vadd.f32 %v2195_v44, %v7177_v63  ;;  %v2593_v8 = vpop.f32.mrb[120].mxu1  ;;  %v4911_v33 = vpop.f32.mrb[121].mxu0 }
 0x1e5   : > { %v4949_v41 = vpop.f32.mrb[121].mxu1  ;;  %v2198_v46 = vpop.f32.mrb[122].mxu0 }
 0x1e6   : > { %v7327_v53 = vadd.f32 %v2593_v8, %v2248_v1  ;;  %v2249_v26 = vadd.f32 %v2198_v46, %v7180_v15  ;;  %v2596_v32 = vpop.f32.mrb[122].mxu1  ;;  %v4912_v51 = vpop.f32.mrb[123].mxu0 }
 0x1e7   : > { %v4950_v36 = vpop.f32.mrb[123].mxu1  ;;  %v7977_v51 = vld [vmem:[#allocation48_spill] sm:$0xff] }
 0x1e8   : > { %v7330_v19 = vadd.f32 %v2596_v32, %v2249_v26  ;;  %5138 = vmatmul.mubr.msk.bf16.gmra.mrb[228].mxu0 %vm346_vm2, %v7973_v57  ;;  %v7978_v36 = vld [vmem:[#allocation49_spill] sm:$0xff] }
 0x1e9   : > { %5176 = vmatmul.mubr.msk.bf16.gmra.mrb[228].mxu1 %vm346_vm2, %v7974_v18  ;;  %5141 = vmatprep.mubr.msk.bf16.mxu0 %vm5426_vm1, %v7868_v54 }
 0x1ea   : > { %5179 = vmatprep.mubr.msk.bf16.mxu1 %vm5426_vm1, %v7868_v54 }
 0x1eb   : > { %v2203_v63 = vpop.f32.mrb[124].mxu0 }
 0x1ec   : > { %v2250_v15 = vadd.f32 %v2203_v63, %v7191_v22  ;;  %v2601_v25 = vpop.f32.mrb[124].mxu1  ;;  %v4915_v5 = vpop.f32.mrb[125].mxu0 }
 0x1ed   : > { %v4953_v0 = vpop.f32.mrb[125].mxu1  ;;  %v2206_v29 = vpop.f32.mrb[126].mxu0 }
 0x1ee   : > { %v7341_v58 = vadd.f32 %v2601_v25, %v2250_v15  ;;  %v2251_v28 = vadd.f32 %v2206_v29, %v7194_v55  ;;  %v2604_v12 = vpop.f32.mrb[126].mxu1  ;;  %v4916_v3 = vpop.f32.mrb[127].mxu0 }
 0x1ef   : > { %v4954_v2 = vpop.f32.mrb[127].mxu1  ;;  %v7979_v3 = vld [vmem:[#allocation54_spill] sm:$0xff] }
 0x1f0   : > { %v7344_v48 = vadd.f32 %v2604_v12, %v2251_v28  ;;  %5142 = vmatmul.mubr.msk.bf16.gmra.mrb[232].mxu0 %vm346_vm2, %v7975_v62  ;;  %v7980_v2 = vld [vmem:[#allocation55_spill] sm:$0xff] }
 0x1f1   : > { %5180 = vmatmul.mubr.msk.bf16.gmra.mrb[232].mxu1 %vm346_vm2, %v7976_v9  ;;  %5145 = vmatprep.mubr.msk.bf16.mxu0 %vm5426_vm1, %v7868_v54 }
 0x1f2   : > { %5183 = vmatprep.mubr.msk.bf16.mxu1 %vm5426_vm1, %v7868_v54 }
 0x1f3   : > { %v2211_v22 = vpop.f32.mrb[128].mxu0 }
 0x1f4   : > { %v2252_v55 = vadd.f32 %v2211_v22, %v7205_v31  ;;  %v2609_v7 = vpop.f32.mrb[128].mxu1  ;;  %v4919_v39 = vpop.f32.mrb[129].mxu0 }
 0x1f5   : > { %v4957_v44 = vpop.f32.mrb[129].mxu1  ;;  %v2214_v1 = vpop.f32.mrb[130].mxu0 }
 0x1f6   : > { %v7355_v8 = vadd.f32 %v2609_v7, %v2252_v55  ;;  %v2253_v33 = vadd.f32 %v2214_v1, %v7210_v20  ;;  %v2612_v41 = vpop.f32.mrb[130].mxu1  ;;  %v4920_v46 = vpop.f32.mrb[131].mxu0 }
 0x1f7   : > { %v4958_v26 = vpop.f32.mrb[131].mxu1  ;;  %v7981_v46 = vld [vmem:[#allocation60_spill] sm:$0xff] }
 0x1f8   : > { %v7358_v32 = vadd.f32 %v2612_v41, %v2253_v33  ;;  %5146 = vmatmul.mubr.msk.bf16.gmra.mrb[236].mxu0 %vm346_vm2, %v7977_v51  ;;  %v7982_v26 = vld [vmem:[#allocation61_spill] sm:$0xff]  ;;  %v7398_v51 = vld [vmem:[%s5521_s7 + $0x160] sm:$0xf] }
 0x1f9   : > { %5184 = vmatmul.mubr.msk.bf16.gmra.mrb[236].mxu1 %vm346_vm2, %v7978_v36  ;;  %5149 = vmatprep.mubr.msk.bf16.mxu0 %vm5426_vm1, %v7868_v54  ;;  %v7406_v36 = vld [vmem:[%s5521_s7 + $0x1d8] sm:$0xf] }
 0x1fa   : > { %5187 = vmatprep.mubr.msk.bf16.mxu1 %vm5426_vm1, %v7868_v54 }
 0x1fb   : > { %v2219_v31 = vpop.f32.mrb[132].mxu0 }
 0x1fc   : > { %v2254_v20 = vadd.f32 %v2219_v31, %v7227_v47  ;;  %v2617_v57 = vpop.f32.mrb[132].mxu1  ;;  %v4923_v18 = vpop.f32.mrb[133].mxu0 }
 0x1fd   : > { %v4961_v63 = vpop.f32.mrb[133].mxu1  ;;  %v2222_v15 = vpop.f32.mrb[134].mxu0 }
 0x1fe   : > { %v7369_v25 = vadd.f32 %v2617_v57, %v2254_v20  ;;  %v2255_v5 = vadd.f32 %v2222_v15, %v7232_v34  ;;  %v2620_v0 = vpop.f32.mrb[134].mxu1  ;;  %v4924_v29 = vpop.f32.mrb[135].mxu0 }
 0x1ff   : > { %v4962_v28 = vpop.f32.mrb[135].mxu1 }
 0x200   : > { %v7372_v12 = vadd.f32 %v2620_v0, %v2255_v5  ;;  %5150 = vmatmul.mubr.msk.bf16.gmra.mrb[240].mxu0 %vm346_vm2, %v7979_v3 }
 0x201   : > { %5188 = vmatmul.mubr.msk.bf16.gmra.mrb[240].mxu1 %vm346_vm2, %v7980_v2  ;;  %5153 = vmatprep.mubr.msk.bf16.mxu0 %vm5426_vm1, %v7868_v54 }
 0x202   : > { %5191 = vmatprep.mubr.msk.bf16.mxu1 %vm5426_vm1, %v7868_v54 }
 0x203   : > { %v2227_v47 = vpop.f32.mrb[136].mxu0 }
 0x204   : > { %v2256_v34 = vadd.f32 %v2227_v47, %v7243_v27  ;;  %v2625_v62 = vpop.f32.mrb[136].mxu1  ;;  %v4927_v9 = vpop.f32.mrb[137].mxu0  ;;  %v7395_v27 = vld [vmem:[%s5521_s7 + $0x15c] sm:$0xf] }
 0x205   : > { %v4965_v22 = vpop.f32.mrb[137].mxu1  ;;  %v2230_v55 = vpop.f32.mrb[138].mxu0  ;;  %v4371_v63 = vcombine.low %v7395_v27, %v7398_v51 }
 0x206   : > { %v7383_v7 = vadd.f32 %v2625_v62, %v2256_v34  ;;  %v2257_v39 = vadd.f32 %v2230_v55, %v7246_v11  ;;  %v2628_v44 = vpop.f32.mrb[138].mxu1  ;;  %v4928_v1 = vpop.f32.mrb[139].mxu0  ;;  %v7403_v11 = vld [vmem:[%s5521_s7 + $0x1d4] sm:$0xf] }
 0x207   : > { %v4966_v33 = vpop.f32.mrb[139].mxu1  ;;  %v4382_v0 = vcombine.low %v7403_v11, %v7406_v36 }
 0x208   : > { %v7386_v41 = vadd.f32 %v2628_v44, %v2257_v39  ;;  %5154 = vmatmul.mubr.msk.bf16.gmra.mrb[244].mxu0 %vm346_vm2, %v7981_v46 }
 0x209   : > { %5192 = vmatmul.mubr.msk.bf16.gmra.mrb[244].mxu1 %vm346_vm2, %v7982_v26  ;;  %5157 = vmatprep.mubr.msk.bf16.mxu0 %vm5426_vm1, %v7868_v54 }
 0x20a   : > { %5195 = vmatprep.mubr.msk.bf16.mxu1 %vm5426_vm1, %v7868_v54 }
 0x20b   : > { %v2235_v31 = vpop.f32.mrb[140].mxu0 }
 0x20c   : > { %v2258_v20 = vadd.f32 %v2235_v31, %v7265_v45  ;;  %v2633_v57 = vpop.f32.mrb[140].mxu1  ;;  %v4931_v18 = vpop.f32.mrb[141].mxu0 }
 0x20d   : > { %v4969_v15 = vpop.f32.mrb[141].mxu1  ;;  %v2238_v5 = vpop.f32.mrb[142].mxu0 }
 0x20e   : > { %v7413_v29 = vadd.f32 %v2633_v57, %v2258_v20  ;;  %v2259_v28 = vadd.f32 %v2238_v5, %v7268_v60  ;;  %v2636_v3 = vpop.f32.mrb[142].mxu1  ;;  %v4932_v2 = vpop.f32.mrb[143].mxu0 }
 0x20f   : > { %v4970_v47 = vpop.f32.mrb[143].mxu1 }
 0x210   : > { %v7416_v34 = vadd.f32 %v2636_v3, %v2259_v28  ;;  %5158 = vmatmul.mubr.msk.bf16.gmra.mrb[248].mxu0 %vm346_vm2, %v4371_v63 }
 0x211   : > { %5196 = vmatmul.mubr.msk.bf16.gmra.mrb[248].mxu1 %vm346_vm2, %v4382_v0  ;;  %5201 = vmatprep.mubr.msk.bf16.mxu0 %vm5426_vm1, %v7868_v54 }
 0x212   : > { %5239 = vmatprep.mubr.msk.bf16.mxu1 %vm5426_vm1, %v7868_v54 }
 0x213   : > { %v2705_v45 = vpop.f32.mrb[144].mxu0 }
 0x214   : > { %v2776_v62 = vadd.f32 %v2705_v45, %v7283_v30  ;;  %v2841_v9 = vpop.f32.mrb[144].mxu1  ;;  %v4975_v60 = vpop.f32.mrb[145].mxu0 }
 0x215   : > { %v5013_v22 = vpop.f32.mrb[145].mxu1  ;;  %v2708_v55 = vpop.f32.mrb[146].mxu0 }
 0x216   : > { %v7425_v39 = vadd.f32 %v2841_v9, %v2776_v62  ;;  %v2777_v44 = vadd.f32 %v2708_v55, %v7288_v59  ;;  %v2844_v1 = vpop.f32.mrb[146].mxu1  ;;  %v4976_v33 = vpop.f32.mrb[147].mxu0 }
 0x217   : > { %v5014_v46 = vpop.f32.mrb[147].mxu1 }
 0x218   : > { %v7428_v26 = vadd.f32 %v2844_v1, %v2777_v44  ;;  %5202 = vmatmul.mubr.msk.bf16.vlgmr.msra.gmra.mrb[252].mxu0 %vm346_vm2, %v6645_v43 }
 0x219   : > { %5240 = vmatmul.mubr.msk.bf16.vlgmr.msra.gmra.mrb[252].mxu1 %vm346_vm2, %v6648_v21  ;;  %5205 = vmatprep.mubr.msk.bf16.mxu0 %vm5426_vm1, %v7868_v54 }
 0x21a   : > { %5243 = vmatprep.mubr.msk.bf16.mxu1 %vm5426_vm1, %v7868_v54 }
 0x21b   : > { %v2713_v30 = vpop.f32.mrb[148].mxu0 }
 0x21c   : > { %v2778_v59 = vadd.f32 %v2713_v30, %v7299_v38  ;;  %v2849_v31 = vpop.f32.mrb[148].mxu1  ;;  %v4979_v20 = vpop.f32.mrb[149].mxu0 }
 0x21d   : > { %v5017_v57 = vpop.f32.mrb[149].mxu1  ;;  %v2716_v18 = vpop.f32.mrb[150].mxu0 }
 0x21e   : > { %v7439_v63 = vadd.f32 %v2849_v31, %v2778_v59  ;;  %v2779_v43 = vadd.f32 %v2716_v18, %v7302_v4  ;;  %v2852_v15 = vpop.f32.mrb[150].mxu1  ;;  %v4980_v5 = vpop.f32.mrb[151].mxu0 }
 0x21f   : > { %v5018_v21 = vpop.f32.mrb[151].mxu1 }
 0x220   : > { %v7442_v0 = vadd.f32 %v2852_v15, %v2779_v43  ;;  %5206 = vmatmul.mubr.msk.bf16.gmra.mrb[0].mxu0 %vm346_vm2, %v6698_v14 }
 0x221   : > { %5244 = vmatmul.mubr.msk.bf16.gmra.mrb[0].mxu1 %vm346_vm2, %v6700_v42  ;;  %5209 = vmatprep.mubr.msk.bf16.mxu0 %vm5426_vm1, %v7868_v54 }
 0x222   : > { %5247 = vmatprep.mubr.msk.bf16.mxu1 %vm5426_vm1, %v7868_v54 }
 0x223   : > { %v2721_v38 = vpop.f32.mrb[152].mxu0 }
 0x224   : > { %v2780_v4 = vadd.f32 %v2721_v38, %v7313_v24  ;;  %v2857_v28 = vpop.f32.mrb[152].mxu1  ;;  %v4983_v3 = vpop.f32.mrb[153].mxu0 }
 0x225   : > { %v5021_v2 = vpop.f32.mrb[153].mxu1  ;;  %v2724_v47 = vpop.f32.mrb[154].mxu0 }
 0x226   : > { %v7453_v45 = vadd.f32 %v2857_v28, %v2780_v4  ;;  %v2781_v14 = vadd.f32 %v2724_v47, %v7316_v61  ;;  %v2860_v62 = vpop.f32.mrb[154].mxu1  ;;  %v4984_v9 = vpop.f32.mrb[155].mxu0 }
 0x227   : > { %v5022_v42 = vpop.f32.mrb[155].mxu1  ;;  %v3522_v9 = vshll.u32 %v7395_v27, 16 }
 0x228   : > { %v7456_v60 = vadd.f32 %v2860_v62, %v2781_v14  ;;  %5210 = vmatmul.mubr.msk.bf16.gmra.mrb[4].mxu0 %vm346_vm2, %v6751_v13  ;;  %v3519_v62 = vshrl.u32 %v7395_v27, 16  ;;  %v3686_v27 = vshll.u32 %v7406_v36, 16 }
 0x229   : > { %5248 = vmatmul.mubr.msk.bf16.gmra.mrb[4].mxu1 %vm346_vm2, %v6753_v49  ;;  %5213 = vmatprep.mubr.msk.bf16.mxu0 %vm5426_vm1, %v7868_v54 }
 0x22a   : > { %5251 = vmatprep.mubr.msk.bf16.mxu1 %vm5426_vm1, %v7868_v54 }
 0x22b   : > { %v2729_v24 = vpop.f32.mrb[156].mxu0 }
 0x22c   : > { %v2782_v61 = vadd.f32 %v2729_v24, %v7327_v53  ;;  %v2865_v22 = vpop.f32.mrb[156].mxu1  ;;  %v4987_v55 = vpop.f32.mrb[157].mxu0  ;;  %v3532_v24 = vshrl.u32 %v7398_v51, 16 }
 0x22d   : > { %v5025_v44 = vpop.f32.mrb[157].mxu1  ;;  %v2732_v1 = vpop.f32.mrb[158].mxu0  ;;  %v3521_v55 = vrot.slane %v3519_v62, 4 }
 0x22e   : > { %v7467_v33 = vadd.f32 %v2865_v22, %v2782_v61  ;;  %v2783_v13 = vadd.f32 %v2732_v1, %v7330_v19  ;;  %v2868_v46 = vpop.f32.mrb[158].mxu1  ;;  %v4988_v30 = vpop.f32.mrb[159].mxu0  ;;  %v3677_v61 = vshrl.u32 %v7403_v11, 16  ;;  %v3690_v22 = vshrl.u32 %v7406_v36, 16 }
 0x22f   : > { %v5026_v49 = vpop.f32.mrb[159].mxu1  ;;  %v3524_v44 = vrot.slane %v3522_v9, 5 }
 0x230   : > { %v7470_v59 = vadd.f32 %v2868_v46, %v2783_v13  ;;  %5214 = vmatmul.mubr.msk.bf16.gmra.mrb[8].mxu0 %vm346_vm2, %v6802_v17  ;;  %v3534_v46 = vrot.slane %v3532_v24, 4  ;;  %v3679_v30 = vrot.slane %v3677_v61, 4  ;;  %v3692_v36 = vrot.slane %v3690_v22, 4 }
 0x231   : > { %5252 = vmatmul.mubr.msk.bf16.gmra.mrb[8].mxu1 %vm346_vm2, %v6804_v16  ;;  %5217 = vmatprep.mubr.msk.bf16.mxu0 %vm5426_vm1, %v7868_v54 }
 0x232   : > { %5255 = vmatprep.mubr.msk.bf16.mxu1 %vm5426_vm1, %v7868_v54 }
 0x233   : > { %v2737_v53 = vpop.f32.mrb[160].mxu0 }
 0x234   : > { %v2784_v19 = vadd.f32 %v2737_v53, %v7341_v58  ;;  %v2873_v31 = vpop.f32.mrb[160].mxu1  ;;  %v4991_v20 = vpop.f32.mrb[161].mxu0 }
 0x235   : > { %v5029_v57 = vpop.f32.mrb[161].mxu1  ;;  %v2740_v18 = vpop.f32.mrb[162].mxu0  ;;  %v3688_v20 = vrot.slane %v3686_v27, 5 }
 0x236   : > { %v7481_v43 = vadd.f32 %v2873_v31, %v2784_v19  ;;  %v2785_v17 = vadd.f32 %v2740_v18, %v7344_v48  ;;  %v2876_v15 = vpop.f32.mrb[162].mxu1  ;;  %v4992_v5 = vpop.f32.mrb[163].mxu0  ;;  %v4174_v31 = vld [vmem:[%s5521_s7 + $0x1dc] sm:$0x1] }
 0x237   : > { %v5030_v16 = vpop.f32.mrb[163].mxu1 }
 0x238   : > { %v7484_v21 = vadd.f32 %v2876_v15, %v2785_v17  ;;  %5218 = vmatmul.mubr.msk.bf16.gmra.mrb[12].mxu0 %vm346_vm2, %v6855_v6 }
 0x239   : > { %5256 = vmatmul.mubr.msk.bf16.gmra.mrb[12].mxu1 %vm346_vm2, %v6857_v52  ;;  %5221 = vmatprep.mubr.msk.bf16.mxu0 %vm5426_vm1, %v7868_v54 }
 0x23a   : > { %5259 = vmatprep.mubr.msk.bf16.mxu1 %vm5426_vm1, %v7868_v54 }
 0x23b   : > { %v2745_v58 = vpop.f32.mrb[164].mxu0 }
 0x23c   : > { %v2786_v48 = vadd.f32 %v2745_v58, %v7355_v8  ;;  %v2881_v38 = vpop.f32.mrb[164].mxu1  ;;  %v4995_v4 = vpop.f32.mrb[165].mxu0  ;;  %v3528_v8 = vshll.u32 %v7398_v51, 16  ;;  %v4144_v51 = vld [vmem:[%s5521_s7 + $0x164] sm:$0x1] }
 0x23d   : > { %v5033_v28 = vpop.f32.mrb[165].mxu1  ;;  %v2748_v3 = vpop.f32.mrb[166].mxu0 }
 0x23e   : > { %v7495_v2 = vadd.f32 %v2881_v38, %v2786_v48  ;;  %v2787_v6 = vadd.f32 %v2748_v3, %v7358_v32  ;;  %v2884_v47 = vpop.f32.mrb[166].mxu1  ;;  %v4996_v14 = vpop.f32.mrb[167].mxu0  ;;  %v3680_v32 = vshll.u32 %v7403_v11, 16  ;;  %v3538_v48 = vshll.u32 %v4144_v51, 16 }
 0x23f   : > { %v5034_v52 = vpop.f32.mrb[167].mxu1  ;;  %v3696_v38 = vshll.u32 %v4174_v31, 16 }
 0x240   : > { %v7500_v42 = vadd.f32 %v2884_v47, %v2787_v6  ;;  %5222 = vmatmul.mubr.msk.bf16.gmra.mrb[16].mxu0 %vm346_vm2, %v6901_v10  ;;  %v3682_v49 = vrot.slane %v3680_v32, 5  ;;  %v3540_v52 = vrot.slane %v3538_v48, 5 }
 0x241   : > { %5260 = vmatmul.mubr.msk.bf16.gmra.mrb[16].mxu1 %vm346_vm2, %v6903_v40  ;;  %5225 = vmatprep.mubr.msk.bf16.mxu0 %vm5426_vm1, %v7868_v54  ;;  %v3530_v40 = vrot.slane %v3528_v8, 5  ;;  %v3698_v62 = vrot.slane %v3696_v38, 5 }
 0x242   : > { %5263 = vmatprep.mubr.msk.bf16.mxu1 %vm5426_vm1, %v7868_v54  ;;  %v3683_v4 = vor.u32 %v3682_v49, %v3679_v30 }
 0x243   : > { %v2753_v10 = vpop.f32.mrb[168].mxu0  ;;  %v3535_v58 = vor.u32 %v3534_v46, %v3530_v40 }
 0x244   : > { %v2788_v11 = vadd.f32 %v2753_v10, %v7369_v25  ;;  %v2889_v1 = vpop.f32.mrb[168].mxu1  ;;  %v4999_v13 = vpop.f32.mrb[169].mxu0  ;;  %v3525_v25 = vor.u32 %v3524_v44, %v3521_v55 }
 0x245   : > { %v5037_v53 = vpop.f32.mrb[169].mxu1  ;;  %v2756_v19 = vpop.f32.mrb[170].mxu0  ;;  %v3536_v14 = vrot.slane %v3535_v58, 4 }
 0x246   : > { %v7519_v57 = vadd.f32 %v2889_v1, %v2788_v11  ;;  %v2789_v18 = vadd.f32 %v2756_v19, %v7372_v12  ;;  %v2892_v17 = vpop.f32.mrb[170].mxu1  ;;  %v5000_v15 = vpop.f32.mrb[171].mxu0  ;;  %v3693_v12 = vor.u32 %v3692_v36, %v3688_v20  ;;  %v3526_v47 = vrot.slane %v3525_v25, 4 }
 0x247   : > { %v5038_v5 = vpop.f32.mrb[171].mxu1  ;;  %v3541_v55 = vsel %vm5543_vm5, %v3536_v14, %v3540_v52 }
 0x248   : > { %v7522_v16 = vadd.f32 %v2892_v17, %v2789_v18  ;;  %5226 = vmatmul.mubr.msk.bf16.gmra.mrb[20].mxu0 %vm346_vm2, %v6932_v37  ;;  %v3694_v24 = vrot.slane %v3693_v12, 4 }
 0x249   : > { %5264 = vmatmul.mubr.msk.bf16.gmra.mrb[20].mxu1 %vm346_vm2, %v6934_v56  ;;  %5229 = vmatprep.mubr.msk.bf16.mxu0 %vm5426_vm1, %v7868_v54  ;;  %v3684_v56 = vrot.slane %v3683_v4, 4 }
 0x24a   : > { %5267 = vmatprep.mubr.msk.bf16.mxu1 %vm5426_vm1, %v7868_v54  ;;  %v3699_v44 = vsel %vm5543_vm5, %v3694_v24, %v3698_v62 }
 0x24b   : > { %v2761_v28 = vpop.f32.mrb[172].mxu0 }
 0x24c   : > { %v2790_v3 = vadd.f32 %v2761_v28, %v7383_v7  ;;  %v2897_v6 = vpop.f32.mrb[172].mxu1  ;;  %v5003_v37 = vpop.f32.mrb[173].mxu0  ;;  %v3531_v7 = vsel %vm5543_vm5, %v3526_v47, %v3530_v40 }
 0x24d   : > { %v5041_v9 = vpop.f32.mrb[173].mxu1  ;;  %v2764_v8 = vpop.f32.mrb[174].mxu0  ;;  %v4393_v11 = vcombine.low %v3531_v7, %v3541_v55 }
 0x24e   : > { %v7533_v61 = vadd.f32 %v2897_v6, %v2790_v3  ;;  %v2791_v32 = vadd.f32 %v2764_v8, %v7386_v41  ;;  %v2900_v27 = vpop.f32.mrb[174].mxu1  ;;  %v5004_v22 = vpop.f32.mrb[175].mxu0  ;;  %v3689_v41 = vsel %vm5543_vm5, %v3684_v56, %v3688_v20 }
 0x24f   : > { %v5042_v10 = vpop.f32.mrb[175].mxu1  ;;  %v4404_v46 = vcombine.low %v3689_v41, %v3699_v44 }
 0x250   : > { %v7536_v51 = vadd.f32 %v2900_v27, %v2791_v32  ;;  %5230 = vmatmul.mubr.msk.bf16.gmra.mrb[24].mxu0 %vm346_vm2, %v6958_v50 }
 0x251   : > { %5268 = vmatmul.mubr.msk.bf16.gmra.mrb[24].mxu1 %vm346_vm2, %v6962_v35  ;;  %5233 = vmatprep.mubr.msk.bf16.mxu0 %vm5426_vm1, %v7868_v54 }
 0x252   : > { %5271 = vmatprep.mubr.msk.bf16.mxu1 %vm5426_vm1, %v7868_v54 }
 0x253   : > { %v2769_v50 = vpop.f32.mrb[176].mxu0 }
 0x254   : > { %v2792_v1 = vadd.f32 %v2769_v50, %v7413_v29  ;;  %v2905_v13 = vpop.f32.mrb[176].mxu1  ;;  %v5007_v40 = vpop.f32.mrb[177].mxu0 }
 0x255   : > { %v5045_v35 = vpop.f32.mrb[177].mxu1  ;;  %v2772_v30 = vpop.f32.mrb[178].mxu0 }
 0x256   : > { %v7555_v49 = vadd.f32 %v2905_v13, %v2792_v1  ;;  %v2793_v53 = vadd.f32 %v2772_v30, %v7416_v34  ;;  %v2908_v19 = vpop.f32.mrb[178].mxu1  ;;  %v5008_v31 = vpop.f32.mrb[179].mxu0 }
 0x257   : > { %v5046_v23 = vpop.f32.mrb[179].mxu1 }
 0x258   : > { %v7558_v20 = vadd.f32 %v2908_v19, %v2793_v53  ;;  %5234 = vmatmul.mubr.msk.bf16.gmra.mrb[28].mxu0 %vm346_vm2, %v4393_v11 }
 0x259   : > { %5272 = vmatmul.mubr.msk.bf16.gmra.mrb[28].mxu1 %vm346_vm2, %v4404_v46 }
 0x25b   : > { %v2999_v54 = vpop.f32.mrb[180].mxu0 }
 0x25c   : > { %v3070_v29 = vadd.f32 %v2999_v54, %v7425_v39  ;;  %v3157_v36 = vpop.f32.mrb[180].mxu1  ;;  %v5051_v18 = vpop.f32.mrb[181].mxu0 }
 0x25d   : > { %v5089_v17 = vpop.f32.mrb[181].mxu1  ;;  %v3002_v15 = vpop.f32.mrb[182].mxu0 }
 0x25e   : > { %v7563_v5 = vadd.f32 %v3157_v36, %v3070_v29  ;;  %v3071_v34 = vadd.f32 %v3002_v15, %v7428_v26  ;;  %v3160_v25 = vpop.f32.mrb[182].mxu1  ;;  %v5052_v58 = vpop.f32.mrb[183].mxu0 }
 0x25f   : > { %v5090_v48 = vpop.f32.mrb[183].mxu1 }
 0x260   : > { %v7566_v38 = vadd.f32 %v3160_v25, %v3071_v34 }
 0x263   : > { %v3007_v4 = vpop.f32.mrb[184].mxu0 }
 0x264   : > { %v3072_v12 = vadd.f32 %v3007_v4, %v7439_v63  ;;  %v3165_v28 = vpop.f32.mrb[184].mxu1  ;;  %v5055_v3 = vpop.f32.mrb[185].mxu0 }
 0x265   : > { %v5093_v6 = vpop.f32.mrb[185].mxu1  ;;  %v3010_v39 = vpop.f32.mrb[186].mxu0 }
 0x266   : > { %v7569_v37 = vadd.f32 %v3165_v28, %v3072_v12  ;;  %v3073_v47 = vadd.f32 %v3010_v39, %v7442_v0  ;;  %v3168_v14 = vpop.f32.mrb[186].mxu1  ;;  %v5056_v52 = vpop.f32.mrb[187].mxu0 }
 0x267   : > { %v5094_v62 = vpop.f32.mrb[187].mxu1 }
 0x268   : > { %v7572_v26 = vadd.f32 %v3168_v14, %v3073_v47 }
 0x26b   : > { %v3015_v9 = vpop.f32.mrb[188].mxu0 }
 0x26c   : > { %v3074_v8 = vadd.f32 %v3015_v9, %v7453_v45  ;;  %v3173_v56 = vpop.f32.mrb[188].mxu1  ;;  %v5059_v24 = vpop.f32.mrb[189].mxu0 }
 0x26d   : > { %v5097_v32 = vpop.f32.mrb[189].mxu1  ;;  %v3018_v63 = vpop.f32.mrb[190].mxu0 }
 0x26e   : > { %v7575_v27 = vadd.f32 %v3173_v56, %v3074_v8  ;;  %v3075_v22 = vadd.f32 %v3018_v63, %v7456_v60  ;;  %v3176_v10 = vpop.f32.mrb[190].mxu1  ;;  %v5060_v7 = vpop.f32.mrb[191].mxu0 }
 0x26f   : > { %v5098_v55 = vpop.f32.mrb[191].mxu1 }
 0x270   : > { %v7578_v0 = vadd.f32 %v3176_v10, %v3075_v22 }
 0x273   : > { %v3023_v41 = vpop.f32.mrb[192].mxu0 }
 0x274   : > { %v3076_v44 = vadd.f32 %v3023_v41, %v7467_v33  ;;  %v3181_v50 = vpop.f32.mrb[192].mxu1  ;;  %v5063_v11 = vpop.f32.mrb[193].mxu0 }
 0x275   : > { %v5101_v1 = vpop.f32.mrb[193].mxu1  ;;  %v3026_v45 = vpop.f32.mrb[194].mxu0 }
 0x276   : > { %v7581_v13 = vadd.f32 %v3181_v50, %v3076_v44  ;;  %v3077_v40 = vadd.f32 %v3026_v45, %v7470_v59  ;;  %v3184_v46 = vpop.f32.mrb[194].mxu1  ;;  %v5064_v35 = vpop.f32.mrb[195].mxu0 }
 0x277   : > { %v5102_v30 = vpop.f32.mrb[195].mxu1 }
 0x278   : > { %v7584_v60 = vadd.f32 %v3184_v46, %v3077_v40 }
 0x27b   : > { %v3031_v53 = vpop.f32.mrb[196].mxu0 }
 0x27c   : > { %v3078_v19 = vadd.f32 %v3031_v53, %v7481_v43  ;;  %v3189_v31 = vpop.f32.mrb[196].mxu1  ;;  %v5067_v23 = vpop.f32.mrb[197].mxu0 }
 0x27d   : > { %v5105_v54 = vpop.f32.mrb[197].mxu1  ;;  %v3034_v33 = vpop.f32.mrb[198].mxu0 }
 0x27e   : > { %v7587_v29 = vadd.f32 %v3189_v31, %v3078_v19  ;;  %v3079_v36 = vadd.f32 %v3034_v33, %v7484_v21  ;;  %v3192_v18 = vpop.f32.mrb[198].mxu1  ;;  %v5068_v17 = vpop.f32.mrb[199].mxu0 }
 0x27f   : > { %v5106_v15 = vpop.f32.mrb[199].mxu1 }
 0x280   : > { %v7590_v59 = vadd.f32 %v3192_v18, %v3079_v36 }
 0x283   : > { %v3039_v34 = vpop.f32.mrb[200].mxu0 }
 0x284   : > { %v3080_v25 = vadd.f32 %v3039_v34, %v7495_v2  ;;  %v3197_v58 = vpop.f32.mrb[200].mxu1  ;;  %v5071_v48 = vpop.f32.mrb[201].mxu0 }
 0x285   : > { %v5109_v4 = vpop.f32.mrb[201].mxu1  ;;  %v3042_v43 = vpop.f32.mrb[202].mxu0 }
 0x286   : > { %v7593_v12 = vadd.f32 %v3197_v58, %v3080_v25  ;;  %v3081_v28 = vadd.f32 %v3042_v43, %v7500_v42  ;;  %v3200_v3 = vpop.f32.mrb[202].mxu1  ;;  %v5072_v6 = vpop.f32.mrb[203].mxu0 }
 0x287   : > { %v5110_v39 = vpop.f32.mrb[203].mxu1 }
 0x288   : > { %v7596_v21 = vadd.f32 %v3200_v3, %v3081_v28 }
 0x28b   : > { %v3047_v47 = vpop.f32.mrb[204].mxu0 }
 0x28c   : > { %v3082_v14 = vadd.f32 %v3047_v47, %v7519_v57  ;;  %v3205_v52 = vpop.f32.mrb[204].mxu1  ;;  %v5075_v62 = vpop.f32.mrb[205].mxu0 }
 0x28d   : > { %v5113_v9 = vpop.f32.mrb[205].mxu1  ;;  %v3050_v2 = vpop.f32.mrb[206].mxu0 }
 0x28e   : > { %v7599_v8 = vadd.f32 %v3205_v52, %v3082_v14  ;;  %v3083_v56 = vadd.f32 %v3050_v2, %v7522_v16  ;;  %v3208_v24 = vpop.f32.mrb[206].mxu1  ;;  %v5076_v32 = vpop.f32.mrb[207].mxu0 }
 0x28f   : > { %v5114_v63 = vpop.f32.mrb[207].mxu1 }
 0x290   : > { %v7602_v42 = vadd.f32 %v3208_v24, %v3083_v56 }
 0x293   : > { %v3055_v22 = vpop.f32.mrb[208].mxu0 }
 0x294   : > { %v3084_v10 = vadd.f32 %v3055_v22, %v7533_v61  ;;  %v3213_v7 = vpop.f32.mrb[208].mxu1  ;;  %v5079_v55 = vpop.f32.mrb[209].mxu0 }
 0x295   : > { %v5117_v41 = vpop.f32.mrb[209].mxu1  ;;  %v3058_v57 = vpop.f32.mrb[210].mxu0 }
 0x296   : > { %v7605_v44 = vadd.f32 %v3213_v7, %v3084_v10  ;;  %v3085_v50 = vadd.f32 %v3058_v57, %v7536_v51  ;;  %v3216_v11 = vpop.f32.mrb[210].mxu1  ;;  %v5080_v1 = vpop.f32.mrb[211].mxu0 }
 0x297   : > { %v5118_v45 = vpop.f32.mrb[211].mxu1 }
 0x298   : > { %v7608_v16 = vadd.f32 %v3216_v11, %v3085_v50 }
 0x29b   : > { %v3063_v40 = vpop.f32.mrb[212].mxu0 }
 0x29c   : > { %v3086_v46 = vadd.f32 %v3063_v40, %v7555_v49  ;;  %v3221_v35 = vpop.f32.mrb[212].mxu1  ;;  %v5083_v30 = vpop.f32.mrb[213].mxu0 }
 0x29d   : > { %v5121_v53 = vpop.f32.mrb[213].mxu1  ;;  %v3066_v61 = vpop.f32.mrb[214].mxu0 }
 0x29e   : > { %v7611_v19 = vadd.f32 %v3221_v35, %v3086_v46  ;;  %v3087_v31 = vadd.f32 %v3066_v61, %v7558_v20  ;;  %v3224_v23 = vpop.f32.mrb[214].mxu1  ;;  %v5084_v54 = vpop.f32.mrb[215].mxu0 }
 0x29f   : > { %v5122_v33 = vpop.f32.mrb[215].mxu1 }
 0x2a0   : > { %v7614_v51 = vadd.f32 %v3224_v23, %v3087_v31 }
 0x2a3   : > { %v3293_v36 = vpop.f32.mrb[216].mxu0 }
 0x2a4   : > { %v3364_v18 = vadd.f32 %v3293_v36, %v7563_v5  ;;  %v3429_v17 = vpop.f32.mrb[216].mxu1  ;;  %v5127_v15 = vpop.f32.mrb[217].mxu0 }
 0x2a5   : > { %v5165_v34 = vpop.f32.mrb[217].mxu1  ;;  %v3296_v49 = vpop.f32.mrb[218].mxu0 }
 0x2a6   : > { %v7617_v25 = vadd.f32 %v3429_v17, %v3364_v18  ;;  %v3365_v58 = vadd.f32 %v3296_v49, %v7566_v38  ;;  %v3432_v48 = vpop.f32.mrb[218].mxu1  ;;  %v5128_v4 = vpop.f32.mrb[219].mxu0 }
 0x2a7   : > { %v5166_v43 = vpop.f32.mrb[219].mxu1 }
 0x2a8   : > { %v7620_v20 = vadd.f32 %v3432_v48, %v3365_v58 }
 0x2ab   : > { %v3301_v28 = vpop.f32.mrb[220].mxu0 }
 0x2ac   : > { %v3366_v3 = vadd.f32 %v3301_v28, %v7569_v37  ;;  %v3437_v6 = vpop.f32.mrb[220].mxu1  ;;  %v5131_v39 = vpop.f32.mrb[221].mxu0 }
 0x2ad   : > { %v5169_v47 = vpop.f32.mrb[221].mxu1  ;;  %v3304_v5 = vpop.f32.mrb[222].mxu0 }
 0x2ae   : > { %v7623_v14 = vadd.f32 %v3437_v6, %v3366_v3  ;;  %v3367_v52 = vadd.f32 %v3304_v5, %v7572_v26  ;;  %v3440_v62 = vpop.f32.mrb[222].mxu1  ;;  %v5132_v9 = vpop.f32.mrb[223].mxu0 }
 0x2af   : > { %v5170_v2 = vpop.f32.mrb[223].mxu1 }
 0x2b0   : > { %v7626_v38 = vadd.f32 %v3440_v62, %v3367_v52 }
 0x2b3   : > { %v3309_v56 = vpop.f32.mrb[224].mxu0 }
 0x2b4   : > { %v3368_v24 = vadd.f32 %v3309_v56, %v7575_v27  ;;  %v3445_v32 = vpop.f32.mrb[224].mxu1  ;;  %v5135_v63 = vpop.f32.mrb[225].mxu0 }
 0x2b5   : > { %v5173_v22 = vpop.f32.mrb[225].mxu1  ;;  %v3312_v37 = vpop.f32.mrb[226].mxu0 }
 0x2b6   : > { %v7629_v10 = vadd.f32 %v3445_v32, %v3368_v24  ;;  %v3369_v7 = vadd.f32 %v3312_v37, %v7578_v0  ;;  %v3448_v55 = vpop.f32.mrb[226].mxu1  ;;  %v5136_v41 = vpop.f32.mrb[227].mxu0 }
 0x2b7   : > { %v5174_v57 = vpop.f32.mrb[227].mxu1 }
 0x2b8   : > { %v7632_v26 = vadd.f32 %v3448_v55, %v3369_v7 }
 0x2bb   : > { %v3317_v50 = vpop.f32.mrb[228].mxu0 }
 0x2bc   : > { %v3370_v11 = vadd.f32 %v3317_v50, %v7581_v13  ;;  %v3453_v1 = vpop.f32.mrb[228].mxu1  ;;  %v5139_v45 = vpop.f32.mrb[229].mxu0 }
 0x2bd   : > { %v5177_v40 = vpop.f32.mrb[229].mxu1  ;;  %v3320_v27 = vpop.f32.mrb[230].mxu0 }
 0x2be   : > { %v7635_v46 = vadd.f32 %v3453_v1, %v3370_v11  ;;  %v3371_v35 = vadd.f32 %v3320_v27, %v7584_v60  ;;  %v3456_v30 = vpop.f32.mrb[230].mxu1  ;;  %v5140_v53 = vpop.f32.mrb[231].mxu0 }
 0x2bf   : > { %v5178_v61 = vpop.f32.mrb[231].mxu1 }
 0x2c0   : > { %v7638_v0 = vadd.f32 %v3456_v30, %v3371_v35 }
 0x2c3   : > { %v3325_v31 = vpop.f32.mrb[232].mxu0 }
 0x2c4   : > { %v3372_v23 = vadd.f32 %v3325_v31, %v7587_v29  ;;  %v3461_v54 = vpop.f32.mrb[232].mxu1  ;;  %v5143_v33 = vpop.f32.mrb[233].mxu0 }
 0x2c5   : > { %v5181_v36 = vpop.f32.mrb[233].mxu1  ;;  %v3328_v13 = vpop.f32.mrb[234].mxu0 }
 0x2c6   : > { %v7641_v18 = vadd.f32 %v3461_v54, %v3372_v23  ;;  %v3373_v17 = vadd.f32 %v3328_v13, %v7590_v59  ;;  %v3464_v15 = vpop.f32.mrb[234].mxu1  ;;  %v5144_v34 = vpop.f32.mrb[235].mxu0 }
 0x2c7   : > { %v5182_v49 = vpop.f32.mrb[235].mxu1 }
 0x2c8   : > { %v7644_v60 = vadd.f32 %v3464_v15, %v3373_v17  ;;  %v7674_v49 = vld [vmem:[%s7779_s2] ss:$0 sm:$0xff] }
 0x2cb   : > { %v3333_v58 = vpop.f32.mrb[236].mxu0 }
 0x2cc   : > { %v3374_v48 = vadd.f32 %v3333_v58, %v7593_v12  ;;  %v3469_v4 = vpop.f32.mrb[236].mxu1  ;;  %v5147_v43 = vpop.f32.mrb[237].mxu0 }
 0x2cd   : > { %v5185_v28 = vpop.f32.mrb[237].mxu1  ;;  %v3336_v29 = vpop.f32.mrb[238].mxu0 }
 0x2ce   : > { %v7647_v3 = vadd.f32 %v3469_v4, %v3374_v48  ;;  %v3375_v6 = vadd.f32 %v3336_v29, %v7596_v21  ;;  %v3472_v39 = vpop.f32.mrb[238].mxu1  ;;  %v5148_v47 = vpop.f32.mrb[239].mxu0 }
 0x2cf   : > { %v5186_v5 = vpop.f32.mrb[239].mxu1 }
 0x2d0   : > { %v7650_v59 = vadd.f32 %v3472_v39, %v3375_v6 }
 0x2d3   : > { %v3341_v52 = vpop.f32.mrb[240].mxu0 }
 0x2d4   : > { %v3376_v62 = vadd.f32 %v3341_v52, %v7599_v8  ;;  %v3477_v9 = vpop.f32.mrb[240].mxu1  ;;  %v5151_v2 = vpop.f32.mrb[241].mxu0 }
 0x2d5   : > { %v5189_v56 = vpop.f32.mrb[241].mxu1  ;;  %v3344_v12 = vpop.f32.mrb[242].mxu0 }
 0x2d6   : > { %v7653_v24 = vadd.f32 %v3477_v9, %v3376_v62  ;;  %v3377_v32 = vadd.f32 %v3344_v12, %v7602_v42  ;;  %v3480_v63 = vpop.f32.mrb[242].mxu1  ;;  %v5152_v22 = vpop.f32.mrb[243].mxu0 }
 0x2d7   : > { %v5190_v37 = vpop.f32.mrb[243].mxu1 }
 0x2d8   : > { %v7656_v21 = vadd.f32 %v3480_v63, %v3377_v32 }
 0x2db   : > { %v3349_v7 = vpop.f32.mrb[244].mxu0 }
 0x2dc   : > { %v3378_v55 = vadd.f32 %v3349_v7, %v7605_v44  ;;  %v3485_v41 = vpop.f32.mrb[244].mxu1  ;;  %v5155_v57 = vpop.f32.mrb[245].mxu0 }
 0x2dd   : > { %v5193_v50 = vpop.f32.mrb[245].mxu1  ;;  %v3352_v8 = vpop.f32.mrb[246].mxu0 }
 0x2de   : > { %v7659_v11 = vadd.f32 %v3485_v41, %v3378_v55  ;;  %v3379_v1 = vadd.f32 %v3352_v8, %v7608_v16  ;;  %v3488_v45 = vpop.f32.mrb[246].mxu1  ;;  %v5156_v40 = vpop.f32.mrb[247].mxu0 }
 0x2df   : > { %v5194_v27 = vpop.f32.mrb[247].mxu1 }
 0x2e0   : > { %v7662_v42 = vadd.f32 %v3488_v45, %v3379_v1 }
 0x2e3   : > { %v3357_v35 = vpop.f32.mrb[248].mxu0 }
 0x2e4   : > { %v3380_v30 = vadd.f32 %v3357_v35, %v7611_v19  ;;  %v3493_v53 = vpop.f32.mrb[248].mxu1  ;;  %v5159_v61 = vpop.f32.mrb[249].mxu0 }
 0x2e5   : > { %v5197_v31 = vpop.f32.mrb[249].mxu1  ;;  %v3360_v44 = vpop.f32.mrb[250].mxu0 }
 0x2e6   : > { %v7665_v23 = vadd.f32 %v3493_v53, %v3380_v30  ;;  %v3381_v54 = vadd.f32 %v3360_v44, %v7614_v51  ;;  %v3496_v33 = vpop.f32.mrb[250].mxu1  ;;  %v5160_v36 = vpop.f32.mrb[251].mxu0 }
 0x2e7   : > { %v5198_v16 = vpop.f32.mrb[251].mxu1 }
 0x2e8   : > { %v7668_v13 = vadd.f32 %v3496_v33, %v3381_v54 }
 0x2eb   : > { %v3587_v17 = vpop.f32.mrb[252].mxu0 }
 0x2ec   : > { %v3658_v15 = vadd.f32 %v3587_v17, %v7617_v25  ;;  %v3745_v34 = vpop.f32.mrb[252].mxu1  ;;  %v5203_v19 = vpop.f32.mrb[253].mxu0 }
 0x2ed   : > { %v5241_v58 = vpop.f32.mrb[253].mxu1  ;;  %v3590_v48 = vpop.f32.mrb[254].mxu0 }
 0x2ee   : > { %v3816_v51 = vadd.f32 %v3745_v34, %v3658_v15  ;;  %v3659_v4 = vadd.f32 %v3590_v48, %v7620_v20  ;;  %v3748_v43 = vpop.f32.mrb[254].mxu1  ;;  %v5204_v28 = vpop.f32.mrb[255].mxu0 }
 0x2ef   : > { %v5242_v29 = vpop.f32.mrb[255].mxu1 }
 0x2f0   : > { %v3841_v6 = vadd.f32 %v7674_v49, %v3816_v51  ;;  %v3817_v39 = vadd.f32 %v3748_v43, %v3659_v4 }
 0x2f2   : > { %v3877_v25 = vmul.f32 0.2, %v3841_v6  ;;  %v3842_v47 = vadd.f32 %v7674_v49, %v3817_v39  ;;  %vm3859_vm6 = vcmp.ge.f32.partialorder %v3841_v6, 0.0 }
 0x2f3   : > { %v3595_v5 = vpop.f32.mrb[0].mxu0 }
 0x2f4   : > { %vm3860_vm7 = vcmp.ge.f32.partialorder %v3842_v47, 0.0  ;;  %v3878_v52 = vmul.f32 0.2, %v3842_v47  ;;  %v3660_v62 = vadd.f32 %v3595_v5, %v7623_v14  ;;  %v3753_v9 = vpop.f32.mrb[0].mxu1  ;;  %v5207_v20 = vpop.f32.mrb[1].mxu0  ;;  %v3895_v12 = vsel %vm3859_vm6, %v3841_v6, %v3877_v25 }
 0x2f5   : > { %v5245_v2 = vpop.f32.mrb[1].mxu1  ;;  %v3598_v56 = vpop.f32.mrb[2].mxu0 }
 0x2f6   : > { %v3896_v32 = vsel %vm3860_vm7, %v3842_v47, %v3878_v52  ;;  %v3818_v63 = vadd.f32 %v3753_v9, %v3660_v62  ;;  %v3661_v22 = vadd.f32 %v3598_v56, %v7626_v38  ;;  %v3756_v37 = vpop.f32.mrb[2].mxu1  ;;  %v5208_v7 = vpop.f32.mrb[3].mxu0 }
 0x2f7   : > { %v4457_v55 = vpack.c.bf16 %v3896_v32, %v3895_v12  ;;  %v5246_v41 = vpop.f32.mrb[3].mxu1 }
 0x2f8   : > { %v3843_v57 = vadd.f32 %v7674_v49, %v3818_v63  ;;  %v3819_v50 = vadd.f32 %v3756_v37, %v3661_v22 }
 0x2f9   : > { %4458 = vst [vmem:[%s7685_s29] sm:$0xff] %v4457_v55  }
 0x2fa   : > { %v3879_v14 = vmul.f32 0.2, %v3843_v57  ;;  %v3844_v8 = vadd.f32 %v7674_v49, %v3819_v50  ;;  %vm3861_vm8 = vcmp.ge.f32.partialorder %v3843_v57, 0.0 }
 0x2fb   : > { %v3603_v1 = vpop.f32.mrb[4].mxu0 }
 0x2fc   : > { %vm3862_vm9 = vcmp.ge.f32.partialorder %v3844_v8, 0.0  ;;  %v3880_v45 = vmul.f32 0.2, %v3844_v8  ;;  %v3662_v38 = vadd.f32 %v3603_v1, %v7629_v10  ;;  %v3761_v40 = vpop.f32.mrb[4].mxu1  ;;  %v5211_v27 = vpop.f32.mrb[5].mxu0  ;;  %v3897_v53 = vsel %vm3861_vm8, %v3843_v57, %v3879_v14 }
 0x2fd   : > { %v5249_v35 = vpop.f32.mrb[5].mxu1  ;;  %v3606_v30 = vpop.f32.mrb[6].mxu0 }
 0x2fe   : > { %v3898_v61 = vsel %vm3862_vm9, %v3844_v8, %v3880_v45  ;;  %v3820_v31 = vadd.f32 %v3761_v40, %v3662_v38  ;;  %v3663_v44 = vadd.f32 %v3606_v30, %v7632_v26  ;;  %v3764_v54 = vpop.f32.mrb[6].mxu1  ;;  %v5212_v33 = vpop.f32.mrb[7].mxu0 }
 0x2ff   : > { %v4462_v36 = vpack.c.bf16 %v3898_v61, %v3897_v53  ;;  %v5250_v16 = vpop.f32.mrb[7].mxu1 }
 0x300   : > { %v3845_v17 = vadd.f32 %v7674_v49, %v3820_v31  ;;  %v3821_v15 = vadd.f32 %v3764_v54, %v3663_v44 }
 0x301   : > { %4499 = vst [vmem:[%s7685_s29 + $0x8] sm:$0xff] %v4462_v36  }
 0x302   : > { %v3881_v34 = vmul.f32 0.2, %v3845_v17  ;;  %v3846_v10 = vadd.f32 %v7674_v49, %v3821_v15  ;;  %vm3863_vm10 = vcmp.ge.f32.partialorder %v3845_v17, 0.0 }
 0x303   : > { %v3611_v19 = vpop.f32.mrb[8].mxu0 }
 0x304   : > { %vm3864_vm11 = vcmp.ge.f32.partialorder %v3846_v10, 0.0  ;;  %v3882_v58 = vmul.f32 0.2, %v3846_v10  ;;  %v3664_v48 = vadd.f32 %v3611_v19, %v7635_v46  ;;  %v3769_v51 = vpop.f32.mrb[8].mxu1  ;;  %v5215_v26 = vpop.f32.mrb[9].mxu0  ;;  %v3899_v28 = vsel %vm3863_vm10, %v3845_v17, %v3881_v34 }
 0x305   : > { %v5253_v4 = vpop.f32.mrb[9].mxu1  ;;  %v3614_v43 = vpop.f32.mrb[10].mxu0 }
 0x306   : > { %v3900_v29 = vsel %vm3864_vm11, %v3846_v10, %v3882_v58  ;;  %v3822_v6 = vadd.f32 %v3769_v51, %v3664_v48  ;;  %v3665_v39 = vadd.f32 %v3614_v43, %v7638_v0  ;;  %v3772_v25 = vpop.f32.mrb[10].mxu1  ;;  %v5216_v47 = vpop.f32.mrb[11].mxu0 }
 0x307   : > { %v4467_v5 = vpack.c.bf16 %v3900_v29, %v3899_v28  ;;  %v5254_v52 = vpop.f32.mrb[11].mxu1 }
 0x308   : > { %v3847_v62 = vadd.f32 %v7674_v49, %v3822_v6  ;;  %v3823_v9 = vadd.f32 %v3772_v25, %v3665_v39 }
 0x309   : > { %4500 = vst [vmem:[%s7685_s29 + $0x10] sm:$0xff] %v4467_v5  }
 0x30a   : > { %v3883_v20 = vmul.f32 0.2, %v3847_v62  ;;  %v3848_v46 = vadd.f32 %v7674_v49, %v3823_v9  ;;  %vm3865_vm12 = vcmp.ge.f32.partialorder %v3847_v62, 0.0 }
 0x30b   : > { %v3619_v2 = vpop.f32.mrb[12].mxu0 }
 0x30c   : > { %vm3866_vm13 = vcmp.ge.f32.partialorder %v3848_v46, 0.0  ;;  %v3884_v56 = vmul.f32 0.2, %v3848_v46  ;;  %v3666_v12 = vadd.f32 %v3619_v2, %v7641_v18  ;;  %v3777_v32 = vpop.f32.mrb[12].mxu1  ;;  %v5219_v0 = vpop.f32.mrb[13].mxu0  ;;  %v3901_v37 = vsel %vm3865_vm12, %v3847_v62, %v3883_v20 }
 0x30d   : > { %v5257_v63 = vpop.f32.mrb[13].mxu1  ;;  %v3622_v22 = vpop.f32.mrb[14].mxu0 }
 0x30e   : > { %v3902_v7 = vsel %vm3866_vm13, %v3848_v46, %v3884_v56  ;;  %v3824_v55 = vadd.f32 %v3777_v32, %v3666_v12  ;;  %v3667_v41 = vadd.f32 %v3622_v22, %v7644_v60  ;;  %v3780_v57 = vpop.f32.mrb[14].mxu1  ;;  %v5220_v50 = vpop.f32.mrb[15].mxu0 }
 0x30f   : > { %v4472_v14 = vpack.c.bf16 %v3902_v7, %v3901_v37  ;;  %v5258_v8 = vpop.f32.mrb[15].mxu1 }
 0x310   : > { %v3849_v1 = vadd.f32 %v7674_v49, %v3824_v55  ;;  %v3825_v45 = vadd.f32 %v3780_v57, %v3667_v41 }
 0x311   : > { %4501 = vst [vmem:[%s7685_s29 + $0x18] sm:$0xff] %v4472_v14  }
 0x312   : > { %v3885_v38 = vmul.f32 0.2, %v3849_v1  ;;  %v3850_v18 = vadd.f32 %v7674_v49, %v3825_v45  ;;  %vm3867_vm14 = vcmp.ge.f32.partialorder %v3849_v1, 0.0 }
 0x313   : > { %v3627_v40 = vpop.f32.mrb[16].mxu0 }
 0x314   : > { %vm3868_vm15 = vcmp.ge.f32.partialorder %v3850_v18, 0.0  ;;  %v3886_v27 = vmul.f32 0.2, %v3850_v18  ;;  %v3668_v35 = vadd.f32 %v3627_v40, %v7647_v3  ;;  %v3785_v30 = vpop.f32.mrb[16].mxu1  ;;  %v5223_v60 = vpop.f32.mrb[17].mxu0  ;;  %v3903_v31 = vsel %vm3867_vm14, %v3849_v1, %v3885_v38 }
 0x315   : > { %v5261_v53 = vpop.f32.mrb[17].mxu1  ;;  %v3630_v61 = vpop.f32.mrb[18].mxu0 }
 0x316   : > { %v3904_v44 = vsel %vm3868_vm15, %v3850_v18, %v3886_v27  ;;  %v3826_v54 = vadd.f32 %v3785_v30, %v3668_v35  ;;  %v3669_v33 = vadd.f32 %v3630_v61, %v7650_v59  ;;  %v3788_v36 = vpop.f32.mrb[18].mxu1  ;;  %v5224_v16 = vpop.f32.mrb[19].mxu0 }
 0x317   : > { %v4477_v17 = vpack.c.bf16 %v3904_v44, %v3903_v31  ;;  %v5262_v15 = vpop.f32.mrb[19].mxu1 }
 0x318   : > { %v3851_v34 = vadd.f32 %v7674_v49, %v3826_v54  ;;  %v3827_v10 = vadd.f32 %v3788_v36, %v3669_v33 }
 0x319   : > { %4502 = vst [vmem:[%s7685_s29 + $0x20] sm:$0xff] %v4477_v17  }
 0x31a   : > { %v3887_v19 = vmul.f32 0.2, %v3851_v34  ;;  %v3852_v3 = vadd.f32 %v7674_v49, %v3827_v10  ;;  %vm3869_vm0 = vcmp.ge.f32.partialorder %v3851_v34, 0.0 }
 0x31b   : > { %v3635_v58 = vpop.f32.mrb[20].mxu0 }
 0x31c   : > { %vm3870_vm1 = vcmp.ge.f32.partialorder %v3852_v3, 0.0  ;;  %v3888_v48 = vmul.f32 0.2, %v3852_v3  ;;  %v3670_v51 = vadd.f32 %v3635_v58, %v7653_v24  ;;  %v3793_v26 = vpop.f32.mrb[20].mxu1  ;;  %v5227_v59 = vpop.f32.mrb[21].mxu0  ;;  %v3905_v28 = vsel %vm3869_vm0, %v3851_v34, %v3887_v19 }
 0x31d   : > { %v5265_v4 = vpop.f32.mrb[21].mxu1  ;;  %v3638_v43 = vpop.f32.mrb[22].mxu0 }
 0x31e   : > { %v3906_v29 = vsel %vm3870_vm1, %v3852_v3, %v3888_v48  ;;  %v3828_v6 = vadd.f32 %v3793_v26, %v3670_v51  ;;  %v3671_v39 = vadd.f32 %v3638_v43, %v7656_v21  ;;  %v3796_v25 = vpop.f32.mrb[22].mxu1  ;;  %v5228_v47 = vpop.f32.mrb[23].mxu0 }
 0x31f   : > { %v4482_v5 = vpack.c.bf16 %v3906_v29, %v3905_v28  ;;  %v5266_v52 = vpop.f32.mrb[23].mxu1 }
 0x320   : > { %v3853_v62 = vadd.f32 %v7674_v49, %v3828_v6  ;;  %v3829_v9 = vadd.f32 %v3796_v25, %v3671_v39 }
 0x321   : > { %4503 = vst [vmem:[%s7685_s29 + $0x28] sm:$0xff] %v4482_v5  }
 0x322   : > { %v3889_v20 = vmul.f32 0.2, %v3853_v62  ;;  %v3854_v24 = vadd.f32 %v7674_v49, %v3829_v9  ;;  %vm3871_vm2 = vcmp.ge.f32.partialorder %v3853_v62, 0.0 }
 0x323   : > { %v3643_v46 = vpop.f32.mrb[24].mxu0 }
 0x324   : > { %vm3872_vm3 = vcmp.ge.f32.partialorder %v3854_v24, 0.0  ;;  %v3890_v2 = vmul.f32 0.2, %v3854_v24  ;;  %v3672_v56 = vadd.f32 %v3643_v46, %v7659_v11  ;;  %v3801_v12 = vpop.f32.mrb[24].mxu1  ;;  %v5231_v21 = vpop.f32.mrb[25].mxu0  ;;  %v3907_v63 = vsel %vm3871_vm2, %v3853_v62, %v3889_v20 }
 0x325   : > { %v5269_v32 = vpop.f32.mrb[25].mxu1  ;;  %v3646_v0 = vpop.f32.mrb[26].mxu0 }
 0x326   : > { %v3908_v22 = vsel %vm3872_vm3, %v3854_v24, %v3890_v2  ;;  %v3830_v37 = vadd.f32 %v3801_v12, %v3672_v56  ;;  %v3673_v7 = vadd.f32 %v3646_v0, %v7662_v42  ;;  %v3804_v55 = vpop.f32.mrb[26].mxu1  ;;  %v5232_v41 = vpop.f32.mrb[27].mxu0 }
 0x327   : > { %v4487_v57 = vpack.c.bf16 %v3908_v22, %v3907_v63  ;;  %v5270_v50 = vpop.f32.mrb[27].mxu1 }
 0x328   : > { %v3855_v14 = vadd.f32 %v7674_v49, %v3830_v37  ;;  %v3831_v8 = vadd.f32 %v3804_v55, %v3673_v7 }
 0x329   : > { %4504 = vst [vmem:[%s7685_s29 + $0x30] sm:$0xff] %v4487_v57  }
 0x32a   : > { %v3891_v1 = vmul.f32 0.2, %v3855_v14  ;;  %v3856_v11 = vadd.f32 %v7674_v49, %v3831_v8  ;;  %vm3873_vm4 = vcmp.ge.f32.partialorder %v3855_v14, 0.0 }
 0x32b   : > { %v3651_v45 = vpop.f32.mrb[28].mxu0 }
 0x32c   : > { %vm3874_vm5 = vcmp.ge.f32.partialorder %v3856_v11, 0.0  ;;  %v3892_v38 = vmul.f32 0.2, %v3856_v11  ;;  %v3674_v18 = vadd.f32 %v3651_v45, %v7665_v23  ;;  %v3809_v40 = vpop.f32.mrb[28].mxu1  ;;  %v5235_v42 = vpop.f32.mrb[29].mxu0  ;;  %v3909_v30 = vsel %vm3873_vm4, %v3855_v14, %v3891_v1 }
 0x32d   : > { %v5273_v27 = vpop.f32.mrb[29].mxu1  ;;  %v3654_v35 = vpop.f32.mrb[30].mxu0 }
 0x32e   : > { %v3910_v60 = vsel %vm3874_vm5, %v3856_v11, %v3892_v38  ;;  %v3832_v53 = vadd.f32 %v3809_v40, %v3674_v18  ;;  %v3675_v61 = vadd.f32 %v3654_v35, %v7668_v13  ;;  %v3812_v31 = vpop.f32.mrb[30].mxu1  ;;  %v5236_v44 = vpop.f32.mrb[31].mxu0 }
 0x32f   : > { %v4492_v54 = vpack.c.bf16 %v3910_v60, %v3909_v30  ;;  %v5274_v33 = vpop.f32.mrb[31].mxu1 }
 0x330   : > { %v3857_v36 = vadd.f32 %v7674_v49, %v3832_v53  ;;  %v3833_v23 = vadd.f32 %v3812_v31, %v3675_v61 }
 0x331   : > { %4505 = vst [vmem:[%s7685_s29 + $0x38] sm:$0xff] %v4492_v54  }
 0x332   : > { %v3893_v16 = vmul.f32 0.2, %v3857_v36  ;;  %v3858_v17 = vadd.f32 %v7674_v49, %v3833_v23  ;;  %vm3875_vm6 = vcmp.ge.f32.partialorder %v3857_v36, 0.0 }
 0x334   : > { %vm3876_vm7 = vcmp.ge.f32.partialorder %v3858_v17, 0.0  ;;  %v3894_v15 = vmul.f32 0.2, %v3858_v17  ;;  %v3911_v13 = vsel %vm3875_vm6, %v3857_v36, %v3893_v16 }
 0x336   : > { %v3912_v34 = vsel %vm3876_vm7, %v3858_v17, %v3894_v15 }
 0x337   : > { %v4497_v10 = vpack.c.bf16 %v3912_v34, %v3911_v13 }
 0x339   : > { %4506 = vst [vmem:[%s7685_s29 + $0x40] sm:$0xff] %v4497_v10  }
 0x33a   : > { %5374 = shalt.err (!%p5371_p3)
}
 0x33b   : > { %s5375_s19 = scalar_lea.hbm %s7729_s8, 1152  ;;  %s5379_s25 = scalar_lea.hbm %s7780_s3, 2304 }
 0x33c   : > { %p5376_p4 = scmp.ne.s32.totalorder %s7729_s8, %s5375_s19  ;;  %p5380_p9 = scmp.lt.u32.totalorder %s7729_s8, %s7780_s3 }
 0x33d   : > { %p5381_p10 = scmp.lt.u32.totalorder %s5379_s25, %s5375_s19  ;;  %p5383_p12 = scmp.lt.u32.totalorder %s5375_s19, %s7729_s8 }
 0x33e   : > { %p5377_p7 = pnand %p5376_p4, %p5488_p5 }
 0x33f   : > { %p5382_p11 = por %p5381_p10, %p5380_p9 }
 0x340   : > { %p5378_p8 = pneg %p5377_p7 }
 0x341   : > { %p5384_p13 = por %p5383_p12, %p5382_p11 }
 0x343   : > { %p5385_p0 = pnand %p5384_p13, %p5378_p8 }
 0x345   : > { %5388 = shalt.err (!%p5385_p0)
}
 0x346   : > { %s5428_s27 = smov 64   ;;  %s5429_s28 = smov 4  }
 0x347   : > { %5278 = dma.vmem_to_hbm [thread:$0]  (%p5488_p5), %s7731_s4, 1152, %s7729_s8, %s7736_s16, %s5428_s27, %s5428_s27, %s5429_s28  }
 0x348 PF: > { %p5284_p1 = scmp.ge.s32.totalorder %s5423_s15, 2  ;;  %s4032_s29 = sand.u32 1, %s5411_s12  }
 0x349   : > { %s4033_s30 = scalar_lea.sflag [#allocation3], %s4032_s29 }
 0x34a   : > { %p5281_p2 = pnand %p5284_p1, %p5492_p6 }
 0x34c   : > { %5406 = dma.done.wait (!%p5281_p2), %s4033_s30, 1152  }
 0x34d   : > { %5408 = vsyncadd (!%p5281_p2), %s4033_s30, 4294966144  ;;  %p13_p3 = scmp.ge.s32.totalorder %s5475_s18, 4   ;;  %s7983_s12 = smov %s5415_s13 }
 0x34e   : > { %s7984_s13 = smov %s5419_s14  ;;  %s7985_s14 = smov %s5486_s21 }
 0x34f   : > { %s7986_s15 = smov %s5475_s18  ;;  %15 = sbr.rel (!%p13_p3) target bundleno = 3 (0x3), region = 85 }
 0x356   :  { %4038 = vsyncpa [#allocation3], 1 }
 0x357   :  { %4040 = vsyncpa [#allocation3 + $0x1], 1 }

</bundles_post_ra>
